<compile_context>
chip_gen: v7x
topology: tpu7x:2x2x1
jax: 0.10.0
libtpu: 0.0.40
codegen_flags: <defaults>
</compile_context>

<pallas_src>
import jax
import jax.numpy as jnp
from jax.experimental import pallas as pl
from jax.experimental.pallas import tpu as pltpu


def fe_fused_kernel(x_ref,                      # (1, H*W, 9*C0)  layer-1 im2col
                    w1_ref, b1_ref,             # (9*C0, C), (1, C)
                    w2_ref, b2_ref,             # (9*C,  C), (1, C)
                    w3_ref, b3_ref,             # (9*C,  C), (1, C)
                    alpha_ref,                  # (3,) f32 in SMEM
                    o_ref,                      # (1, H*W, C)
                    pad_ref):                   # (H+2, W+2, C) f32 VMEM scratch
    Hp, Wp, C = pad_ref.shape
    H, W = Hp - 2, Wp - 2

    # Zero ONLY the 1-pixel halo strips (conv padding=1).  The interior is
    # fully overwritten before every read, so no full-buffer zeroing and no
    # reliance on cross-step scratch persistence (safe under megacore splits
    # of the parallel batch axis).
    zrow = jnp.zeros((1, Wp, C), jnp.float32)
    zcol = jnp.zeros((Hp, 1, C), jnp.float32)
    pad_ref[pl.ds(0, 1), :, :] = zrow
    pad_ref[pl.ds(Hp - 1, 1), :, :] = zrow
    pad_ref[:, pl.ds(0, 1), :] = zcol
    pad_ref[:, pl.ds(Wp - 1, 1), :] = zcol

    def prelu(y, a):
        return jnp.where(y > 0, y, a * y)

    def conv64(w_ref):
        # 3x3 conv over the zero-padded activation as 9 accumulated K=C MXU
        # dots on shifted windows.  K order (dh, dw, cin) matches the HWIO
        # weight reshape done in the wrapper.
        acc = jnp.zeros((H * W, C), jnp.float32)
        k = 0
        for dh in range(3):
            for dw in range(3):
                lhs = pad_ref[pl.ds(dh, H), pl.ds(dw, W), :].reshape(H * W, C)
                acc = acc + jnp.dot(lhs, w_ref[pl.ds(k * C, C), :],
                                    preferred_element_type=jnp.float32)
                k += 1
        return acc

    # ---- layer 1 (Cin=3): single K=27 MXU matmul on the pre-built im2col ----
    y = jnp.dot(x_ref[0], w1_ref[...], preferred_element_type=jnp.float32)
    y = prelu(y + b1_ref[...], alpha_ref[0])

    # ---- layer 2 (Cin=64): re-pad interior in VMEM, 9 accumulated dots ----
    pad_ref[pl.ds(1, H), pl.ds(1, W), :] = y.reshape(H, W, C)
    y = prelu(conv64(w2_ref) + b2_ref[...], alpha_ref[1])

    # ---- layer 3 (Cin=64): same scratch reused, halo is still zero ----
    pad_ref[pl.ds(1, H), pl.ds(1, W), :] = y.reshape(H, W, C)
    y = prelu(conv64(w3_ref) + b3_ref[...], alpha_ref[2])

    o_ref[0] = y.astype(o_ref.dtype)                       # (H*W, C)


@jax.jit
def fe_forward(x_nchw, params):
    """Forward pass of FE.  x_nchw: (N, 3, H, W) -> (N, 64, H, W)."""
    (w1, b1, a1), (w2, b2, a2), (w3, b3, a3) = params
    N, C0, H, W = x_nchw.shape
    C = w1.shape[-1]

    # NCHW -> NHWC, f32; build the tiny layer-1 im2col (K = 9*3 = 27) in the
    # wrapper so the 3-channel layout never drives the kernel.
    x = jnp.transpose(x_nchw, (0, 2, 3, 1)).astype(jnp.float32)
    xp = jnp.pad(x, ((0, 0), (1, 1), (1, 1), (0, 0)))
    cols = [xp[:, dh:dh + H, dw:dw + W, :]
            for dh in range(3) for dw in range(3)]
    lhs1 = jnp.concatenate(cols, axis=-1).reshape(N, H * W, 9 * C0)

    # HWIO weights -> (kh*kw*cin, cout) matmul form (matches im2col / tap order).
    w1m = w1.reshape(9 * C0, C)
    w2m = w2.reshape(9 * C, C)
    w3m = w3.reshape(9 * C, C)
    b1m = b1.reshape(1, C)
    b2m = b2.reshape(1, C)
    b3m = b3.reshape(1, C)
    alphas = jnp.stack([a1, a2, a3]).astype(jnp.float32)   # (3,) -> SMEM

    out = pl.pallas_call(
        fe_fused_kernel,
        out_shape=jax.ShapeDtypeStruct((N, H * W, C), jnp.float32),
        grid_spec=pltpu.PrefetchScalarGridSpec(
            num_scalar_prefetch=0,
            grid=(N,),
            in_specs=[
                pl.BlockSpec((1, H * W, 9 * C0), lambda n: (n, 0, 0)),
                pl.BlockSpec((9 * C0, C), lambda n: (0, 0)),
                pl.BlockSpec((1, C), lambda n: (0, 0)),
                pl.BlockSpec((9 * C, C), lambda n: (0, 0)),
                pl.BlockSpec((1, C), lambda n: (0, 0)),
                pl.BlockSpec((9 * C, C), lambda n: (0, 0)),
                pl.BlockSpec((1, C), lambda n: (0, 0)),
                pl.BlockSpec(memory_space=pltpu.MemorySpace.SMEM),  # alphas
            ],
            out_specs=pl.BlockSpec((1, H * W, C), lambda n: (n, 0, 0)),
            scratch_shapes=[
                pltpu.VMEM((H + 2, W + 2, C), jnp.float32),
            ],
        ),
        compiler_params=pltpu.CompilerParams(
            dimension_semantics=("parallel",),
            vmem_limit_bytes=32 * 1024 * 1024),
    )(lhs1, w1m, b1m, w2m, b2m, w3m, b3m, alphas)

    # (N, H*W, C) -> NHWC -> NCHW (PyTorch output convention).
    # TODO(synk): drop this transpose if the consumer accepts NHWC.
    return jnp.transpose(out.reshape(N, H, W, C), (0, 3, 1, 2))


def init_fe_params(key):
    """Deterministic synthetic params matching FE.__init__ shapes.

    Conv weights stored as (3, 3, Cin, Cout) (HWIO); PyTorch uses OIHW —
    equivalent up to this fixed permutation since init is synthetic.
    """
    ks = jax.random.split(key, 6)
    dims = [(3, 64), (64, 64), (64, 64)]
    params = []
    for i, (cin, cout) in enumerate(dims):
        fan_in = cin * 9
        bound = 1.0 / (fan_in ** 0.5)
        w = jax.random.uniform(ks[2 * i], (3, 3, cin, cout),
                               jnp.float32, -bound, bound)
        b = jax.random.uniform(ks[2 * i + 1], (cout,),
                               jnp.float32, -bound, bound)
        alpha = jnp.float32(0.25)  # PReLU default init (single shared alpha)
        params.append((w, b, alpha))
    return params


def fe_reference(x_nchw, params):
    """Pure-JAX reference (XLA conv) for correctness checking."""
    x = jnp.transpose(x_nchw, (0, 2, 3, 1)).astype(jnp.float32)
    for (w, b, a) in params:
        y = jax.lax.conv_general_dilated(
            x, w, window_strides=(1, 1), padding=((1, 1), (1, 1)),
            dimension_numbers=("NHWC", "HWIO", "NHWC"))
        y = y + b
        x = jnp.where(y > 0, y, a * y)
    return jnp.transpose(x, (0, 3, 1, 2))


if __name__ == "__main__":
    key = jax.random.PRNGKey(0)
    k_x, k_p = jax.random.split(key)
    x = jax.random.normal(k_x, (2, 3, 16, 16), jnp.float32)  # NCHW like PyTorch
    params = init_fe_params(k_p)

    out = jax.block_until_ready(fe_forward(x, params))
    assert out.shape == (2, 64, 16, 16)

    ref = jax.block_until_ready(fe_reference(x, params))
    max_err = float(jnp.max(jnp.abs(out - ref)))
    assert jnp.allclose(out, ref, atol=2e-3, rtol=2e-3), max_err

    print("KERNEL_OK")
</pallas_src>

<mosaic_0001>
module attributes {stable_mosaic.version = 11 : i64} {
  func.func @fe_fused_kernel(%arg0: i32, %arg1: memref<1x256x27xf32, #tpu.memory_space<vmem>>, %arg2: memref<27x64xf32, #tpu.memory_space<vmem>>, %arg3: memref<1x64xf32, #tpu.memory_space<vmem>>, %arg4: memref<576x64xf32, #tpu.memory_space<vmem>>, %arg5: memref<1x64xf32, #tpu.memory_space<vmem>>, %arg6: memref<576x64xf32, #tpu.memory_space<vmem>>, %arg7: memref<1x64xf32, #tpu.memory_space<vmem>>, %arg8: memref<3xf32, #tpu.memory_space<smem>>, %arg9: memref<1x256x64xf32, #tpu.memory_space<vmem>>, %arg10: memref<18x18x64xf32, #tpu.memory_space<vmem>>) attributes {dimension_semantics = [#tpu.dimension_semantics<parallel>], iteration_bounds = array<i64: 2>, scalar_prefetch = 0 : i64, scratch_operands = 1 : i64, tpu.core_type = #tpu.core_type<tc>, window_params = [{transform_indices = @transform_0, window_bounds = array<i64: 1, 256, 27>}, {pipeline_mode = #tpu.pipeline_mode<synchronous>, transform_indices = @transform_1, window_bounds = array<i64: 27, 64>}, {pipeline_mode = #tpu.pipeline_mode<synchronous>, transform_indices = @transform_2, window_bounds = array<i64: 1, 64>}, {pipeline_mode = #tpu.pipeline_mode<synchronous>, transform_indices = @transform_3, window_bounds = array<i64: 576, 64>}, {pipeline_mode = #tpu.pipeline_mode<synchronous>, transform_indices = @transform_4, window_bounds = array<i64: 1, 64>}, {pipeline_mode = #tpu.pipeline_mode<synchronous>, transform_indices = @transform_5, window_bounds = array<i64: 576, 64>}, {pipeline_mode = #tpu.pipeline_mode<synchronous>, transform_indices = @transform_6, window_bounds = array<i64: 1, 64>}, {transform_indices = @transform_7, window_bounds = array<i64: 3>}, {transform_indices = @transform_8, window_bounds = array<i64: 1, 256, 64>}]} {
    %cst = arith.constant 0.000000e+00 : f32
    %0 = vector.broadcast %cst : f32 to vector<1x18x64xf32>
    %cst_0 = arith.constant 0.000000e+00 : f32
    %1 = vector.broadcast %cst_0 : f32 to vector<18x1x64xf32>
    %c0 = arith.constant 0 : index
    %c0_1 = arith.constant 0 : index
    %c0_2 = arith.constant 0 : index
    %2 = vector.load %arg10[%c0, %c0_1, %c0_2] : memref<18x18x64xf32, #tpu.memory_space<vmem>>, vector<1x18x64xf32>
    tpu.vector_store %arg10[%c0, %c0_1, %c0_2], %0 {strides = array<i32>} : memref<18x18x64xf32, #tpu.memory_space<vmem>>, vector<1x18x64xf32>,
    %c17 = arith.constant 17 : index
    %c0_3 = arith.constant 0 : index
    %c0_4 = arith.constant 0 : index
    %3 = vector.load %arg10[%c17, %c0_3, %c0_4] : memref<18x18x64xf32, #tpu.memory_space<vmem>>, vector<1x18x64xf32>
    tpu.vector_store %arg10[%c17, %c0_3, %c0_4], %0 {strides = array<i32>} : memref<18x18x64xf32, #tpu.memory_space<vmem>>, vector<1x18x64xf32>,
    %c0_5 = arith.constant 0 : index
    %c0_6 = arith.constant 0 : index
    %c0_7 = arith.constant 0 : index
    %4 = vector.load %arg10[%c0_5, %c0_6, %c0_7] : memref<18x18x64xf32, #tpu.memory_space<vmem>>, vector<18x1x64xf32>
    tpu.vector_store %arg10[%c0_5, %c0_6, %c0_7], %1 {strides = array<i32>} : memref<18x18x64xf32, #tpu.memory_space<vmem>>, vector<18x1x64xf32>,
    %c0_8 = arith.constant 0 : index
    %c17_9 = arith.constant 17 : index
    %c0_10 = arith.constant 0 : index
    %5 = vector.load %arg10[%c0_8, %c17_9, %c0_10] : memref<18x18x64xf32, #tpu.memory_space<vmem>>, vector<18x1x64xf32>
    tpu.vector_store %arg10[%c0_8, %c17_9, %c0_10], %1 {strides = array<i32>} : memref<18x18x64xf32, #tpu.memory_space<vmem>>, vector<18x1x64xf32>,
    %c0_11 = arith.constant 0 : index
    %c0_12 = arith.constant 0 : index
    %c0_13 = arith.constant 0 : index
    %6 = vector.load %arg1[%c0_11, %c0_12, %c0_13] : memref<1x256x27xf32, #tpu.memory_space<vmem>>, vector<1x256x27xf32>
    %7 = vector.shape_cast %6 : vector<1x256x27xf32> to vector<256x27xf32>
    %c0_14 = arith.constant 0 : index
    %c0_15 = arith.constant 0 : index
    %8 = vector.load %arg2[%c0_14, %c0_15] : memref<27x64xf32, #tpu.memory_space<vmem>>, vector<27x64xf32>
    %cst_16 = arith.constant dense<0.000000e+00> : vector<256x64xf32>
    %9 = tpu.matmul %7, %8, %cst_16 {dimension_numbers = #tpu.dot_dimension_numbers<[1], [0], [0], [1], [0, 0, 1, 1], [], []>} : vector<256x27xf32>, vector<27x64xf32>, vector<256x64xf32> -> vector<256x64xf32>
    %c0_17 = arith.constant 0 : index
    %c0_18 = arith.constant 0 : index
    %10 = vector.load %arg3[%c0_17, %c0_18] : memref<1x64xf32, #tpu.memory_space<vmem>>, vector<1x64xf32>
    %11 = vector.broadcast %10 : vector<1x64xf32> to vector<256x64xf32>
    %12 = arith.addf %9, %11 : vector<256x64xf32>
    %c0_19 = arith.constant 0 : index
    %13 = memref.load %arg8[%c0_19] : memref<3xf32, #tpu.memory_space<smem>>
    %cst_20 = arith.constant 0.000000e+00 : f32
    %14 = vector.broadcast %cst_20 : f32 to vector<256x64xf32>
    %15 = arith.cmpf ogt, %12, %14 : vector<256x64xf32>
    %16 = vector.broadcast %13 : f32 to vector<256x64xf32>
    %17 = arith.mulf %16, %12 : vector<256x64xf32>
    %18 = arith.select %15, %12, %17 : vector<256x64xi1>, vector<256x64xf32>
    %19 = vector.shape_cast %18 : vector<256x64xf32> to vector<16x16x64xf32>
    %c1 = arith.constant 1 : index
    %c1_21 = arith.constant 1 : index
    %c0_22 = arith.constant 0 : index
    %20 = vector.load %arg10[%c1, %c1_21, %c0_22] : memref<18x18x64xf32, #tpu.memory_space<vmem>>, vector<16x16x64xf32>
    tpu.vector_store %arg10[%c1, %c1_21, %c0_22], %19 {strides = array<i32>} : memref<18x18x64xf32, #tpu.memory_space<vmem>>, vector<16x16x64xf32>,
    %cst_23 = arith.constant 0.000000e+00 : f32
    %21 = vector.broadcast %cst_23 : f32 to vector<256x64xf32>
    %c0_24 = arith.constant 0 : index
    %c0_25 = arith.constant 0 : index
    %c0_26 = arith.constant 0 : index
    %22 = vector.load %arg10[%c0_24, %c0_25, %c0_26] : memref<18x18x64xf32, #tpu.memory_space<vmem>>, vector<16x16x64xf32>
    %23 = vector.shape_cast %22 : vector<16x16x64xf32> to vector<256x64xf32>
    %c0_27 = arith.constant 0 : index
    %c0_28 = arith.constant 0 : index
    %24 = vector.load %arg4[%c0_27, %c0_28] : memref<576x64xf32, #tpu.memory_space<vmem>>, vector<64x64xf32>
    %cst_29 = arith.constant dense<0.000000e+00> : vector<256x64xf32>
    %25 = tpu.matmul %23, %24, %cst_29 {dimension_numbers = #tpu.dot_dimension_numbers<[1], [0], [0], [1], [0, 0, 1, 1], [], []>} : vector<256x64xf32>, vector<64x64xf32>, vector<256x64xf32> -> vector<256x64xf32>
    %26 = arith.addf %21, %25 : vector<256x64xf32>
    %c0_30 = arith.constant 0 : index
    %c1_31 = arith.constant 1 : index
    %c0_32 = arith.constant 0 : index
    %27 = vector.load %arg10[%c0_30, %c1_31, %c0_32] : memref<18x18x64xf32, #tpu.memory_space<vmem>>, vector<16x16x64xf32>
    %28 = vector.shape_cast %27 : vector<16x16x64xf32> to vector<256x64xf32>
    %c64 = arith.constant 64 : index
    %c0_33 = arith.constant 0 : index
    %29 = vector.load %arg4[%c64, %c0_33] : memref<576x64xf32, #tpu.memory_space<vmem>>, vector<64x64xf32>
    %cst_34 = arith.constant dense<0.000000e+00> : vector<256x64xf32>
    %30 = tpu.matmul %28, %29, %cst_34 {dimension_numbers = #tpu.dot_dimension_numbers<[1], [0], [0], [1], [0, 0, 1, 1], [], []>} : vector<256x64xf32>, vector<64x64xf32>, vector<256x64xf32> -> vector<256x64xf32>
    %31 = arith.addf %26, %30 : vector<256x64xf32>
    %c0_35 = arith.constant 0 : index
    %c2 = arith.constant 2 : index
    %c0_36 = arith.constant 0 : index
    %32 = vector.load %arg10[%c0_35, %c2, %c0_36] : memref<18x18x64xf32, #tpu.memory_space<vmem>>, vector<16x16x64xf32>
    %33 = vector.shape_cast %32 : vector<16x16x64xf32> to vector<256x64xf32>
    %c128 = arith.constant 128 : index
    %c0_37 = arith.constant 0 : index
    %34 = vector.load %arg4[%c128, %c0_37] : memref<576x64xf32, #tpu.memory_space<vmem>>, vector<64x64xf32>
    %cst_38 = arith.constant dense<0.000000e+00> : vector<256x64xf32>
    %35 = tpu.matmul %33, %34, %cst_38 {dimension_numbers = #tpu.dot_dimension_numbers<[1], [0], [0], [1], [0, 0, 1, 1], [], []>} : vector<256x64xf32>, vector<64x64xf32>, vector<256x64xf32> -> vector<256x64xf32>
    %36 = arith.addf %31, %35 : vector<256x64xf32>
    %c1_39 = arith.constant 1 : index
    %c0_40 = arith.constant 0 : index
    %c0_41 = arith.constant 0 : index
    %37 = vector.load %arg10[%c1_39, %c0_40, %c0_41] : memref<18x18x64xf32, #tpu.memory_space<vmem>>, vector<16x16x64xf32>
    %38 = vector.shape_cast %37 : vector<16x16x64xf32> to vector<256x64xf32>
    %c192 = arith.constant 192 : index
    %c0_42 = arith.constant 0 : index
    %39 = vector.load %arg4[%c192, %c0_42] : memref<576x64xf32, #tpu.memory_space<vmem>>, vector<64x64xf32>
    %cst_43 = arith.constant dense<0.000000e+00> : vector<256x64xf32>
    %40 = tpu.matmul %38, %39, %cst_43 {dimension_numbers = #tpu.dot_dimension_numbers<[1], [0], [0], [1], [0, 0, 1, 1], [], []>} : vector<256x64xf32>, vector<64x64xf32>, vector<256x64xf32> -> vector<256x64xf32>
    %41 = arith.addf %36, %40 : vector<256x64xf32>
    %c1_44 = arith.constant 1 : index
    %c1_45 = arith.constant 1 : index
    %c0_46 = arith.constant 0 : index
    %42 = vector.load %arg10[%c1_44, %c1_45, %c0_46] : memref<18x18x64xf32, #tpu.memory_space<vmem>>, vector<16x16x64xf32>
    %43 = vector.shape_cast %42 : vector<16x16x64xf32> to vector<256x64xf32>
    %c256 = arith.constant 256 : index
    %c0_47 = arith.constant 0 : index
    %44 = vector.load %arg4[%c256, %c0_47] : memref<576x64xf32, #tpu.memory_space<vmem>>, vector<64x64xf32>
    %cst_48 = arith.constant dense<0.000000e+00> : vector<256x64xf32>
    %45 = tpu.matmul %43, %44, %cst_48 {dimension_numbers = #tpu.dot_dimension_numbers<[1], [0], [0], [1], [0, 0, 1, 1], [], []>} : vector<256x64xf32>, vector<64x64xf32>, vector<256x64xf32> -> vector<256x64xf32>
    %46 = arith.addf %41, %45 : vector<256x64xf32>
    %c1_49 = arith.constant 1 : index
    %c2_50 = arith.constant 2 : index
    %c0_51 = arith.constant 0 : index
    %47 = vector.load %arg10[%c1_49, %c2_50, %c0_51] : memref<18x18x64xf32, #tpu.memory_space<vmem>>, vector<16x16x64xf32>
    %48 = vector.shape_cast %47 : vector<16x16x64xf32> to vector<256x64xf32>
    %c320 = arith.constant 320 : index
    %c0_52 = arith.constant 0 : index
    %49 = vector.load %arg4[%c320, %c0_52] : memref<576x64xf32, #tpu.memory_space<vmem>>, vector<64x64xf32>
    %cst_53 = arith.constant dense<0.000000e+00> : vector<256x64xf32>
    %50 = tpu.matmul %48, %49, %cst_53 {dimension_numbers = #tpu.dot_dimension_numbers<[1], [0], [0], [1], [0, 0, 1, 1], [], []>} : vector<256x64xf32>, vector<64x64xf32>, vector<256x64xf32> -> vector<256x64xf32>
    %51 = arith.addf %46, %50 : vector<256x64xf32>
    %c2_54 = arith.constant 2 : index
    %c0_55 = arith.constant 0 : index
    %c0_56 = arith.constant 0 : index
    %52 = vector.load %arg10[%c2_54, %c0_55, %c0_56] : memref<18x18x64xf32, #tpu.memory_space<vmem>>, vector<16x16x64xf32>
    %53 = vector.shape_cast %52 : vector<16x16x64xf32> to vector<256x64xf32>
    %c384 = arith.constant 384 : index
    %c0_57 = arith.constant 0 : index
    %54 = vector.load %arg4[%c384, %c0_57] : memref<576x64xf32, #tpu.memory_space<vmem>>, vector<64x64xf32>
    %cst_58 = arith.constant dense<0.000000e+00> : vector<256x64xf32>
    %55 = tpu.matmul %53, %54, %cst_58 {dimension_numbers = #tpu.dot_dimension_numbers<[1], [0], [0], [1], [0, 0, 1, 1], [], []>} : vector<256x64xf32>, vector<64x64xf32>, vector<256x64xf32> -> vector<256x64xf32>
    %56 = arith.addf %51, %55 : vector<256x64xf32>
    %c2_59 = arith.constant 2 : index
    %c1_60 = arith.constant 1 : index
    %c0_61 = arith.constant 0 : index
    %57 = vector.load %arg10[%c2_59, %c1_60, %c0_61] : memref<18x18x64xf32, #tpu.memory_space<vmem>>, vector<16x16x64xf32>
    %58 = vector.shape_cast %57 : vector<16x16x64xf32> to vector<256x64xf32>
    %c448 = arith.constant 448 : index
    %c0_62 = arith.constant 0 : index
    %59 = vector.load %arg4[%c448, %c0_62] : memref<576x64xf32, #tpu.memory_space<vmem>>, vector<64x64xf32>
    %cst_63 = arith.constant dense<0.000000e+00> : vector<256x64xf32>
    %60 = tpu.matmul %58, %59, %cst_63 {dimension_numbers = #tpu.dot_dimension_numbers<[1], [0], [0], [1], [0, 0, 1, 1], [], []>} : vector<256x64xf32>, vector<64x64xf32>, vector<256x64xf32> -> vector<256x64xf32>
    %61 = arith.addf %56, %60 : vector<256x64xf32>
    %c2_64 = arith.constant 2 : index
    %c2_65 = arith.constant 2 : index
    %c0_66 = arith.constant 0 : index
    %62 = vector.load %arg10[%c2_64, %c2_65, %c0_66] : memref<18x18x64xf32, #tpu.memory_space<vmem>>, vector<16x16x64xf32>
    %63 = vector.shape_cast %62 : vector<16x16x64xf32> to vector<256x64xf32>
    %c512 = arith.constant 512 : index
    %c0_67 = arith.constant 0 : index
    %64 = vector.load %arg4[%c512, %c0_67] : memref<576x64xf32, #tpu.memory_space<vmem>>, vector<64x64xf32>
    %cst_68 = arith.constant dense<0.000000e+00> : vector<256x64xf32>
    %65 = tpu.matmul %63, %64, %cst_68 {dimension_numbers = #tpu.dot_dimension_numbers<[1], [0], [0], [1], [0, 0, 1, 1], [], []>} : vector<256x64xf32>, vector<64x64xf32>, vector<256x64xf32> -> vector<256x64xf32>
    %66 = arith.addf %61, %65 : vector<256x64xf32>
    %c0_69 = arith.constant 0 : index
    %c0_70 = arith.constant 0 : index
    %67 = vector.load %arg5[%c0_69, %c0_70] : memref<1x64xf32, #tpu.memory_space<vmem>>, vector<1x64xf32>
    %68 = vector.broadcast %67 : vector<1x64xf32> to vector<256x64xf32>
    %69 = arith.addf %66, %68 : vector<256x64xf32>
    %c1_71 = arith.constant 1 : index
    %70 = memref.load %arg8[%c1_71] : memref<3xf32, #tpu.memory_space<smem>>
    %cst_72 = arith.constant 0.000000e+00 : f32
    %71 = vector.broadcast %cst_72 : f32 to vector<256x64xf32>
    %72 = arith.cmpf ogt, %69, %71 : vector<256x64xf32>
    %73 = vector.broadcast %70 : f32 to vector<256x64xf32>
    %74 = arith.mulf %73, %69 : vector<256x64xf32>
    %75 = arith.select %72, %69, %74 : vector<256x64xi1>, vector<256x64xf32>
    %76 = vector.shape_cast %75 : vector<256x64xf32> to vector<16x16x64xf32>
    %c1_73 = arith.constant 1 : index
    %c1_74 = arith.constant 1 : index
    %c0_75 = arith.constant 0 : index
    %77 = vector.load %arg10[%c1_73, %c1_74, %c0_75] : memref<18x18x64xf32, #tpu.memory_space<vmem>>, vector<16x16x64xf32>
    tpu.vector_store %arg10[%c1_73, %c1_74, %c0_75], %76 {strides = array<i32>} : memref<18x18x64xf32, #tpu.memory_space<vmem>>, vector<16x16x64xf32>,
    %cst_76 = arith.constant 0.000000e+00 : f32
    %78 = vector.broadcast %cst_76 : f32 to vector<256x64xf32>
    %c0_77 = arith.constant 0 : index
    %c0_78 = arith.constant 0 : index
    %c0_79 = arith.constant 0 : index
    %79 = vector.load %arg10[%c0_77, %c0_78, %c0_79] : memref<18x18x64xf32, #tpu.memory_space<vmem>>, vector<16x16x64xf32>
    %80 = vector.shape_cast %79 : vector<16x16x64xf32> to vector<256x64xf32>
    %c0_80 = arith.constant 0 : index
    %c0_81 = arith.constant 0 : index
    %81 = vector.load %arg6[%c0_80, %c0_81] : memref<576x64xf32, #tpu.memory_space<vmem>>, vector<64x64xf32>
    %cst_82 = arith.constant dense<0.000000e+00> : vector<256x64xf32>
    %82 = tpu.matmul %80, %81, %cst_82 {dimension_numbers = #tpu.dot_dimension_numbers<[1], [0], [0], [1], [0, 0, 1, 1], [], []>} : vector<256x64xf32>, vector<64x64xf32>, vector<256x64xf32> -> vector<256x64xf32>
    %83 = arith.addf %78, %82 : vector<256x64xf32>
    %c0_83 = arith.constant 0 : index
    %c1_84 = arith.constant 1 : index
    %c0_85 = arith.constant 0 : index
    %84 = vector.load %arg10[%c0_83, %c1_84, %c0_85] : memref<18x18x64xf32, #tpu.memory_space<vmem>>, vector<16x16x64xf32>
    %85 = vector.shape_cast %84 : vector<16x16x64xf32> to vector<256x64xf32>
    %c64_86 = arith.constant 64 : index
    %c0_87 = arith.constant 0 : index
    %86 = vector.load %arg6[%c64_86, %c0_87] : memref<576x64xf32, #tpu.memory_space<vmem>>, vector<64x64xf32>
    %cst_88 = arith.constant dense<0.000000e+00> : vector<256x64xf32>
    %87 = tpu.matmul %85, %86, %cst_88 {dimension_numbers = #tpu.dot_dimension_numbers<[1], [0], [0], [1], [0, 0, 1, 1], [], []>} : vector<256x64xf32>, vector<64x64xf32>, vector<256x64xf32> -> vector<256x64xf32>
    %88 = arith.addf %83, %87 : vector<256x64xf32>
    %c0_89 = arith.constant 0 : index
    %c2_90 = arith.constant 2 : index
    %c0_91 = arith.constant 0 : index
    %89 = vector.load %arg10[%c0_89, %c2_90, %c0_91] : memref<18x18x64xf32, #tpu.memory_space<vmem>>, vector<16x16x64xf32>
    %90 = vector.shape_cast %89 : vector<16x16x64xf32> to vector<256x64xf32>
    %c128_92 = arith.constant 128 : index
    %c0_93 = arith.constant 0 : index
    %91 = vector.load %arg6[%c128_92, %c0_93] : memref<576x64xf32, #tpu.memory_space<vmem>>, vector<64x64xf32>
    %cst_94 = arith.constant dense<0.000000e+00> : vector<256x64xf32>
    %92 = tpu.matmul %90, %91, %cst_94 {dimension_numbers = #tpu.dot_dimension_numbers<[1], [0], [0], [1], [0, 0, 1, 1], [], []>} : vector<256x64xf32>, vector<64x64xf32>, vector<256x64xf32> -> vector<256x64xf32>
    %93 = arith.addf %88, %92 : vector<256x64xf32>
    %c1_95 = arith.constant 1 : index
    %c0_96 = arith.constant 0 : index
    %c0_97 = arith.constant 0 : index
    %94 = vector.load %arg10[%c1_95, %c0_96, %c0_97] : memref<18x18x64xf32, #tpu.memory_space<vmem>>, vector<16x16x64xf32>
    %95 = vector.shape_cast %94 : vector<16x16x64xf32> to vector<256x64xf32>
    %c192_98 = arith.constant 192 : index
    %c0_99 = arith.constant 0 : index
    %96 = vector.load %arg6[%c192_98, %c0_99] : memref<576x64xf32, #tpu.memory_space<vmem>>, vector<64x64xf32>
    %cst_100 = arith.constant dense<0.000000e+00> : vector<256x64xf32>
    %97 = tpu.matmul %95, %96, %cst_100 {dimension_numbers = #tpu.dot_dimension_numbers<[1], [0], [0], [1], [0, 0, 1, 1], [], []>} : vector<256x64xf32>, vector<64x64xf32>, vector<256x64xf32> -> vector<256x64xf32>
    %98 = arith.addf %93, %97 : vector<256x64xf32>
    %c1_101 = arith.constant 1 : index
    %c1_102 = arith.constant 1 : index
    %c0_103 = arith.constant 0 : index
    %99 = vector.load %arg10[%c1_101, %c1_102, %c0_103] : memref<18x18x64xf32, #tpu.memory_space<vmem>>, vector<16x16x64xf32>
    %100 = vector.shape_cast %99 : vector<16x16x64xf32> to vector<256x64xf32>
    %c256_104 = arith.constant 256 : index
    %c0_105 = arith.constant 0 : index
    %101 = vector.load %arg6[%c256_104, %c0_105] : memref<576x64xf32, #tpu.memory_space<vmem>>, vector<64x64xf32>
    %cst_106 = arith.constant dense<0.000000e+00> : vector<256x64xf32>
    %102 = tpu.matmul %100, %101, %cst_106 {dimension_numbers = #tpu.dot_dimension_numbers<[1], [0], [0], [1], [0, 0, 1, 1], [], []>} : vector<256x64xf32>, vector<64x64xf32>, vector<256x64xf32> -> vector<256x64xf32>
    %103 = arith.addf %98, %102 : vector<256x64xf32>
    %c1_107 = arith.constant 1 : index
    %c2_108 = arith.constant 2 : index
    %c0_109 = arith.constant 0 : index
    %104 = vector.load %arg10[%c1_107, %c2_108, %c0_109] : memref<18x18x64xf32, #tpu.memory_space<vmem>>, vector<16x16x64xf32>
    %105 = vector.shape_cast %104 : vector<16x16x64xf32> to vector<256x64xf32>
    %c320_110 = arith.constant 320 : index
    %c0_111 = arith.constant 0 : index
    %106 = vector.load %arg6[%c320_110, %c0_111] : memref<576x64xf32, #tpu.memory_space<vmem>>, vector<64x64xf32>
    %cst_112 = arith.constant dense<0.000000e+00> : vector<256x64xf32>
    %107 = tpu.matmul %105, %106, %cst_112 {dimension_numbers = #tpu.dot_dimension_numbers<[1], [0], [0], [1], [0, 0, 1, 1], [], []>} : vector<256x64xf32>, vector<64x64xf32>, vector<256x64xf32> -> vector<256x64xf32>
    %108 = arith.addf %103, %107 : vector<256x64xf32>
    %c2_113 = arith.constant 2 : index
    %c0_114 = arith.constant 0 : index
    %c0_115 = arith.constant 0 : index
    %109 = vector.load %arg10[%c2_113, %c0_114, %c0_115] : memref<18x18x64xf32, #tpu.memory_space<vmem>>, vector<16x16x64xf32>
    %110 = vector.shape_cast %109 : vector<16x16x64xf32> to vector<256x64xf32>
    %c384_116 = arith.constant 384 : index
    %c0_117 = arith.constant 0 : index
    %111 = vector.load %arg6[%c384_116, %c0_117] : memref<576x64xf32, #tpu.memory_space<vmem>>, vector<64x64xf32>
    %cst_118 = arith.constant dense<0.000000e+00> : vector<256x64xf32>
    %112 = tpu.matmul %110, %111, %cst_118 {dimension_numbers = #tpu.dot_dimension_numbers<[1], [0], [0], [1], [0, 0, 1, 1], [], []>} : vector<256x64xf32>, vector<64x64xf32>, vector<256x64xf32> -> vector<256x64xf32>
    %113 = arith.addf %108, %112 : vector<256x64xf32>
    %c2_119 = arith.constant 2 : index
    %c1_120 = arith.constant 1 : index
    %c0_121 = arith.constant 0 : index
    %114 = vector.load %arg10[%c2_119, %c1_120, %c0_121] : memref<18x18x64xf32, #tpu.memory_space<vmem>>, vector<16x16x64xf32>
    %115 = vector.shape_cast %114 : vector<16x16x64xf32> to vector<256x64xf32>
    %c448_122 = arith.constant 448 : index
    %c0_123 = arith.constant 0 : index
    %116 = vector.load %arg6[%c448_122, %c0_123] : memref<576x64xf32, #tpu.memory_space<vmem>>, vector<64x64xf32>
    %cst_124 = arith.constant dense<0.000000e+00> : vector<256x64xf32>
    %117 = tpu.matmul %115, %116, %cst_124 {dimension_numbers = #tpu.dot_dimension_numbers<[1], [0], [0], [1], [0, 0, 1, 1], [], []>} : vector<256x64xf32>, vector<64x64xf32>, vector<256x64xf32> -> vector<256x64xf32>
    %118 = arith.addf %113, %117 : vector<256x64xf32>
    %c2_125 = arith.constant 2 : index
    %c2_126 = arith.constant 2 : index
    %c0_127 = arith.constant 0 : index
    %119 = vector.load %arg10[%c2_125, %c2_126, %c0_127] : memref<18x18x64xf32, #tpu.memory_space<vmem>>, vector<16x16x64xf32>
    %120 = vector.shape_cast %119 : vector<16x16x64xf32> to vector<256x64xf32>
    %c512_128 = arith.constant 512 : index
    %c0_129 = arith.constant 0 : index
    %121 = vector.load %arg6[%c512_128, %c0_129] : memref<576x64xf32, #tpu.memory_space<vmem>>, vector<64x64xf32>
    %cst_130 = arith.constant dense<0.000000e+00> : vector<256x64xf32>
    %122 = tpu.matmul %120, %121, %cst_130 {dimension_numbers = #tpu.dot_dimension_numbers<[1], [0], [0], [1], [0, 0, 1, 1], [], []>} : vector<256x64xf32>, vector<64x64xf32>, vector<256x64xf32> -> vector<256x64xf32>
    %123 = arith.addf %118, %122 : vector<256x64xf32>
    %c0_131 = arith.constant 0 : index
    %c0_132 = arith.constant 0 : index
    %124 = vector.load %arg7[%c0_131, %c0_132] : memref<1x64xf32, #tpu.memory_space<vmem>>, vector<1x64xf32>
    %125 = vector.broadcast %124 : vector<1x64xf32> to vector<256x64xf32>
    %126 = arith.addf %123, %125 : vector<256x64xf32>
    %c2_133 = arith.constant 2 : index
    %127 = memref.load %arg8[%c2_133] : memref<3xf32, #tpu.memory_space<smem>>
    %cst_134 = arith.constant 0.000000e+00 : f32
    %128 = vector.broadcast %cst_134 : f32 to vector<256x64xf32>
    %129 = arith.cmpf ogt, %126, %128 : vector<256x64xf32>
    %130 = vector.broadcast %127 : f32 to vector<256x64xf32>
    %131 = arith.mulf %130, %126 : vector<256x64xf32>
    %132 = arith.select %129, %126, %131 : vector<256x64xi1>, vector<256x64xf32>
    %c0_135 = arith.constant 0 : index
    %c0_136 = arith.constant 0 : index
    %c0_137 = arith.constant 0 : index
    %133 = vector.load %arg9[%c0_135, %c0_136, %c0_137] : memref<1x256x64xf32, #tpu.memory_space<vmem>>, vector<1x256x64xf32>
    %134 = vector.shape_cast %133 : vector<1x256x64xf32> to vector<256x64xf32>
    %135 = vector.shape_cast %132 : vector<256x64xf32> to vector<1x256x64xf32>
    tpu.vector_store %arg9[%c0_135, %c0_136, %c0_137], %135 {strides = array<i32>} : memref<1x256x64xf32, #tpu.memory_space<vmem>>, vector<1x256x64xf32>,
    return
  }
  func.func @transform_0(%arg0: i32) -> (i32, i32, i32) {
    %c0_i32 = arith.constant 0 : i32
    %c0_i32_0 = arith.constant 0 : i32
    %c0_i32_1 = arith.constant 0 : i32
    return %arg0, %c0_i32, %c0_i32_0 : i32, i32, i32
  }
  func.func @transform_1(%arg0: i32) -> (i32, i32) {
    %c0_i32 = arith.constant 0 : i32
    %c0_i32_0 = arith.constant 0 : i32
    %c0_i32_1 = arith.constant 0 : i32
    return %c0_i32, %c0_i32_0 : i32, i32
  }
  func.func @transform_2(%arg0: i32) -> (i32, i32) {
    %c0_i32 = arith.constant 0 : i32
    %c0_i32_0 = arith.constant 0 : i32
    %c0_i32_1 = arith.constant 0 : i32
    return %c0_i32, %c0_i32_0 : i32, i32
  }
  func.func @transform_3(%arg0: i32) -> (i32, i32) {
    %c0_i32 = arith.constant 0 : i32
    %c0_i32_0 = arith.constant 0 : i32
    %c0_i32_1 = arith.constant 0 : i32
    return %c0_i32, %c0_i32_0 : i32, i32
  }
  func.func @transform_4(%arg0: i32) -> (i32, i32) {
    %c0_i32 = arith.constant 0 : i32
    %c0_i32_0 = arith.constant 0 : i32
    %c0_i32_1 = arith.constant 0 : i32
    return %c0_i32, %c0_i32_0 : i32, i32
  }
  func.func @transform_5(%arg0: i32) -> (i32, i32) {
    %c0_i32 = arith.constant 0 : i32
    %c0_i32_0 = arith.constant 0 : i32
    %c0_i32_1 = arith.constant 0 : i32
    return %c0_i32, %c0_i32_0 : i32, i32
  }
  func.func @transform_6(%arg0: i32) -> (i32, i32) {
    %c0_i32 = arith.constant 0 : i32
    %c0_i32_0 = arith.constant 0 : i32
    %c0_i32_1 = arith.constant 0 : i32
    return %c0_i32, %c0_i32_0 : i32, i32
  }
  func.func @transform_7(%arg0: i32) -> i32 {
    %c0_i32 = arith.constant 0 : i32
    %c0_i32_0 = arith.constant 0 : i32
    return %c0_i32 : i32
  }
  func.func @transform_8(%arg0: i32) -> (i32, i32, i32) {
    %c0_i32 = arith.constant 0 : i32
    %c0_i32_0 = arith.constant 0 : i32
    %c0_i32_1 = arith.constant 0 : i32
    return %arg0, %c0_i32, %c0_i32_0 : i32, i32, i32
  }
}

</mosaic_0001>

<bundles_post_ra>
// kernel: fe_forward.1
= control target key start
LH: loop header
LB: loop body
LE: loop exit
PB: predicated region body
PF: predicated region fallthrough
CT: control target
= control target key end

     0   :  { %13 = vsyncpa [#allocation5], 0  ;;  %s14336_s0 = inlined_call_operand.vmem [shape: f32[2,256,27], index: 0, kind: input, shape index: {}]   ;;  %s14337_s1 = inlined_call_operand.vmem [shape: f32[27,64], index: 1, kind: input, shape index: {}]   ;;  %s14338_s2 = inlined_call_operand.vmem [shape: f32[1,64], index: 2, kind: input, shape index: {}]   ;;  %s14339_s3 = inlined_call_operand.vmem [shape: f32[576,64], index: 3, kind: input, shape index: {}]   ;;  %s14340_s4 = inlined_call_operand.vmem [shape: f32[1,64], index: 4, kind: input, shape index: {}]   ;;  %s14341_s5 = inlined_call_operand.vmem [shape: f32[576,64], index: 5, kind: input, shape index: {}]   ;;  %s14342_s6 = inlined_call_operand.vmem [shape: f32[1,64], index: 6, kind: input, shape index: {}]   ;;  %s14343_s7 = inlined_call_operand.vmem [shape: f32[3], index: 7, kind: input, shape index: {}]   ;;  %s14344_s8 = inlined_call_operand.hbm [shape: f32[2,256,64], index: 8, kind: output, shape index: {}]  }
   0x1   :  { %14 = vsyncpa [#allocation4], 0 }
   0x2   :  { %16 = vsyncpa [#allocation4 + $0x1], 0  ;;  %s11833_s27 = smov 0   ;;  %s11835_s28 = smov 0  }
   0x3   :  { %s11837_s29 = smov 0   ;;  %s11839_s30 = smov 0  }
   0x4 LB: > { %s11854_s9 = sadd.s32 4294967295, %s11780_s30   ;;  %s8237_s10 = sadd.s32 4294967294, %s11780_s30   ;;  %s11780_s30 = sphi %s11839_s30, %s14619_s30   ;;  %s11776_s29 = sphi %s11837_s29, %s14618_s29   ;;  %s11772_s28 = sphi %s11835_s28, %s14617_s28   ;;  %s11768_s27 = sphi %s11833_s27, %s14616_s27  }
   0x5   : > { %s11858_s11 = sadd.s32 1, %s11780_s30   ;;  %s202_s12 = sadd.s32 1, %s11776_s29 }
   0x6   : > { %s199_s13 = ssub.s32 %s11780_s30, %s11858_s11  ;;  %p212_p0 = scmp.ne.s32.totalorder %s11776_s29, %s11772_s28 }
   0x7   : > { %p200_p1 = scmp.eq.s32.totalorder %s199_s13, 0  ;;  %p213_p2 = scmp.eq.s32.totalorder %s11854_s9, 1 }
   0x8   : > { %p218_p3 = scmp.ne.s32.totalorder %s11772_s28, %s11768_s27  ;;  %p219_p4 = scmp.eq.s32.totalorder %s8237_s10, 1 }
   0x9   : > { %s11869_s14 = scalar_select %p200_p1, %s11776_s29, %s202_s12  }
   0xa   : > { %p11871_p5 = por %p213_p2, %p212_p0  ;;  %p11875_p6 = por %p219_p4, %p218_p3 }
   0xb   : > { %p8238_p7 = scmp.ge.s32.totalorder %s11780_s30, 1  ;;  %p226_p8 = scmp.lt.s32.totalorder %s11780_s30, 3 }
   0xc   : > { %p11659_p9 = scmp.eq.s32.totalorder %s11854_s9, 0  ;;  %s257_s20 = sshll.u32 %s14343_s7, 4  ;;  %s258_s20 = int_to_ptr.vmem [resolvable:$true] %s257_s20 }
   0xd   : > { %p11882_p10 = pnand %p8238_p7, %p226_p8  ;;  %s11699_s21 = scalar_lea.vmem %s258_s20, 16 }
   0xe   : > { %p11700_p13 = scmp.ne.s32.totalorder %s258_s20, %s11699_s21  ;;  %p11707_p3 = scmp.lt.s32.totalorder %s258_s20, %s258_s20 }
   0xf   : > { %p11651_p11 = pneg %p11882_p10  ;;  %p11708_p4 = scmp.lt.s32.totalorder %s11699_s21, %s11699_s21 }
  0x11   : > { %p11652_p12 = pnand %p11659_p9, %p11651_p11  ;;  %p11709_p7 = por %p11708_p4, %p11707_p3 }
  0x13   : > { %p11701_p0 = pneg %p11652_p12 }
  0x15   : > { %p11702_p1 = pnand %p11701_p0, %p11700_p13 }
  0x17   : > { %p11703_p2 = pneg %p11702_p1 }
  0x19   : > { %p11710_p8 = pnand %p11709_p7, %p11703_p2 }
  0x1b   : > { %11713 = shalt.err (!%p11710_p8)
}
  0x1c   : > { %s11782_s22 = smov [#allocation3]   ;;  %278 = sbr.rel (%p11882_p10) target bundleno = 1812 (0x714), region = 52 }
  0x1d   : > { %11654 = dma.vmem_to_smem (!%p11652_p12), %s258_s20, 16, %s11782_s22, [#allocation5]  }
  0x23   : > { %11759 = dma.done.wait (%p11659_p9), [#allocation5], 16  }
  0x24   : > { %11761 = vsyncadd (%p11659_p9), [#allocation5], 4294967280 }
  0x25   : > { %284 = sfence }
  0x26   : > { %v396_v0 = vld [vmem:[%s14337_s1] sm:$0xff]  ;;  %v397_v1 = vld [vmem:[%s14337_s1 + $0x8] sm:$0xff]  ;;  %v398_v2 = vld [vmem:[%s14337_s1 + $0x10] sm:$0xff]  ;;  %vm504_vm0 = vcmask 1042432   ;;  %p313_p10 = scmp.lt.s32.totalorder %s11854_s9, 1  ;;  %vm11783_vm1 = vmmov 1  }
  0x27   : > { %v10831_v3 = vpack.c.bf16 %v397_v1, %v396_v0  ;;  %v399_v4 = vld [vmem:[%s14337_s1 + $0x18] sm:$0x7]  ;;  %vm11912_vm2 = vmpackc.low %vm504_vm0, %vm11783_vm1  ;;  %v936_v7 = vld [vmem:[%s14339_s3 + $0x40] sm:$0xff]  ;;  %vm407_vm3 = vcmask 220160   ;;  %vm318_vm4 = vcmask 523264   ;;  %v11784_v47 = vmov 0.0  }
  0x28   : > { %v10835_v5 = vpack.c.bf16 %v399_v4, %v398_v2  ;;  %s314_s18 = scalar_select %p313_p10, %s11854_s9, 1  ;;  %v937_v8 = vld [vmem:[%s14339_s3 + $0x48] sm:$0xff]  ;;  %v938_v12 = vld [vmem:[%s14339_s3 + $0x50] sm:$0xff]  ;;  %v939_v13 = vld [vmem:[%s14339_s3 + $0x58] sm:$0xff]  ;;  %319 = vst.msk [vmem:[#allocation2] sm:$0xff] %vm318_vm4, %v11784_v47  ;;  %vm321_vm5 = vcmask 517120  }
  0x29   : > { %10832 = vmatprep.subr.bf16.mxu0 %v10831_v3  ;;  %11129 = vmatprep.subr.bf16.mxu1 %v10831_v3  ;;  %v10841_v9 = vpack.c.bf16 %v937_v8, %v936_v7  ;;  %v10845_v17 = vpack.c.bf16 %v939_v13, %v938_v12  ;;  %v940_v18 = vld [vmem:[%s14339_s3 + $0x60] sm:$0xff]  ;;  %v941_v21 = vld [vmem:[%s14339_s3 + $0x68] sm:$0xff]  ;;  %320 = vst.msk [vmem:[#allocation2 + $0x8] sm:$0xff] %vm318_vm4, %v11784_v47  ;;  %324 = vst.msk [vmem:[#allocation2 + $0x198] sm:$0xff] %vm318_vm4, %v11784_v47  ;;  %vm327_vm6 = vcmask 516096   ;;  %s733_s20 = sld [smem:[#allocation3]] }
  0x2a   : > { %10834 = vmatpush3.bf16.msra.mxu0 %v10831_v3  ;;  %s8865_s23 = sshll.u32 %s314_s18, 8  ;;  %11131 = vmatpush3.bf16.msra.mxu1 %v10831_v3  ;;  %v10849_v25 = vpack.c.bf16 %v941_v21, %v940_v18  ;;  %325 = vst.msk [vmem:[#allocation2 + $0x1a0] sm:$0xff] %vm318_vm4, %v11784_v47  ;;  %v942_v49 = vld [vmem:[%s14339_s3 + $0x70] sm:$0xff]  ;;  %v943_v50 = vld [vmem:[%s14339_s3 + $0x78] sm:$0xff]  ;;  %v896_v54 = vld [vmem:[%s14339_s3] sm:$0xff]  ;;  %s8569_s24 = sld [smem:[#allocation3 + $0x1]] }
  0x2b   : > { %10837 = vmatprep.subr.msk.bf16.mxu0 %vm11912_vm2, %v10835_v5  ;;  %s11928_s26 = scalar_lea.vmem %s14336_s0, %s8865_s23  ;;  %11130 = vmatprep.subr.msk.bf16.mxu1 %vm11912_vm2, %v10835_v5  ;;  %322 = vst.msk [vmem:[#allocation2 + $0x10] sm:$0x3] %vm321_vm5, %v11784_v47  ;;  %326 = vst.msk [vmem:[#allocation2 + $0x1a8] sm:$0x3] %vm321_vm5, %v11784_v47  ;;  %v10853_v51 = vpack.c.bf16 %v943_v50, %v942_v49  ;;  %v897_v55 = vld [vmem:[%s14339_s3 + $0x8] sm:$0xff]  ;;  %v898_v57 = vld [vmem:[%s14339_s3 + $0x10] sm:$0xff] }
  0x2c   : > { %v364_v10 = vld [vmem:[%s11928_s26] sm:$0xff]  ;;  %v365_v11 = vld [vmem:[%s11928_s26 + $0x8] sm:$0xff]  ;;  %v366_v14 = vld [vmem:[%s11928_s26 + $0x10] sm:$0xff]  ;;  %328 = vst.msk [vmem:[#allocation2] sm:$0x1] %vm327_vm6, %v11784_v47  ;;  %v10857_v56 = vpack.c.bf16 %v897_v55, %v896_v54  ;;  %s8859_s18 = sld [smem:[#allocation3 + $0x2]] }
  0x2d   : > { %9631 = vmatprep.mubr.msk.f32.mxu0 %vm407_vm3, %v364_v10  ;;  %v380_v15 = vld [vmem:[%s11928_s26 + $0x80] sm:$0xff]  ;;  %v381_v16 = vld [vmem:[%s11928_s26 + $0x88] sm:$0xff]  ;;  %v367_v19 = vld [vmem:[%s11928_s26 + $0x18] sm:$0xff]  ;;  %329 = vst.msk [vmem:[#allocation2 + $0x18] sm:$0x1] %vm327_vm6, %v11784_v47  ;;  %s310_s19 = sand.u32 1, %s11772_s28  }
  0x2e   : > { %10840 = vmatpush3.bf16.msk.msra.mxu0 %vm11912_vm2, %v10835_v5  ;;  %11132 = vmatpush3.bf16.msk.msra.mxu1 %vm11912_vm2, %v10835_v5  ;;  %v382_v20 = vld [vmem:[%s11928_s26 + $0x90] sm:$0xff]  ;;  %v368_v22 = vld [vmem:[%s11928_s26 + $0x20] sm:$0xff]  ;;  %v383_v23 = vld [vmem:[%s11928_s26 + $0x98] sm:$0xff]  ;;  %330 = vst.msk [vmem:[#allocation2 + $0x30] sm:$0x1] %vm327_vm6, %v11784_v47  ;;  %s8243_s22 = sshll.u32 %s310_s19, 8 }
  0x2f   : > { %10842 = vmatprep.subr.bf16.mxu1 %v10841_v9  ;;  %9655 = vmatprep.mubr.msk.f32.mxu1 %vm407_vm3, %v380_v15  ;;  %v384_v24 = vld [vmem:[%s11928_s26 + $0xa0] sm:$0xff]  ;;  %v369_v26 = vld [vmem:[%s11928_s26 + $0x28] sm:$0xff]  ;;  %v370_v27 = vld [vmem:[%s11928_s26 + $0x30] sm:$0xff]  ;;  %331 = vst.msk [vmem:[#allocation2 + $0x48] sm:$0x1] %vm327_vm6, %v11784_v47  ;;  %v12098_v7 = vstv %s733_s20  ;;  %s14159_s23 = scalar_lea.vmem [#allocation6], %s8243_s22 }
  0x30   : > { %v385_v28 = vld [vmem:[%s11928_s26 + $0xa8] sm:$0xff]  ;;  %v386_v29 = vld [vmem:[%s11928_s26 + $0xb0] sm:$0xff]  ;;  %v371_v30 = vld [vmem:[%s11928_s26 + $0x38] sm:$0xff]  ;;  %332 = vst.msk [vmem:[#allocation2 + $0x60] sm:$0x1] %vm327_vm6, %v11784_v47  ;;  %s8163_s25 = sshll.u32 %s14159_s23, 4  ;;  %s14287_s25 = int_to_ptr.vmem [resolvable:$true] %s8163_s25 }
  0x31   : > { %9632 = vmatmul.mubr.msk.f32.vlgmr.msra.gmra.mrb[0].mxu0 %vm407_vm3, %v365_v11  ;;  %9656 = vmatmul.mubr.msk.f32.vlgmr.msra.gmra.mrb[0].mxu1 %vm407_vm3, %v381_v16  ;;  %v372_v31 = vld [vmem:[%s11928_s26 + $0x40] sm:$0xff]  ;;  %v387_v32 = vld [vmem:[%s11928_s26 + $0xb8] sm:$0xff]  ;;  %v373_v34 = vld [vmem:[%s11928_s26 + $0x48] sm:$0xff]  ;;  %333 = vst.msk [vmem:[#allocation2 + $0x78] sm:$0x1] %vm327_vm6, %v11784_v47  ;;  %s14295_s12 = scalar_lea.sflag [#allocation4], %s310_s19 }
  0x32   : > { %9634 = vmatprep.mubr.msk.f32.mxu0 %vm407_vm3, %v366_v14  ;;  %9658 = vmatprep.mubr.msk.f32.mxu1 %vm407_vm3, %v382_v20  ;;  %v388_v33 = vld [vmem:[%s11928_s26 + $0xc0] sm:$0xff]  ;;  %v374_v35 = vld [vmem:[%s11928_s26 + $0x50] sm:$0xff]  ;;  %v389_v36 = vld [vmem:[%s11928_s26 + $0xc8] sm:$0xff]  ;;  %334 = vst.msk [vmem:[#allocation2 + $0x90] sm:$0x1] %vm327_vm6, %v11784_v47  ;;  %s11714_s13 = scalar_lea.vmem %s14287_s25, 4096 }
  0x33   : > { %10844 = vmatpush3.bf16.msra.mxu1 %v10841_v9  ;;  %v390_v37 = vld [vmem:[%s11928_s26 + $0xd0] sm:$0xff]  ;;  %v375_v38 = vld [vmem:[%s11928_s26 + $0x58] sm:$0xff]  ;;  %v376_v39 = vld [vmem:[%s11928_s26 + $0x60] sm:$0xff]  ;;  %335 = vst.msk [vmem:[#allocation2 + $0xa8] sm:$0x1] %vm327_vm6, %v11784_v47  ;;  %p11715_p9 = scmp.ne.s32.totalorder %s14287_s25, %s11714_s13  ;;  %s11785_s17 = smov [#allocation6]  }
  0x34   : > { %10846 = vmatprep.subr.bf16.mxu1 %v10845_v17  ;;  %v391_v40 = vld [vmem:[%s11928_s26 + $0xd8] sm:$0xff]  ;;  %v392_v41 = vld [vmem:[%s11928_s26 + $0xe0] sm:$0xff]  ;;  %v377_v42 = vld [vmem:[%s11928_s26 + $0x68] sm:$0xff]  ;;  %336 = vst.msk [vmem:[#allocation2 + $0xc0] sm:$0x1] %vm327_vm6, %v11784_v47 }
  0x35   : > { %9635 = vmatmul.mubr.msk.f32.gmra.mrb[2].mxu0 %vm407_vm3, %v367_v19  ;;  %9659 = vmatmul.mubr.msk.f32.gmra.mrb[2].mxu1 %vm407_vm3, %v383_v23  ;;  %v378_v43 = vld [vmem:[%s11928_s26 + $0x70] sm:$0xff]  ;;  %v393_v44 = vld [vmem:[%s11928_s26 + $0xe8] sm:$0xff]  ;;  %v379_v45 = vld [vmem:[%s11928_s26 + $0x78] sm:$0xff]  ;;  %337 = vst.msk [vmem:[#allocation2 + $0xd8] sm:$0x1] %vm327_vm6, %v11784_v47  ;;  %p11716_p11 = pnand %p11715_p9, %p11871_p5 }
  0x36   : > { %9637 = vmatprep.mubr.msk.f32.mxu0 %vm407_vm3, %v368_v22  ;;  %9661 = vmatprep.mubr.msk.f32.mxu1 %vm407_vm3, %v384_v24  ;;  %v394_v46 = vld [vmem:[%s11928_s26 + $0xf0] sm:$0xff]  ;;  %v395_v48 = vld [vmem:[%s11928_s26 + $0xf8] sm:$0xff]  ;;  %338 = vst.msk [vmem:[#allocation2 + $0xf0] sm:$0x1] %vm327_vm6, %v11784_v47  ;;  %339 = vst.msk [vmem:[#allocation2 + $0x108] sm:$0x1] %vm327_vm6, %v11784_v47 }
  0x37   : > { %10848 = vmatpush3.bf16.msra.mxu1 %v10845_v17  ;;  %340 = vst.msk [vmem:[#allocation2 + $0x120] sm:$0x1] %vm327_vm6, %v11784_v47  ;;  %341 = vst.msk [vmem:[#allocation2 + $0x138] sm:$0x1] %vm327_vm6, %v11784_v47  ;;  %v904_v52 = vld [vmem:[#allocation2 + $0x1] sm:$0xff]  ;;  %v905_v53 = vld [vmem:[#allocation2 + $0x9] sm:$0xff]  ;;  %p11717_p12 = pneg %p11716_p11 }
  0x38   : > { %10850 = vmatprep.subr.bf16.mxu1 %v10849_v25  ;;  %342 = vst.msk [vmem:[#allocation2 + $0x150] sm:$0x1] %vm327_vm6, %v11784_v47  ;;  %343 = vst.msk [vmem:[#allocation2 + $0x168] sm:$0x1] %vm327_vm6, %v11784_v47  ;;  %v899_v58 = vld [vmem:[%s14339_s3 + $0x18] sm:$0xff]  ;;  %v900_v60 = vld [vmem:[%s14339_s3 + $0x20] sm:$0xff] }
  0x39   : > { %9638 = vmatmul.mubr.msk.f32.gmra.mrb[4].mxu0 %vm407_vm3, %v369_v26  ;;  %9662 = vmatmul.mubr.msk.f32.gmra.mrb[4].mxu1 %vm407_vm3, %v385_v28  ;;  %344 = vst.msk [vmem:[#allocation2 + $0x180] sm:$0x1] %vm327_vm6, %v11784_v47  ;;  %345 = vst.msk [vmem:[#allocation2 + $0x198] sm:$0x1] %vm327_vm6, %v11784_v47  ;;  %v10861_v59 = vpack.c.bf16 %v899_v58, %v898_v57  ;;  %v901_v61 = vld [vmem:[%s14339_s3 + $0x28] sm:$0xff]  ;;  %v902_v63 = vld [vmem:[%s14339_s3 + $0x30] sm:$0xff] }
  0x3a   : > { %9640 = vmatprep.mubr.msk.f32.mxu0 %vm407_vm3, %v370_v27  ;;  %9664 = vmatprep.mubr.msk.f32.mxu1 %vm407_vm3, %v386_v29  ;;  %346 = vst.msk [vmem:[#allocation2 + $0x11] sm:$0x1] %vm327_vm6, %v11784_v47  ;;  %347 = vst.msk [vmem:[#allocation2 + $0x29] sm:$0x1] %vm327_vm6, %v11784_v47  ;;  %v10865_v62 = vpack.c.bf16 %v901_v61, %v900_v60  ;;  %v903_v0 = vld [vmem:[%s14339_s3 + $0x38] sm:$0xff]  ;;  %v1618_v2 = vld [vmem:[%s14339_s3 + $0x80] sm:$0xff] }
  0x3b   : > { %10852 = vmatpush3.bf16.msra.mxu1 %v10849_v25  ;;  %348 = vst.msk [vmem:[#allocation2 + $0x41] sm:$0x1] %vm327_vm6, %v11784_v47  ;;  %349 = vst.msk [vmem:[#allocation2 + $0x59] sm:$0x1] %vm327_vm6, %v11784_v47  ;;  %v10869_v1 = vpack.c.bf16 %v903_v0, %v902_v63  ;;  %v1619_v3 = vld [vmem:[%s14339_s3 + $0x88] sm:$0xff] }
  0x3c   : > { %350 = vst.msk [vmem:[#allocation2 + $0x71] sm:$0x1] %vm327_vm6, %v11784_v47  ;;  %351 = vst.msk [vmem:[#allocation2 + $0x89] sm:$0x1] %vm327_vm6, %v11784_v47  ;;  %10854 = vmatprep.subr.bf16.mxu1 %v10853_v51  ;;  %v12090_v4 = vpack.c.bf16 %v1619_v3, %v1618_v2  ;;  %v12096_v5 = vld [vmem:[%s14338_s2] ss:$0 sm:$0xff] }
  0x3d   : > { %9641 = vmatmul.mubr.msk.f32.gmra.mrb[6].mxu0 %vm407_vm3, %v371_v30  ;;  %9665 = vmatmul.mubr.msk.f32.gmra.mrb[6].mxu1 %vm407_vm3, %v387_v32  ;;  %352 = vst.msk [vmem:[#allocation2 + $0xa1] sm:$0x1] %vm327_vm6, %v11784_v47  ;;  %353 = vst.msk [vmem:[#allocation2 + $0xb9] sm:$0x1] %vm327_vm6, %v11784_v47 }
  0x3e   : > { %9643 = vmatprep.mubr.msk.f32.mxu0 %vm407_vm3, %v372_v31  ;;  %9667 = vmatprep.mubr.msk.f32.mxu1 %vm407_vm3, %v388_v33  ;;  %354 = vst.msk [vmem:[#allocation2 + $0xd1] sm:$0x1] %vm327_vm6, %v11784_v47  ;;  %355 = vst.msk [vmem:[#allocation2 + $0xe9] sm:$0x1] %vm327_vm6, %v11784_v47 }
  0x3f   : > { %356 = vst.msk [vmem:[#allocation2 + $0x101] sm:$0x1] %vm327_vm6, %v11784_v47  ;;  %357 = vst.msk [vmem:[#allocation2 + $0x119] sm:$0x1] %vm327_vm6, %v11784_v47  ;;  %10856 = vmatpush3.bf16.msra.mxu1 %v10853_v51 }
  0x40   : > { %358 = vst.msk [vmem:[#allocation2 + $0x131] sm:$0x1] %vm327_vm6, %v11784_v47  ;;  %359 = vst.msk [vmem:[#allocation2 + $0x149] sm:$0x1] %vm327_vm6, %v11784_v47  ;;  %10858 = vmatprep.subr.bf16.mxu1 %v10857_v56 }
  0x41   : > { %9644 = vmatmul.mubr.msk.f32.gmra.mrb[8].mxu0 %vm407_vm3, %v373_v34  ;;  %9668 = vmatmul.mubr.msk.f32.gmra.mrb[8].mxu1 %vm407_vm3, %v389_v36  ;;  %360 = vst.msk [vmem:[#allocation2 + $0x161] sm:$0x1] %vm327_vm6, %v11784_v47  ;;  %361 = vst.msk [vmem:[#allocation2 + $0x179] sm:$0x1] %vm327_vm6, %v11784_v47 }
  0x42   : > { %9646 = vmatprep.mubr.msk.f32.mxu0 %vm407_vm3, %v374_v35  ;;  %9670 = vmatprep.mubr.msk.f32.mxu1 %vm407_vm3, %v390_v37  ;;  %362 = vst.msk [vmem:[#allocation2 + $0x191] sm:$0x1] %vm327_vm6, %v11784_v47  ;;  %363 = vst.msk [vmem:[#allocation2 + $0x1a9] sm:$0x1] %vm327_vm6, %v11784_v47 }
  0x45   : > { %9647 = vmatmul.mubr.msk.f32.gmra.mrb[10].mxu0 %vm407_vm3, %v375_v38  ;;  %9671 = vmatmul.mubr.msk.f32.gmra.mrb[10].mxu1 %vm407_vm3, %v391_v40 }
  0x46   : > { %9649 = vmatprep.mubr.msk.f32.mxu0 %vm407_vm3, %v376_v39  ;;  %9673 = vmatprep.mubr.msk.f32.mxu1 %vm407_vm3, %v392_v41 }
  0x49   : > { %9650 = vmatmul.mubr.msk.f32.gmra.mrb[12].mxu0 %vm407_vm3, %v377_v42  ;;  %9674 = vmatmul.mubr.msk.f32.gmra.mrb[12].mxu1 %vm407_vm3, %v393_v44 }
  0x4a   : > { %9652 = vmatprep.mubr.msk.f32.mxu0 %vm407_vm3, %v378_v43  ;;  %9676 = vmatprep.mubr.msk.f32.mxu1 %vm407_vm3, %v394_v46 }
  0x4d   : > { %9653 = vmatmul.mubr.msk.f32.gmra.mrb[14].mxu0 %vm407_vm3, %v379_v45  ;;  %9677 = vmatmul.mubr.msk.f32.gmra.mrb[14].mxu1 %vm407_vm3, %v395_v48 }
  0x4e   : > { %9695 = vmatprep.mubr.msk.f32.mxu1 %vm318_vm4, %v904_v52 }
  0x51   : > { %9696 = vmatmul.mubr.msk.f32.vlgmr.msra.gmra.mrb[16].mxu1 %vm318_vm4, %v905_v53 }
  0x52   : > { %10860 = vmatpush3.bf16.msra.mxu1 %v10857_v56 }
  0x53   : > { %10862 = vmatprep.subr.bf16.mxu1 %v10861_v59 }
  0x56   : > { %10864 = vmatpush3.bf16.msra.mxu1 %v10861_v59 }
  0x57   : > { %10866 = vmatprep.subr.bf16.mxu1 %v10865_v62 }
  0x5a   : > { %10868 = vmatpush3.bf16.msra.mxu1 %v10865_v62 }
  0x5b   : > { %10870 = vmatprep.subr.bf16.mxu1 %v10869_v1 }
  0x5e   : > { %10872 = vmatpush3.bf16.msra.mxu1 %v10869_v1 }
  0x5f   : > { %10874 = vmatprep.subr.bf16.mxu1 %v12090_v4 }
 0x104   : > { %v9633_v6 = vpop.f32.mrb[0].mxu0  ;;  %v9657_v11 = vpop.f32.mrb[0].mxu1 }
 0x105   : > { %v580_v8 = vadd.f32 %v9633_v6, %v12096_v5  ;;  %v574_v9 = vpop.f32.mrb[1].mxu0  ;;  %v660_v13 = vadd.f32 %v9657_v11, %v12096_v5  ;;  %v654_v14 = vpop.f32.mrb[1].mxu1 }
 0x106   : > { %v575_v10 = vadd.f32 %v12096_v5, %v574_v9  ;;  %v655_v17 = vadd.f32 %v12096_v5, %v654_v14 }
 0x107   : > { %vm735_vm7 = vcmp.gt.f32.partialorder %v580_v8, 0.0  ;;  %v768_v12 = vmul.f32 %v12098_v7, %v580_v8  ;;  %vm751_vm9 = vcmp.gt.f32.partialorder %v660_v13, 0.0  ;;  %v784_v21 = vmul.f32 %v12098_v7, %v660_v13 }
 0x108   : > { %vm734_vm8 = vcmp.gt.f32.partialorder %v575_v10, 0.0  ;;  %v767_v15 = vmul.f32 %v12098_v7, %v575_v10  ;;  %v9636_v16 = vpop.f32.mrb[2].mxu0  ;;  %vm750_vm10 = vcmp.gt.f32.partialorder %v655_v17, 0.0  ;;  %v783_v24 = vmul.f32 %v12098_v7, %v655_v17  ;;  %v9660_v25 = vpop.f32.mrb[2].mxu1 }
 0x109   : > { %v800_v18 = vsel %vm735_vm7, %v580_v8, %v768_v12  ;;  %v590_v19 = vadd.f32 %v9636_v16, %v12096_v5  ;;  %v584_v20 = vpop.f32.mrb[3].mxu0  ;;  %v816_v27 = vsel %vm751_vm9, %v660_v13, %v784_v21  ;;  %v670_v28 = vadd.f32 %v9660_v25, %v12096_v5  ;;  %v664_v29 = vpop.f32.mrb[3].mxu1 }
 0x10a   : > { %833 = vst.msk [vmem:[#allocation2 + $0x21] sm:$0xff] %vm318_vm4, %v800_v18  ;;  %v799_v22 = vsel %vm734_vm8, %v575_v10, %v767_v15  ;;  %v585_v23 = vadd.f32 %v12096_v5, %v584_v20  ;;  %849 = vst.msk [vmem:[#allocation2 + $0xe1] sm:$0xff] %vm318_vm4, %v816_v27  ;;  %v815_v32 = vsel %vm750_vm10, %v655_v17, %v783_v24 }
 0x10b   : > { %832 = vst.msk [vmem:[#allocation2 + $0x19] sm:$0xff] %vm318_vm4, %v799_v22  ;;  %vm737_vm11 = vcmp.gt.f32.partialorder %v590_v19, 0.0  ;;  %v770_v26 = vmul.f32 %v12098_v7, %v590_v19  ;;  %v665_v33 = vadd.f32 %v12096_v5, %v664_v29  ;;  %848 = vst.msk [vmem:[#allocation2 + $0xd9] sm:$0xff] %vm318_vm4, %v815_v32  ;;  %vm753_vm13 = vcmp.gt.f32.partialorder %v670_v28, 0.0 }
 0x10c   : > { %vm736_vm12 = vcmp.gt.f32.partialorder %v585_v23, 0.0  ;;  %v769_v30 = vmul.f32 %v12098_v7, %v585_v23  ;;  %v9639_v31 = vpop.f32.mrb[4].mxu0  ;;  %v786_v37 = vmul.f32 %v12098_v7, %v670_v28  ;;  %v9663_v41 = vpop.f32.mrb[4].mxu1 }
 0x10d   : > { %v802_v34 = vsel %vm737_vm11, %v590_v19, %v770_v26  ;;  %v600_v35 = vadd.f32 %v9639_v31, %v12096_v5  ;;  %v594_v36 = vpop.f32.mrb[5].mxu0  ;;  %vm752_vm14 = vcmp.gt.f32.partialorder %v665_v33, 0.0  ;;  %v785_v40 = vmul.f32 %v12098_v7, %v665_v33  ;;  %v674_v45 = vpop.f32.mrb[5].mxu1 }
 0x10e   : > { %835 = vst.msk [vmem:[#allocation2 + $0x39] sm:$0xff] %vm318_vm4, %v802_v34  ;;  %v801_v38 = vsel %vm736_vm12, %v585_v23, %v769_v30  ;;  %v595_v39 = vadd.f32 %v12096_v5, %v594_v36  ;;  %v818_v43 = vsel %vm753_vm13, %v670_v28, %v786_v37  ;;  %v680_v44 = vadd.f32 %v9663_v41, %v12096_v5 }
 0x10f   : > { %834 = vst.msk [vmem:[#allocation2 + $0x31] sm:$0xff] %vm318_vm4, %v801_v38  ;;  %vm739_vm15 = vcmp.gt.f32.partialorder %v600_v35, 0.0  ;;  %v772_v42 = vmul.f32 %v12098_v7, %v600_v35  ;;  %851 = vst.msk [vmem:[#allocation2 + $0xf9] sm:$0xff] %vm318_vm4, %v818_v43  ;;  %v817_v48 = vsel %vm752_vm14, %v665_v33, %v785_v40  ;;  %v675_v49 = vadd.f32 %v12096_v5, %v674_v45 }
 0x110   : > { %vm738_vm0 = vcmp.gt.f32.partialorder %v595_v39, 0.0  ;;  %v771_v46 = vmul.f32 %v12098_v7, %v595_v39  ;;  %v9642_v47 = vpop.f32.mrb[6].mxu0  ;;  %850 = vst.msk [vmem:[#allocation2 + $0xf1] sm:$0xff] %vm318_vm4, %v817_v48  ;;  %vm755_vm1 = vcmp.gt.f32.partialorder %v680_v44, 0.0  ;;  %v788_v53 = vmul.f32 %v12098_v7, %v680_v44  ;;  %v9666_v58 = vpop.f32.mrb[6].mxu1 }
 0x111   : > { %v804_v50 = vsel %vm739_vm15, %v600_v35, %v772_v42  ;;  %v610_v51 = vadd.f32 %v9642_v47, %v12096_v5  ;;  %v604_v52 = vpop.f32.mrb[7].mxu0  ;;  %vm754_vm2 = vcmp.gt.f32.partialorder %v675_v49, 0.0  ;;  %v787_v57 = vmul.f32 %v12098_v7, %v675_v49  ;;  %v12141_v60 = vld [vmem:[#allocation2 + $0x21] sm:$0xff]  ;;  %v684_v63 = vpop.f32.mrb[7].mxu1 }
 0x112   : > { %837 = vst.msk [vmem:[#allocation2 + $0x51] sm:$0xff] %vm318_vm4, %v804_v50  ;;  %v803_v54 = vsel %vm738_vm0, %v595_v39, %v771_v46  ;;  %v605_v55 = vadd.f32 %v12096_v5, %v604_v52  ;;  %v12134_v56 = vld [vmem:[#allocation2 + $0x19] sm:$0xff]  ;;  %v820_v61 = vsel %vm755_vm1, %v680_v44, %v788_v53  ;;  %v690_v62 = vadd.f32 %v9666_v58, %v12096_v5 }
 0x113   : > { %836 = vst.msk [vmem:[#allocation2 + $0x49] sm:$0xff] %vm318_vm4, %v803_v54  ;;  %vm741_vm3 = vcmp.gt.f32.partialorder %v610_v51, 0.0  ;;  %v774_v59 = vmul.f32 %v12098_v7, %v610_v51  ;;  %9698 = vmatprep.mubr.msk.f32.mxu1 %vm318_vm4, %v12134_v56  ;;  %853 = vst.msk [vmem:[#allocation2 + $0x111] sm:$0xff] %vm318_vm4, %v820_v61  ;;  %v819_v2 = vsel %vm754_vm2, %v675_v49, %v787_v57 }
 0x114   : > { %vm740_vm5 = vcmp.gt.f32.partialorder %v605_v55, 0.0  ;;  %v773_v0 = vmul.f32 %v12098_v7, %v605_v55  ;;  %v9645_v1 = vpop.f32.mrb[8].mxu0  ;;  %9699 = vmatmul.mubr.msk.f32.gmra.mrb[18].mxu1 %vm318_vm4, %v12141_v60  ;;  %v685_v3 = vadd.f32 %v12096_v5, %v684_v63  ;;  %852 = vst.msk [vmem:[#allocation2 + $0x109] sm:$0xff] %vm318_vm4, %v819_v2  ;;  %vm757_vm6 = vcmp.gt.f32.partialorder %v690_v62, 0.0  ;;  %v9669_v15 = vpop.f32.mrb[8].mxu1 }
 0x115   : > { %v806_v6 = vsel %vm741_vm3, %v610_v51, %v774_v59  ;;  %v620_v8 = vadd.f32 %v9645_v1, %v12096_v5  ;;  %v614_v9 = vpop.f32.mrb[9].mxu0  ;;  %v790_v10 = vmul.f32 %v12098_v7, %v690_v62  ;;  %v12162_v17 = vld [vmem:[#allocation2 + $0x39] sm:$0xff]  ;;  %v700_v19 = vadd.f32 %v9669_v15, %v12096_v5  ;;  %v694_v20 = vpop.f32.mrb[9].mxu1 }
 0x116   : > { %839 = vst.msk [vmem:[#allocation2 + $0x69] sm:$0xff] %vm318_vm4, %v806_v6  ;;  %v805_v11 = vsel %vm740_vm5, %v605_v55, %v773_v0  ;;  %v615_v12 = vadd.f32 %v12096_v5, %v614_v9  ;;  %v12155_v13 = vld [vmem:[#allocation2 + $0x31] sm:$0xff]  ;;  %vm756_vm7 = vcmp.gt.f32.partialorder %v685_v3, 0.0  ;;  %v789_v14 = vmul.f32 %v12098_v7, %v685_v3 }
 0x117   : > { %838 = vst.msk [vmem:[#allocation2 + $0x61] sm:$0xff] %vm318_vm4, %v805_v11  ;;  %vm743_vm8 = vcmp.gt.f32.partialorder %v620_v8, 0.0  ;;  %v776_v16 = vmul.f32 %v12098_v7, %v620_v8  ;;  %9701 = vmatprep.mubr.msk.f32.mxu1 %vm318_vm4, %v12155_v13  ;;  %v822_v18 = vsel %vm757_vm6, %v690_v62, %v790_v10  ;;  %v695_v24 = vadd.f32 %v12096_v5, %v694_v20 }
 0x118   : > { %vm742_vm9 = vcmp.gt.f32.partialorder %v615_v12, 0.0  ;;  %v775_v21 = vmul.f32 %v12098_v7, %v615_v12  ;;  %v9648_v22 = vpop.f32.mrb[10].mxu0  ;;  %9702 = vmatmul.mubr.msk.f32.gmra.mrb[20].mxu1 %vm318_vm4, %v12162_v17  ;;  %855 = vst.msk [vmem:[#allocation2 + $0x129] sm:$0xff] %vm318_vm4, %v822_v18  ;;  %v821_v23 = vsel %vm756_vm7, %v685_v3, %v789_v14  ;;  %vm759_vm10 = vcmp.gt.f32.partialorder %v700_v19, 0.0  ;;  %v9672_v33 = vpop.f32.mrb[10].mxu1 }
 0x119   : > { %v808_v25 = vsel %vm743_vm8, %v620_v8, %v776_v16  ;;  %v630_v26 = vadd.f32 %v9648_v22, %v12096_v5  ;;  %v624_v27 = vpop.f32.mrb[11].mxu0  ;;  %854 = vst.msk [vmem:[#allocation2 + $0x121] sm:$0xff] %vm318_vm4, %v821_v23  ;;  %v792_v28 = vmul.f32 %v12098_v7, %v700_v19  ;;  %vm758_vm11 = vcmp.gt.f32.partialorder %v695_v24, 0.0  ;;  %v12183_v35 = vld [vmem:[#allocation2 + $0x51] sm:$0xff]  ;;  %v704_v38 = vpop.f32.mrb[11].mxu1 }
 0x11a   : > { %841 = vst.msk [vmem:[#allocation2 + $0x81] sm:$0xff] %vm318_vm4, %v808_v25  ;;  %v807_v29 = vsel %vm742_vm9, %v615_v12, %v775_v21  ;;  %v625_v30 = vadd.f32 %v12096_v5, %v624_v27  ;;  %v12176_v31 = vld [vmem:[#allocation2 + $0x49] sm:$0xff]  ;;  %v791_v32 = vmul.f32 %v12098_v7, %v695_v24  ;;  %v710_v37 = vadd.f32 %v9672_v33, %v12096_v5  ;;  %v12264_v27 = vld [vmem:[#allocation2 + $0xe1] sm:$0xff] }
 0x11b   : > { %840 = vst.msk [vmem:[#allocation2 + $0x79] sm:$0xff] %vm318_vm4, %v807_v29  ;;  %vm745_vm12 = vcmp.gt.f32.partialorder %v630_v26, 0.0  ;;  %v778_v34 = vmul.f32 %v12098_v7, %v630_v26  ;;  %9704 = vmatprep.mubr.msk.f32.mxu1 %vm318_vm4, %v12176_v31  ;;  %v824_v36 = vsel %vm759_vm10, %v700_v19, %v792_v28  ;;  %v705_v42 = vadd.f32 %v12096_v5, %v704_v38  ;;  %v12270_v28 = vld [vmem:[#allocation2 + $0x109] sm:$0xff]  ;;  %v12272_v29 = vld [vmem:[#allocation2 + $0xf9] sm:$0xff] }
 0x11c   : > { %vm744_vm13 = vcmp.gt.f32.partialorder %v625_v30, 0.0  ;;  %v777_v39 = vmul.f32 %v12098_v7, %v625_v30  ;;  %v9651_v40 = vpop.f32.mrb[12].mxu0  ;;  %9705 = vmatmul.mubr.msk.f32.gmra.mrb[22].mxu1 %vm318_vm4, %v12183_v35  ;;  %857 = vst.msk [vmem:[#allocation2 + $0x141] sm:$0xff] %vm318_vm4, %v824_v36  ;;  %v823_v41 = vsel %vm758_vm11, %v695_v24, %v791_v32  ;;  %vm761_vm14 = vcmp.gt.f32.partialorder %v710_v37, 0.0  ;;  %v9675_v51 = vpop.f32.mrb[12].mxu1  ;;  %v12252_v24 = vld [vmem:[#allocation2 + $0xd9] sm:$0xff] }
 0x11d   : > { %v810_v43 = vsel %vm745_vm12, %v630_v26, %v778_v34  ;;  %v640_v44 = vadd.f32 %v9651_v40, %v12096_v5  ;;  %v634_v45 = vpop.f32.mrb[13].mxu0  ;;  %856 = vst.msk [vmem:[#allocation2 + $0x139] sm:$0xff] %vm318_vm4, %v823_v41  ;;  %v794_v46 = vmul.f32 %v12098_v7, %v710_v37  ;;  %vm760_vm15 = vcmp.gt.f32.partialorder %v705_v42, 0.0  ;;  %v12204_v53 = vld [vmem:[#allocation2 + $0x69] sm:$0xff]  ;;  %v714_v57 = vpop.f32.mrb[13].mxu1  ;;  %v12262_v26 = vld [vmem:[#allocation2 + $0xf1] sm:$0xff] }
 0x11e   : > { %843 = vst.msk [vmem:[#allocation2 + $0x99] sm:$0xff] %vm318_vm4, %v810_v43  ;;  %v809_v47 = vsel %vm744_vm13, %v625_v30, %v777_v39  ;;  %v635_v48 = vadd.f32 %v12096_v5, %v634_v45  ;;  %v12197_v49 = vld [vmem:[#allocation2 + $0x61] sm:$0xff]  ;;  %v793_v50 = vmul.f32 %v12098_v7, %v705_v42  ;;  %v720_v55 = vadd.f32 %v9675_v51, %v12096_v5  ;;  %v12280_v32 = vld [vmem:[#allocation2 + $0x111] sm:$0xff] }
 0x11f   : > { %842 = vst.msk [vmem:[#allocation2 + $0x91] sm:$0xff] %vm318_vm4, %v809_v47  ;;  %vm747_vm0 = vcmp.gt.f32.partialorder %v640_v44, 0.0  ;;  %v780_v52 = vmul.f32 %v12098_v7, %v640_v44  ;;  %9707 = vmatprep.mubr.msk.f32.mxu1 %vm318_vm4, %v12197_v49  ;;  %v826_v54 = vsel %vm761_vm14, %v710_v37, %v794_v46  ;;  %v715_v62 = vadd.f32 %v12096_v5, %v714_v57  ;;  %v12288_v34 = vld [vmem:[#allocation2 + $0x129] sm:$0xff]  ;;  %v864_v40 = vld [vmem:[#allocation2] sm:$0xff]  ;;  %v1621_v43 = vld [vmem:[%s14339_s3 + $0x98] sm:$0xff] }
 0x120   : > { %vm746_vm1 = vcmp.gt.f32.partialorder %v635_v48, 0.0  ;;  %v779_v58 = vmul.f32 %v12098_v7, %v635_v48  ;;  %v9654_v59 = vpop.f32.mrb[14].mxu0  ;;  %9708 = vmatmul.mubr.msk.f32.gmra.mrb[24].mxu1 %vm318_vm4, %v12204_v53  ;;  %859 = vst.msk [vmem:[#allocation2 + $0x159] sm:$0xff] %vm318_vm4, %v826_v54  ;;  %v825_v61 = vsel %vm760_vm15, %v705_v42, %v793_v50  ;;  %vm763_vm2 = vcmp.gt.f32.partialorder %v720_v55, 0.0  ;;  %v12278_v30 = vld [vmem:[#allocation2 + $0x121] sm:$0xff]  ;;  %v1620_v42 = vld [vmem:[%s14339_s3 + $0x90] sm:$0xff] }
 0x121   : > { %v812_v63 = vsel %vm747_vm0, %v640_v44, %v780_v52  ;;  %v650_v0 = vadd.f32 %v9654_v59, %v12096_v5  ;;  %v644_v1 = vpop.f32.mrb[15].mxu0  ;;  %858 = vst.msk [vmem:[#allocation2 + $0x151] sm:$0xff] %vm318_vm4, %v825_v61  ;;  %v796_v2 = vmul.f32 %v12098_v7, %v720_v55  ;;  %vm762_vm3 = vcmp.gt.f32.partialorder %v715_v62, 0.0  ;;  %v12225_v11 = vld [vmem:[#allocation2 + $0x81] sm:$0xff]  ;;  %v1624_v52 = vld [vmem:[%s14339_s3 + $0xb0] sm:$0xff]  ;;  %v1625_v54 = vld [vmem:[%s14339_s3 + $0xb8] sm:$0xff] }
 0x122   : > { %845 = vst.msk [vmem:[#allocation2 + $0xb1] sm:$0xff] %vm318_vm4, %v812_v63  ;;  %v811_v3 = vsel %vm746_vm1, %v635_v48, %v779_v58  ;;  %v645_v6 = vadd.f32 %v12096_v5, %v644_v1  ;;  %v12218_v8 = vld [vmem:[#allocation2 + $0x79] sm:$0xff]  ;;  %v795_v9 = vmul.f32 %v12098_v7, %v715_v62  ;;  %v865_v44 = vld [vmem:[#allocation2 + $0x8] sm:$0xff]  ;;  %v10877_v45 = vpack.c.bf16 %v1621_v43, %v1620_v42  ;;  %v12363_v63 = vld [vmem:[#allocation2 + $0x50] sm:$0xff]  ;;  %v9678_v1 = vpop.f32.mrb[14].mxu1 }
 0x123   : > { %844 = vst.msk [vmem:[#allocation2 + $0xa9] sm:$0xff] %vm318_vm4, %v811_v3  ;;  %vm749_vm5 = vcmp.gt.f32.partialorder %v650_v0, 0.0  ;;  %v782_v10 = vmul.f32 %v12098_v7, %v650_v0  ;;  %9710 = vmatprep.mubr.msk.f32.mxu1 %vm318_vm4, %v12218_v8  ;;  %v828_v12 = vsel %vm763_vm2, %v720_v55, %v796_v2  ;;  %v12296_v37 = vld [vmem:[#allocation2 + $0x141] sm:$0xff]  ;;  %v12328_v48 = vld [vmem:[#allocation2 + $0x18] sm:$0xff]  ;;  %v12343_v55 = vld [vmem:[#allocation2 + $0x30] sm:$0xff]  ;;  %v730_v2 = vadd.f32 %v9678_v1, %v12096_v5  ;;  %v724_v3 = vpop.f32.mrb[15].mxu1 }
 0x124   : > { %vm748_vm6 = vcmp.gt.f32.partialorder %v645_v6, 0.0  ;;  %v781_v14 = vmul.f32 %v12098_v7, %v645_v6  ;;  %9711 = vmatmul.mubr.msk.f32.gmra.mrb[26].mxu1 %vm318_vm4, %v12225_v11  ;;  %861 = vst.msk [vmem:[#allocation2 + $0x171] sm:$0xff] %vm318_vm4, %v828_v12  ;;  %v827_v15 = vsel %vm762_vm3, %v715_v62, %v795_v9  ;;  %v12286_v33 = vld [vmem:[#allocation2 + $0x139] sm:$0xff]  ;;  %14472 = vst [vmem:[#allocation11_spill] sm:$0xff] %v12296_v37  ;;  %v1623_v47 = vld [vmem:[%s14339_s3 + $0xa8] sm:$0xff] }
 0x125   : > { %v814_v16 = vsel %vm749_vm5, %v650_v0, %v782_v10  ;;  %860 = vst.msk [vmem:[#allocation2 + $0x169] sm:$0xff] %vm318_vm4, %v827_v15  ;;  %v12238_v20 = vld [vmem:[#allocation2 + $0x99] sm:$0xff]  ;;  %14470 = vst [vmem:[#allocation9_spill] sm:$0xff] %v12286_v33  ;;  %v2012_v59 = vld [vmem:[%s14339_s3 + $0xc8] sm:$0xff]  ;;  %vm765_vm7 = vcmp.gt.f32.partialorder %v730_v2, 0.0  ;;  %v798_v10 = vmul.f32 %v12098_v7, %v730_v2 }
 0x126   : > { %847 = vst.msk [vmem:[#allocation2 + $0xc9] sm:$0xff] %vm318_vm4, %v814_v16  ;;  %v813_v18 = vsel %vm748_vm6, %v645_v6, %v781_v14  ;;  %v12233_v19 = vld [vmem:[#allocation2 + $0x91] sm:$0xff]  ;;  %v1622_v46 = vld [vmem:[%s14339_s3 + $0xa0] sm:$0xff]  ;;  %v12357_v61 = vld [vmem:[#allocation2 + $0x48] sm:$0xff]  ;;  %v725_v6 = vadd.f32 %v12096_v5, %v724_v3 }
 0x127   : > { %846 = vst.msk [vmem:[#allocation2 + $0xc1] sm:$0xff] %vm318_vm4, %v813_v18  ;;  %9713 = vmatprep.mubr.msk.f32.mxu1 %vm318_vm4, %v12233_v19  ;;  %v12304_v39 = vld [vmem:[#allocation2 + $0x159] sm:$0xff]  ;;  %v10881_v50 = vpack.c.bf16 %v1623_v47, %v1622_v46  ;;  %v12374_v9 = vld [vmem:[#allocation2 + $0x68] sm:$0xff]  ;;  %v830_v15 = vsel %vm765_vm7, %v730_v2, %v798_v10  ;;  %v12390_v18 = vld [vmem:[#allocation2 + $0x90] sm:$0xff] }
 0x128   : > { %9714 = vmatmul.mubr.msk.f32.gmra.mrb[28].mxu1 %vm318_vm4, %v12238_v20  ;;  %v12294_v36 = vld [vmem:[#allocation2 + $0x151] sm:$0xff]  ;;  %14474 = vst [vmem:[#allocation13_spill] sm:$0xff] %v12304_v39  ;;  %v12333_v51 = vld [vmem:[#allocation2 + $0x20] sm:$0xff]  ;;  %vm764_vm8 = vcmp.gt.f32.partialorder %v725_v6, 0.0  ;;  %v797_v14 = vmul.f32 %v12098_v7, %v725_v6  ;;  %863 = vst.msk [vmem:[#allocation2 + $0x189] sm:$0xff] %vm318_vm4, %v830_v15 }
 0x129   : > { %v12246_v22 = vld [vmem:[#allocation2 + $0xb1] sm:$0xff]  ;;  %14471 = vst [vmem:[#allocation10_spill] sm:$0xff] %v12294_v36  ;;  %v2011_v58 = vld [vmem:[%s14339_s3 + $0xc0] sm:$0xff] }
 0x12a   : > { %v12242_v21 = vld [vmem:[#allocation2 + $0xa9] sm:$0xff]  ;;  %v12347_v57 = vld [vmem:[#allocation2 + $0x38] sm:$0xff]  ;;  %v12361_v62 = vpack.c.bf16 %v2012_v59, %v2011_v58  ;;  %v12367_v0 = vld [vmem:[#allocation2 + $0x60] sm:$0xff]  ;;  %v829_v5 = vsel %vm764_vm8, %v725_v6, %v797_v14 }
 0x12b   : > { %9716 = vmatprep.mubr.msk.f32.mxu1 %vm318_vm4, %v12242_v21  ;;  %v12310_v41 = vld [vmem:[#allocation2 + $0x171] sm:$0xff]  ;;  %v12385_v16 = vld [vmem:[#allocation2 + $0x80] sm:$0xff]  ;;  %862 = vst.msk [vmem:[#allocation2 + $0x181] sm:$0xff] %vm318_vm4, %v829_v5  ;;  %v12442_v58 = vld [vmem:[#allocation2 + $0x128] sm:$0xff] }
 0x12c   : > { %9717 = vmatmul.mubr.msk.f32.gmra.mrb[30].mxu1 %vm318_vm4, %v12246_v22  ;;  %v12302_v38 = vld [vmem:[#allocation2 + $0x169] sm:$0xff]  ;;  %14475 = vst [vmem:[#allocation14_spill] sm:$0xff] %v12310_v41  ;;  %v12379_v12 = vld [vmem:[#allocation2 + $0x78] sm:$0xff]  ;;  %v12418_v46 = vld [vmem:[#allocation2 + $0xe0] sm:$0xff] }
 0x12d   : > { %v12256_v25 = vld [vmem:[#allocation2 + $0xc9] sm:$0xff]  ;;  %14473 = vst [vmem:[#allocation12_spill] sm:$0xff] %v12302_v38  ;;  %v12394_v7 = vld [vmem:[#allocation2 + $0x98] sm:$0xff]  ;;  %v12450_v1 = vld [vmem:[#allocation2 + $0x140] sm:$0xff] }
 0x12e   : > { %v12250_v23 = vld [vmem:[#allocation2 + $0xc1] sm:$0xff]  ;;  %v12402_v42 = vld [vmem:[#allocation2 + $0xb0] sm:$0xff]  ;;  %v12446_v59 = vld [vmem:[#allocation2 + $0x138] sm:$0xff] }
 0x12f   : > { %9719 = vmatprep.mubr.msk.f32.mxu1 %vm318_vm4, %v12250_v23  ;;  %v12406_v43 = vld [vmem:[#allocation2 + $0xc0] sm:$0xff]  ;;  %v12422_v47 = vld [vmem:[#allocation2 + $0xf0] sm:$0xff]  ;;  %v12458_v3 = vld [vmem:[#allocation2 + $0x158] sm:$0xff] }
 0x130   : > { %9720 = vmatmul.mubr.msk.f32.gmra.mrb[32].mxu1 %vm318_vm4, %v12256_v25  ;;  %v12454_v2 = vld [vmem:[#allocation2 + $0x150] sm:$0xff]  ;;  %v12462_v6 = vld [vmem:[#allocation2 + $0x168] sm:$0xff]  ;;  %v2014_v5 = vld [vmem:[%s14339_s3 + $0xd8] sm:$0xff] }
 0x131   : > { %9722 = vmatprep.mubr.msk.f32.mxu1 %vm318_vm4, %v12252_v24  ;;  %v1586_v10 = vld [vmem:[#allocation2 + $0x2] sm:$0xff]  ;;  %v12466_v14 = vld [vmem:[#allocation2 + $0x170] sm:$0xff] }
 0x132   : > { %v2013_v15 = vld [vmem:[%s14339_s3 + $0xd0] sm:$0xff] }
 0x134   : > { %9723 = vmatmul.mubr.msk.f32.gmra.mrb[34].mxu1 %vm318_vm4, %v12264_v27 }
 0x135   : > { %9725 = vmatprep.mubr.msk.f32.mxu1 %vm318_vm4, %v12262_v26 }
 0x138   : > { %9726 = vmatmul.mubr.msk.f32.gmra.mrb[36].mxu1 %vm318_vm4, %v12272_v29 }
 0x139   : > { %9728 = vmatprep.mubr.msk.f32.mxu1 %vm318_vm4, %v12270_v28 }
 0x13c   : > { %9729 = vmatmul.mubr.msk.f32.gmra.mrb[38].mxu1 %vm318_vm4, %v12280_v32 }
 0x13d   : > { %9731 = vmatprep.mubr.msk.f32.mxu1 %vm318_vm4, %v12278_v30 }
 0x140   : > { %9732 = vmatmul.mubr.msk.f32.gmra.mrb[40].mxu1 %vm318_vm4, %v12288_v34 }
 0x141   : > { %9734 = vmatprep.mubr.msk.f32.mxu1 %vm318_vm4, %v12286_v33  ;;  %v2018_v33 = vld [vmem:[%s14339_s3 + $0xf8] sm:$0xff] }
 0x144   : > { %9735 = vmatmul.mubr.msk.f32.gmra.mrb[42].mxu1 %vm318_vm4, %v12296_v37  ;;  %v12484_v37 = vld [vmem:[#allocation2 + $0x1a] sm:$0xff] }
 0x145   : > { %9737 = vmatprep.mubr.msk.f32.mxu1 %vm318_vm4, %v12294_v36  ;;  %v2016_v36 = vld [vmem:[%s14339_s3 + $0xe8] sm:$0xff]  ;;  %14476 = vst [vmem:[#allocation15_spill] sm:$0xff] %v12484_v37 }
 0x148   : > { %9738 = vmatmul.mubr.msk.f32.gmra.mrb[44].mxu1 %vm318_vm4, %v12304_v39  ;;  %v2015_v39 = vld [vmem:[%s14339_s3 + $0xe0] sm:$0xff] }
 0x149   : > { %9740 = vmatprep.mubr.msk.f32.mxu1 %vm318_vm4, %v12302_v38  ;;  %v10893_v38 = vpack.c.bf16 %v2014_v5, %v2013_v15  ;;  %v12489_v15 = vld [vmem:[#allocation2 + $0x22] sm:$0xff]  ;;  %v2017_v5 = vld [vmem:[%s14339_s3 + $0xf0] sm:$0xff] }
 0x14a   : > { %14477 = vst [vmem:[#allocation16_spill] sm:$0xff] %v12489_v15 }
 0x14c   : > { %9741 = vmatmul.mubr.msk.f32.gmra.mrb[46].mxu1 %vm318_vm4, %v12310_v41  ;;  %v1587_v41 = vld [vmem:[#allocation2 + $0xa] sm:$0xff] }
 0x14d   : > { %9759 = vmatprep.mubr.msk.f32.mxu1 %vm318_vm4, %v864_v40  ;;  %v12398_v40 = vld [vmem:[#allocation2 + $0xa8] sm:$0xff] }
 0x150   : > { %9760 = vmatmul.mubr.msk.f32.vlgmr.msra.gmra.mrb[16].mxu1 %vm318_vm4, %v865_v44  ;;  %v12410_v44 = vld [vmem:[#allocation2 + $0xc8] sm:$0xff] }
 0x151   : > { %10876 = vmatpush3.bf16.msra.mxu1 %v12090_v4  ;;  %9762 = vmatprep.mubr.msk.f32.mxu1 %vm318_vm4, %v12328_v48  ;;  %v10885_v4 = vpack.c.bf16 %v1625_v54, %v1624_v52  ;;  %v12430_v52 = vld [vmem:[#allocation2 + $0x108] sm:$0xff]  ;;  %v12434_v54 = vld [vmem:[#allocation2 + $0x110] sm:$0xff] }
 0x152   : > { %10878 = vmatprep.subr.bf16.mxu1 %v10877_v45 }
 0x154   : > { %9763 = vmatmul.mubr.msk.f32.gmra.mrb[18].mxu1 %vm318_vm4, %v12333_v51 }
 0x155   : > { %9765 = vmatprep.mubr.msk.f32.mxu1 %vm318_vm4, %v12343_v55  ;;  %10880 = vmatpush3.bf16.msra.mxu1 %v10877_v45  ;;  %v12414_v45 = vld [vmem:[#allocation2 + $0xd8] sm:$0xff] }
 0x156   : > { %10882 = vmatprep.subr.bf16.mxu1 %v10881_v50 }
 0x158   : > { %9766 = vmatmul.mubr.msk.f32.gmra.mrb[20].mxu1 %vm318_vm4, %v12347_v57 }
 0x159   : > { %9768 = vmatprep.mubr.msk.f32.mxu1 %vm318_vm4, %v12357_v61  ;;  %10884 = vmatpush3.bf16.msra.mxu1 %v10881_v50  ;;  %v12426_v50 = vld [vmem:[#allocation2 + $0xf8] sm:$0xff] }
 0x15a   : > { %10886 = vmatprep.subr.bf16.mxu1 %v10885_v4 }
 0x15c   : > { %9769 = vmatmul.mubr.msk.f32.gmra.mrb[22].mxu1 %vm318_vm4, %v12363_v63 }
 0x15d   : > { %9771 = vmatprep.mubr.msk.f32.mxu1 %vm318_vm4, %v12367_v0  ;;  %10888 = vmatpush3.bf16.msra.mxu1 %v10885_v4  ;;  %v12438_v4 = vld [vmem:[#allocation2 + $0x120] sm:$0xff] }
 0x15e   : > { %10890 = vmatprep.subr.bf16.mxu1 %v12361_v62 }
 0x160   : > { %9772 = vmatmul.mubr.msk.f32.gmra.mrb[24].mxu1 %vm318_vm4, %v12374_v9 }
 0x161   : > { %9774 = vmatprep.mubr.msk.f32.mxu1 %vm318_vm4, %v12379_v12 }
 0x164   : > { %9775 = vmatmul.mubr.msk.f32.gmra.mrb[26].mxu1 %vm318_vm4, %v12385_v16 }
 0x165   : > { %9777 = vmatprep.mubr.msk.f32.mxu1 %vm318_vm4, %v12390_v18 }
 0x168   : > { %9778 = vmatmul.mubr.msk.f32.gmra.mrb[28].mxu1 %vm318_vm4, %v12394_v7 }
 0x169   : > { %9780 = vmatprep.mubr.msk.f32.mxu1 %vm318_vm4, %v12398_v40 }
 0x16c   : > { %9781 = vmatmul.mubr.msk.f32.gmra.mrb[30].mxu1 %vm318_vm4, %v12402_v42 }
 0x16d   : > { %9783 = vmatprep.mubr.msk.f32.mxu1 %vm318_vm4, %v12406_v43 }
 0x170   : > { %9784 = vmatmul.mubr.msk.f32.gmra.mrb[32].mxu1 %vm318_vm4, %v12410_v44 }
 0x171   : > { %9786 = vmatprep.mubr.msk.f32.mxu1 %vm318_vm4, %v12414_v45 }
 0x174   : > { %9787 = vmatmul.mubr.msk.f32.gmra.mrb[34].mxu1 %vm318_vm4, %v12418_v46 }
 0x175   : > { %9789 = vmatprep.mubr.msk.f32.mxu1 %vm318_vm4, %v12422_v47 }
 0x178   : > { %9790 = vmatmul.mubr.msk.f32.gmra.mrb[36].mxu1 %vm318_vm4, %v12426_v50 }
 0x179   : > { %9792 = vmatprep.mubr.msk.f32.mxu1 %vm318_vm4, %v12430_v52 }
 0x17c   : > { %9793 = vmatmul.mubr.msk.f32.gmra.mrb[38].mxu1 %vm318_vm4, %v12434_v54 }
 0x17d   : > { %9795 = vmatprep.mubr.msk.f32.mxu1 %vm318_vm4, %v12438_v4 }
 0x180   : > { %9796 = vmatmul.mubr.msk.f32.gmra.mrb[40].mxu1 %vm318_vm4, %v12442_v58 }
 0x181   : > { %9798 = vmatprep.mubr.msk.f32.mxu1 %vm318_vm4, %v12446_v59 }
 0x184   : > { %9799 = vmatmul.mubr.msk.f32.gmra.mrb[42].mxu1 %vm318_vm4, %v12450_v1 }
 0x185   : > { %9801 = vmatprep.mubr.msk.f32.mxu1 %vm318_vm4, %v12454_v2 }
 0x188   : > { %9802 = vmatmul.mubr.msk.f32.gmra.mrb[44].mxu1 %vm318_vm4, %v12458_v3 }
 0x189   : > { %9804 = vmatprep.mubr.msk.f32.mxu1 %vm318_vm4, %v12462_v6 }
 0x18c   : > { %9805 = vmatmul.mubr.msk.f32.gmra.mrb[46].mxu1 %vm318_vm4, %v12466_v14 }
 0x18d   : > { %9823 = vmatprep.mubr.msk.f32.mxu1 %vm318_vm4, %v1586_v10  ;;  %v10897_v10 = vpack.c.bf16 %v2016_v36, %v2015_v39  ;;  %v10901_v36 = vpack.c.bf16 %v2018_v33, %v2017_v5  ;;  %v12503_v39 = vld [vmem:[#allocation2 + $0x3a] sm:$0xff]  ;;  %v12521_v5 = vld [vmem:[#allocation2 + $0x62] sm:$0xff] }
 0x18e   : > { %14478 = vst [vmem:[#allocation17_spill] sm:$0xff] %v12503_v39  ;;  %14479 = vst [vmem:[#allocation18_spill] sm:$0xff] %v12521_v5 }
 0x190   : > { %9824 = vmatmul.mubr.msk.f32.vlgmr.msra.gmra.mrb[16].mxu1 %vm318_vm4, %v1587_v41  ;;  %v12499_v41 = vld [vmem:[#allocation2 + $0x32] sm:$0xff] }
 0x191   : > { %10892 = vmatpush3.bf16.msra.mxu1 %v12361_v62  ;;  %9826 = vmatprep.mubr.msk.f32.mxu1 %vm318_vm4, %v12484_v37  ;;  %v2404_v62 = vld [vmem:[%s14339_s3 + $0x100] sm:$0xff]  ;;  %v2405_v37 = vld [vmem:[%s14339_s3 + $0x108] sm:$0xff] }
 0x192   : > { %10894 = vmatprep.subr.bf16.mxu1 %v10893_v38  ;;  %v10905_v33 = vpack.c.bf16 %v2405_v37, %v2404_v62  ;;  %v12533_v37 = vld [vmem:[#allocation2 + $0x82] sm:$0xff]  ;;  %v12537_v62 = vld [vmem:[#allocation2 + $0x92] sm:$0xff] }
 0x193   : > { %14482 = vst [vmem:[#allocation21_spill] sm:$0xff] %v12533_v37  ;;  %14483 = vst [vmem:[#allocation22_spill] sm:$0xff] %v12537_v62 }
 0x194   : > { %9827 = vmatmul.mubr.msk.f32.gmra.mrb[18].mxu1 %vm318_vm4, %v12489_v15  ;;  %v12513_v15 = vld [vmem:[#allocation2 + $0x4a] sm:$0xff] }
 0x195   : > { %9829 = vmatprep.mubr.msk.f32.mxu1 %vm318_vm4, %v12499_v41  ;;  %10896 = vmatpush3.bf16.msra.mxu1 %v10893_v38  ;;  %v12517_v38 = vld [vmem:[#allocation2 + $0x52] sm:$0xff] }
 0x196   : > { %10898 = vmatprep.subr.bf16.mxu1 %v10897_v10 }
 0x198   : > { %9830 = vmatmul.mubr.msk.f32.gmra.mrb[20].mxu1 %vm318_vm4, %v12503_v39  ;;  %v12525_v39 = vld [vmem:[#allocation2 + $0x6a] sm:$0xff] }
 0x199   : > { %9832 = vmatprep.mubr.msk.f32.mxu1 %vm318_vm4, %v12513_v15  ;;  %10900 = vmatpush3.bf16.msra.mxu1 %v10897_v10  ;;  %14480 = vst [vmem:[#allocation19_spill] sm:$0xff] %v12525_v39  ;;  %v12529_v10 = vld [vmem:[#allocation2 + $0x7a] sm:$0xff] }
 0x19a   : > { %10902 = vmatprep.subr.bf16.mxu1 %v10901_v36  ;;  %14481 = vst [vmem:[#allocation20_spill] sm:$0xff] %v12529_v10 }
 0x19c   : > { %9833 = vmatmul.mubr.msk.f32.gmra.mrb[22].mxu1 %vm318_vm4, %v12517_v38 }
 0x19d   : > { %9835 = vmatprep.mubr.msk.f32.mxu1 %vm318_vm4, %v12521_v5  ;;  %10904 = vmatpush3.bf16.msra.mxu1 %v10901_v36  ;;  %v12541_v36 = vld [vmem:[#allocation2 + $0x9a] sm:$0xff]  ;;  %v2409_v5 = vld [vmem:[%s14339_s3 + $0x128] sm:$0xff] }
 0x19e   : > { %10906 = vmatprep.subr.bf16.mxu1 %v10905_v33  ;;  %14484 = vst [vmem:[#allocation23_spill] sm:$0xff] %v12541_v36 }
 0x1a0   : > { %9836 = vmatmul.mubr.msk.f32.gmra.mrb[24].mxu1 %vm318_vm4, %v12525_v39  ;;  %v12545_v39 = vld [vmem:[#allocation2 + $0xaa] sm:$0xff] }
 0x1a1   : > { %9838 = vmatprep.mubr.msk.f32.mxu1 %vm318_vm4, %v12529_v10  ;;  %14485 = vst [vmem:[#allocation24_spill] sm:$0xff] %v12545_v39  ;;  %v12549_v10 = vld [vmem:[#allocation2 + $0xb2] sm:$0xff] }
 0x1a2   : > { %14486 = vst [vmem:[#allocation25_spill] sm:$0xff] %v12549_v10 }
 0x1a4   : > { %9839 = vmatmul.mubr.msk.f32.gmra.mrb[26].mxu1 %vm318_vm4, %v12533_v37  ;;  %v12553_v37 = vld [vmem:[#allocation2 + $0xc2] sm:$0xff] }
 0x1a5   : > { %9841 = vmatprep.mubr.msk.f32.mxu1 %vm318_vm4, %v12537_v62  ;;  %14487 = vst [vmem:[#allocation26_spill] sm:$0xff] %v12553_v37  ;;  %v12557_v62 = vld [vmem:[#allocation2 + $0xca] sm:$0xff] }
 0x1a6   : > { %14488 = vst [vmem:[#allocation27_spill] sm:$0xff] %v12557_v62 }
 0x1a8   : > { %9842 = vmatmul.mubr.msk.f32.gmra.mrb[28].mxu1 %vm318_vm4, %v12541_v36  ;;  %v12561_v36 = vld [vmem:[#allocation2 + $0xda] sm:$0xff] }
 0x1a9   : > { %9844 = vmatprep.mubr.msk.f32.mxu1 %vm318_vm4, %v12545_v39  ;;  %14489 = vst [vmem:[#allocation28_spill] sm:$0xff] %v12561_v36  ;;  %v12565_v39 = vld [vmem:[#allocation2 + $0xe2] sm:$0xff] }
 0x1aa   : > { %14490 = vst [vmem:[#allocation29_spill] sm:$0xff] %v12565_v39 }
 0x1ac   : > { %9845 = vmatmul.mubr.msk.f32.gmra.mrb[30].mxu1 %vm318_vm4, %v12549_v10  ;;  %v12569_v10 = vld [vmem:[#allocation2 + $0xf2] sm:$0xff] }
 0x1ad   : > { %9847 = vmatprep.mubr.msk.f32.mxu1 %vm318_vm4, %v12553_v37  ;;  %14491 = vst [vmem:[#allocation30_spill] sm:$0xff] %v12569_v10  ;;  %v12573_v37 = vld [vmem:[#allocation2 + $0xfa] sm:$0xff] }
 0x1ae   : > { %14492 = vst [vmem:[#allocation31_spill] sm:$0xff] %v12573_v37 }
 0x1b0   : > { %9848 = vmatmul.mubr.msk.f32.gmra.mrb[32].mxu1 %vm318_vm4, %v12557_v62  ;;  %v12577_v62 = vld [vmem:[#allocation2 + $0x10a] sm:$0xff] }
 0x1b1   : > { %9850 = vmatprep.mubr.msk.f32.mxu1 %vm318_vm4, %v12561_v36  ;;  %14493 = vst [vmem:[#allocation32_spill] sm:$0xff] %v12577_v62  ;;  %v12581_v36 = vld [vmem:[#allocation2 + $0x112] sm:$0xff] }
 0x1b2   : > { %14494 = vst [vmem:[#allocation33_spill] sm:$0xff] %v12581_v36 }
 0x1b4   : > { %9851 = vmatmul.mubr.msk.f32.gmra.mrb[34].mxu1 %vm318_vm4, %v12565_v39  ;;  %v12585_v39 = vld [vmem:[#allocation2 + $0x122] sm:$0xff] }
 0x1b5   : > { %9853 = vmatprep.mubr.msk.f32.mxu1 %vm318_vm4, %v12569_v10  ;;  %14495 = vst [vmem:[#allocation34_spill] sm:$0xff] %v12585_v39  ;;  %v12589_v10 = vld [vmem:[#allocation2 + $0x12a] sm:$0xff] }
 0x1b6   : > { %14496 = vst [vmem:[#allocation35_spill] sm:$0xff] %v12589_v10 }
 0x1b8   : > { %9854 = vmatmul.mubr.msk.f32.gmra.mrb[36].mxu1 %vm318_vm4, %v12573_v37  ;;  %v12593_v37 = vld [vmem:[#allocation2 + $0x13a] sm:$0xff] }
 0x1b9   : > { %9856 = vmatprep.mubr.msk.f32.mxu1 %vm318_vm4, %v12577_v62  ;;  %14497 = vst [vmem:[#allocation36_spill] sm:$0xff] %v12593_v37  ;;  %v12597_v62 = vld [vmem:[#allocation2 + $0x142] sm:$0xff] }
 0x1ba   : > { %14498 = vst [vmem:[#allocation37_spill] sm:$0xff] %v12597_v62 }
 0x1bc   : > { %9857 = vmatmul.mubr.msk.f32.gmra.mrb[38].mxu1 %vm318_vm4, %v12581_v36  ;;  %v12601_v36 = vld [vmem:[#allocation2 + $0x152] sm:$0xff] }
 0x1bd   : > { %9859 = vmatprep.mubr.msk.f32.mxu1 %vm318_vm4, %v12585_v39  ;;  %14499 = vst [vmem:[#allocation38_spill] sm:$0xff] %v12601_v36  ;;  %v12605_v39 = vld [vmem:[#allocation2 + $0x15a] sm:$0xff] }
 0x1be   : > { %14500 = vst [vmem:[#allocation39_spill] sm:$0xff] %v12605_v39 }
 0x1c0   : > { %9860 = vmatmul.mubr.msk.f32.gmra.mrb[40].mxu1 %vm318_vm4, %v12589_v10  ;;  %v12609_v10 = vld [vmem:[#allocation2 + $0x16a] sm:$0xff] }
 0x1c1   : > { %9862 = vmatprep.mubr.msk.f32.mxu1 %vm318_vm4, %v12593_v37  ;;  %14501 = vst [vmem:[#allocation40_spill] sm:$0xff] %v12609_v10  ;;  %v12613_v37 = vld [vmem:[#allocation2 + $0x172] sm:$0xff] }
 0x1c2   : > { %14502 = vst [vmem:[#allocation41_spill] sm:$0xff] %v12613_v37 }
 0x1c4   : > { %9863 = vmatmul.mubr.msk.f32.gmra.mrb[42].mxu1 %vm318_vm4, %v12597_v62  ;;  %v2406_v62 = vld [vmem:[%s14339_s3 + $0x110] sm:$0xff] }
 0x1c5   : > { %9865 = vmatprep.mubr.msk.f32.mxu1 %vm318_vm4, %v12601_v36  ;;  %v2407_v36 = vld [vmem:[%s14339_s3 + $0x118] sm:$0xff] }
 0x1c8   : > { %9866 = vmatmul.mubr.msk.f32.gmra.mrb[44].mxu1 %vm318_vm4, %v12605_v39  ;;  %v10909_v39 = vpack.c.bf16 %v2407_v36, %v2406_v62  ;;  %v2411_v62 = vld [vmem:[%s14339_s3 + $0x138] sm:$0xff]  ;;  %v2799_v36 = vld [vmem:[%s14339_s3 + $0x150] sm:$0xff] }
 0x1c9   : > { %9868 = vmatprep.mubr.msk.f32.mxu1 %vm318_vm4, %v12609_v10  ;;  %v2408_v10 = vld [vmem:[%s14339_s3 + $0x120] sm:$0xff] }
 0x1cc   : > { %9869 = vmatmul.mubr.msk.f32.gmra.mrb[46].mxu1 %vm318_vm4, %v12613_v37  ;;  %v10913_v37 = vpack.c.bf16 %v2409_v5, %v2408_v10  ;;  %v2798_v5 = vld [vmem:[%s14339_s3 + $0x148] sm:$0xff] }
 0x1cd   : > { %9887 = vmatprep.mubr.msk.f32.mxu1 %vm318_vm4, %v12328_v48  ;;  %v2410_v48 = vld [vmem:[%s14339_s3 + $0x130] sm:$0xff] }
 0x1d0   : > { %9888 = vmatmul.mubr.msk.f32.vlgmr.msra.gmra.mrb[16].mxu1 %vm318_vm4, %v12333_v51  ;;  %v10917_v51 = vpack.c.bf16 %v2411_v62, %v2410_v48  ;;  %v2800_v48 = vld [vmem:[%s14339_s3 + $0x158] sm:$0xff] }
 0x1d1   : > { %10908 = vmatpush3.bf16.msra.mxu1 %v10905_v33  ;;  %9890 = vmatprep.mubr.msk.f32.mxu1 %vm318_vm4, %v12343_v55  ;;  %v2797_v33 = vld [vmem:[%s14339_s3 + $0x140] sm:$0xff]  ;;  %v10925_v62 = vpack.c.bf16 %v2800_v48, %v2799_v36  ;;  %v2804_v36 = vld [vmem:[%s14339_s3 + $0x178] sm:$0xff] }
 0x1d2   : > { %10910 = vmatprep.subr.bf16.mxu1 %v10909_v39  ;;  %v10921_v10 = vpack.c.bf16 %v2798_v5, %v2797_v33  ;;  %v2802_v33 = vld [vmem:[%s14339_s3 + $0x168] sm:$0xff]  ;;  %v3584_v48 = vld [vmem:[%s14339_s3 + $0x1c0] sm:$0xff] }
 0x1d4   : > { %9891 = vmatmul.mubr.msk.f32.gmra.mrb[18].mxu1 %vm318_vm4, %v12347_v57 }
 0x1d5   : > { %9893 = vmatprep.mubr.msk.f32.mxu1 %vm318_vm4, %v12357_v61  ;;  %10912 = vmatpush3.bf16.msra.mxu1 %v10909_v39  ;;  %v12701_v39 = vld [vmem:[#allocation2 + $0x180] sm:$0xff] }
 0x1d6   : > { %10914 = vmatprep.subr.bf16.mxu1 %v10913_v37 }
 0x1d8   : > { %9894 = vmatmul.mubr.msk.f32.gmra.mrb[20].mxu1 %vm318_vm4, %v12363_v63 }
 0x1d9   : > { %9896 = vmatprep.mubr.msk.f32.mxu1 %vm318_vm4, %v12367_v0  ;;  %10916 = vmatpush3.bf16.msra.mxu1 %v10913_v37  ;;  %v12705_v37 = vld [vmem:[#allocation2 + $0x188] sm:$0xff] }
 0x1da   : > { %10918 = vmatprep.subr.bf16.mxu1 %v10917_v51 }
 0x1dc   : > { %9897 = vmatmul.mubr.msk.f32.gmra.mrb[22].mxu1 %vm318_vm4, %v12374_v9 }
 0x1dd   : > { %9899 = vmatprep.mubr.msk.f32.mxu1 %vm318_vm4, %v12379_v12  ;;  %10920 = vmatpush3.bf16.msra.mxu1 %v10917_v51  ;;  %v2801_v51 = vld [vmem:[%s14339_s3 + $0x160] sm:$0xff] }
 0x1de   : > { %10922 = vmatprep.subr.bf16.mxu1 %v10921_v10  ;;  %v10929_v5 = vpack.c.bf16 %v2802_v33, %v2801_v51  ;;  %v14512_v51 = vld [vmem:[#allocation18_spill] sm:$0xff] }
 0x1e0   : > { %9900 = vmatmul.mubr.msk.f32.gmra.mrb[24].mxu1 %vm318_vm4, %v12385_v16 }
 0x1e1   : > { %9902 = vmatprep.mubr.msk.f32.mxu1 %vm318_vm4, %v12390_v18 }
 0x1e4   : > { %9903 = vmatmul.mubr.msk.f32.gmra.mrb[26].mxu1 %vm318_vm4, %v12394_v7 }
 0x1e5   : > { %9905 = vmatprep.mubr.msk.f32.mxu1 %vm318_vm4, %v12398_v40 }
 0x1e8   : > { %9906 = vmatmul.mubr.msk.f32.gmra.mrb[28].mxu1 %vm318_vm4, %v12402_v42 }
 0x1e9   : > { %9908 = vmatprep.mubr.msk.f32.mxu1 %vm318_vm4, %v12406_v43 }
 0x1ec   : > { %9909 = vmatmul.mubr.msk.f32.gmra.mrb[30].mxu1 %vm318_vm4, %v12410_v44 }
 0x1ed   : > { %9911 = vmatprep.mubr.msk.f32.mxu1 %vm318_vm4, %v12414_v45 }
 0x1f0   : > { %9912 = vmatmul.mubr.msk.f32.gmra.mrb[32].mxu1 %vm318_vm4, %v12418_v46 }
 0x1f1   : > { %9914 = vmatprep.mubr.msk.f32.mxu1 %vm318_vm4, %v12422_v47 }
 0x1f4   : > { %9915 = vmatmul.mubr.msk.f32.gmra.mrb[34].mxu1 %vm318_vm4, %v12426_v50 }
 0x1f5   : > { %9917 = vmatprep.mubr.msk.f32.mxu1 %vm318_vm4, %v12430_v52 }
 0x1f8   : > { %9918 = vmatmul.mubr.msk.f32.gmra.mrb[36].mxu1 %vm318_vm4, %v12434_v54 }
 0x1f9   : > { %9920 = vmatprep.mubr.msk.f32.mxu1 %vm318_vm4, %v12438_v4 }
 0x1fc   : > { %9921 = vmatmul.mubr.msk.f32.gmra.mrb[38].mxu1 %vm318_vm4, %v12442_v58 }
 0x1fd   : > { %9923 = vmatprep.mubr.msk.f32.mxu1 %vm318_vm4, %v12446_v59 }
 0x200   : > { %9924 = vmatmul.mubr.msk.f32.gmra.mrb[40].mxu1 %vm318_vm4, %v12450_v1 }
 0x201   : > { %9926 = vmatprep.mubr.msk.f32.mxu1 %vm318_vm4, %v12454_v2 }
 0x204   : > { %9927 = vmatmul.mubr.msk.f32.gmra.mrb[42].mxu1 %vm318_vm4, %v12458_v3 }
 0x205   : > { %9929 = vmatprep.mubr.msk.f32.mxu1 %vm318_vm4, %v12462_v6 }
 0x208   : > { %9930 = vmatmul.mubr.msk.f32.gmra.mrb[44].mxu1 %vm318_vm4, %v12466_v14 }
 0x209   : > { %9932 = vmatprep.mubr.msk.f32.mxu1 %vm318_vm4, %v12701_v39 }
 0x20c   : > { %9933 = vmatmul.mubr.msk.f32.gmra.mrb[46].mxu1 %vm318_vm4, %v12705_v37 }
 0x20d   : > { %9951 = vmatprep.mubr.msk.f32.mxu1 %vm318_vm4, %v12134_v56  ;;  %v2803_v56 = vld [vmem:[%s14339_s3 + $0x170] sm:$0xff] }
 0x210   : > { %9952 = vmatmul.mubr.msk.f32.vlgmr.msra.gmra.mrb[16].mxu1 %vm318_vm4, %v12141_v60  ;;  %v10933_v60 = vpack.c.bf16 %v2804_v36, %v2803_v56  ;;  %v14514_v56 = vld [vmem:[#allocation20_spill] sm:$0xff]  ;;  %v14515_v36 = vld [vmem:[#allocation21_spill] sm:$0xff] }
 0x211   : > { %10924 = vmatpush3.bf16.msra.mxu1 %v10921_v10  ;;  %9954 = vmatprep.mubr.msk.f32.mxu1 %vm318_vm4, %v12155_v13  ;;  %v3191_v13 = vld [vmem:[%s14339_s3 + $0x180] sm:$0xff]  ;;  %v3192_v10 = vld [vmem:[%s14339_s3 + $0x188] sm:$0xff] }
 0x212   : > { %10926 = vmatprep.subr.bf16.mxu1 %v10925_v62 }
 0x214   : > { %9955 = vmatmul.mubr.msk.f32.gmra.mrb[18].mxu1 %vm318_vm4, %v12162_v17  ;;  %v10937_v17 = vpack.c.bf16 %v3192_v10, %v3191_v13  ;;  %v14517_v13 = vld [vmem:[#allocation23_spill] sm:$0xff]  ;;  %v14518_v10 = vld [vmem:[#allocation24_spill] sm:$0xff] }
 0x215   : > { %9957 = vmatprep.mubr.msk.f32.mxu1 %vm318_vm4, %v12176_v31  ;;  %10928 = vmatpush3.bf16.msra.mxu1 %v10925_v62  ;;  %v14503_v31 = vld [vmem:[#allocation9_spill] sm:$0xff]  ;;  %v3585_v62 = vld [vmem:[%s14339_s3 + $0x1c8] sm:$0xff] }
 0x216   : > { %10930 = vmatprep.subr.bf16.mxu1 %v10929_v5  ;;  %v10953_v33 = vpack.c.bf16 %v3585_v62, %v3584_v48  ;;  %v12889_v48 = vld [vmem:[#allocation2 + $0x18a] sm:$0xff] }
 0x217   : > { %v3586_v62 = vld [vmem:[%s14339_s3 + $0x1d0] sm:$0xff] }
 0x218   : > { %9958 = vmatmul.mubr.msk.f32.gmra.mrb[20].mxu1 %vm318_vm4, %v12183_v35  ;;  %v14504_v35 = vld [vmem:[#allocation11_spill] sm:$0xff] }
 0x219   : > { %9960 = vmatprep.mubr.msk.f32.mxu1 %vm318_vm4, %v12197_v49  ;;  %10932 = vmatpush3.bf16.msra.mxu1 %v10929_v5  ;;  %v14505_v49 = vld [vmem:[#allocation10_spill] sm:$0xff]  ;;  %v14513_v5 = vld [vmem:[#allocation19_spill] sm:$0xff]  ;;  %14537 = vst [vmem:[#allocation11_spill] sm:$0xff] %v12889_v48 }
 0x21a   : > { %10934 = vmatprep.subr.bf16.mxu1 %v10933_v60 }
 0x21c   : > { %9961 = vmatmul.mubr.msk.f32.gmra.mrb[22].mxu1 %vm318_vm4, %v12204_v53  ;;  %v14506_v53 = vld [vmem:[#allocation13_spill] sm:$0xff] }
 0x21d   : > { %9963 = vmatprep.mubr.msk.f32.mxu1 %vm318_vm4, %v12218_v8  ;;  %10936 = vmatpush3.bf16.msra.mxu1 %v10933_v60  ;;  %v14507_v8 = vld [vmem:[#allocation12_spill] sm:$0xff]  ;;  %v14516_v60 = vld [vmem:[#allocation22_spill] sm:$0xff] }
 0x21e   : > { %10938 = vmatprep.subr.bf16.mxu1 %v10937_v17 }
 0x220   : > { %9964 = vmatmul.mubr.msk.f32.gmra.mrb[24].mxu1 %vm318_vm4, %v12225_v11  ;;  %v14508_v11 = vld [vmem:[#allocation14_spill] sm:$0xff] }
 0x221   : > { %9966 = vmatprep.mubr.msk.f32.mxu1 %vm318_vm4, %v12233_v19  ;;  %v12793_v19 = vld [vmem:[#allocation2 + $0x181] sm:$0xff] }
 0x224   : > { %9967 = vmatmul.mubr.msk.f32.gmra.mrb[26].mxu1 %vm318_vm4, %v12238_v20  ;;  %v12797_v20 = vld [vmem:[#allocation2 + $0x189] sm:$0xff] }
 0x225   : > { %9969 = vmatprep.mubr.msk.f32.mxu1 %vm318_vm4, %v12242_v21  ;;  %v3193_v21 = vld [vmem:[%s14339_s3 + $0x190] sm:$0xff] }
 0x228   : > { %9970 = vmatmul.mubr.msk.f32.gmra.mrb[28].mxu1 %vm318_vm4, %v12246_v22  ;;  %v3194_v22 = vld [vmem:[%s14339_s3 + $0x198] sm:$0xff] }
 0x229   : > { %9972 = vmatprep.mubr.msk.f32.mxu1 %vm318_vm4, %v12250_v23  ;;  %v14509_v23 = vld [vmem:[#allocation15_spill] sm:$0xff] }
 0x22c   : > { %9973 = vmatmul.mubr.msk.f32.gmra.mrb[30].mxu1 %vm318_vm4, %v12256_v25  ;;  %v3195_v25 = vld [vmem:[%s14339_s3 + $0x1a0] sm:$0xff] }
 0x22d   : > { %9975 = vmatprep.mubr.msk.f32.mxu1 %vm318_vm4, %v12252_v24  ;;  %v10941_v24 = vpack.c.bf16 %v3194_v22, %v3193_v21  ;;  %v14526_v21 = vld [vmem:[#allocation32_spill] sm:$0xff]  ;;  %v14527_v22 = vld [vmem:[#allocation33_spill] sm:$0xff] }
 0x230   : > { %9976 = vmatmul.mubr.msk.f32.gmra.mrb[32].mxu1 %vm318_vm4, %v12264_v27  ;;  %v14510_v27 = vld [vmem:[#allocation16_spill] sm:$0xff] }
 0x231   : > { %9978 = vmatprep.mubr.msk.f32.mxu1 %vm318_vm4, %v12262_v26  ;;  %v3196_v26 = vld [vmem:[%s14339_s3 + $0x1a8] sm:$0xff] }
 0x234   : > { %9979 = vmatmul.mubr.msk.f32.gmra.mrb[34].mxu1 %vm318_vm4, %v12272_v29  ;;  %v3197_v29 = vld [vmem:[%s14339_s3 + $0x1b0] sm:$0xff] }
 0x235   : > { %9981 = vmatprep.mubr.msk.f32.mxu1 %vm318_vm4, %v12270_v28  ;;  %v10945_v28 = vpack.c.bf16 %v3196_v26, %v3195_v25  ;;  %v14530_v25 = vld [vmem:[#allocation36_spill] sm:$0xff]  ;;  %v14531_v26 = vld [vmem:[#allocation37_spill] sm:$0xff] }
 0x238   : > { %9982 = vmatmul.mubr.msk.f32.gmra.mrb[36].mxu1 %vm318_vm4, %v12280_v32  ;;  %v14511_v32 = vld [vmem:[#allocation17_spill] sm:$0xff] }
 0x239   : > { %9984 = vmatprep.mubr.msk.f32.mxu1 %vm318_vm4, %v12278_v30  ;;  %v3198_v30 = vld [vmem:[%s14339_s3 + $0x1b8] sm:$0xff] }
 0x23c   : > { %9985 = vmatmul.mubr.msk.f32.gmra.mrb[38].mxu1 %vm318_vm4, %v12288_v34  ;;  %v10949_v34 = vpack.c.bf16 %v3198_v30, %v3197_v29  ;;  %v14534_v29 = vld [vmem:[#allocation40_spill] sm:$0xff]  ;;  %v14535_v30 = vld [vmem:[#allocation41_spill] sm:$0xff] }
 0x23d   : > { %9987 = vmatprep.mubr.msk.f32.mxu1 %vm318_vm4, %v14503_v31  ;;  %v14520_v31 = vld [vmem:[#allocation26_spill] sm:$0xff] }
 0x240   : > { %9988 = vmatmul.mubr.msk.f32.gmra.mrb[40].mxu1 %vm318_vm4, %v14504_v35  ;;  %v14521_v35 = vld [vmem:[#allocation27_spill] sm:$0xff] }
 0x241   : > { %9990 = vmatprep.mubr.msk.f32.mxu1 %vm318_vm4, %v14505_v49  ;;  %v14522_v49 = vld [vmem:[#allocation28_spill] sm:$0xff] }
 0x244   : > { %9991 = vmatmul.mubr.msk.f32.gmra.mrb[42].mxu1 %vm318_vm4, %v14506_v53  ;;  %v14523_v53 = vld [vmem:[#allocation29_spill] sm:$0xff] }
 0x245   : > { %9993 = vmatprep.mubr.msk.f32.mxu1 %vm318_vm4, %v14507_v8  ;;  %v14524_v8 = vld [vmem:[#allocation30_spill] sm:$0xff] }
 0x248   : > { %9994 = vmatmul.mubr.msk.f32.gmra.mrb[44].mxu1 %vm318_vm4, %v14508_v11  ;;  %v14525_v11 = vld [vmem:[#allocation31_spill] sm:$0xff] }
 0x249   : > { %9996 = vmatprep.mubr.msk.f32.mxu1 %vm318_vm4, %v12793_v19 }
 0x24c   : > { %9997 = vmatmul.mubr.msk.f32.gmra.mrb[46].mxu1 %vm318_vm4, %v12797_v20 }
 0x24d   : > { %10015 = vmatprep.mubr.msk.f32.mxu1 %vm318_vm4, %v14509_v23  ;;  %v14528_v23 = vld [vmem:[#allocation34_spill] sm:$0xff] }
 0x250   : > { %10016 = vmatmul.mubr.msk.f32.vlgmr.msra.gmra.mrb[16].mxu1 %vm318_vm4, %v14510_v27  ;;  %v14532_v27 = vld [vmem:[#allocation38_spill] sm:$0xff] }
 0x251   : > { %10940 = vmatpush3.bf16.msra.mxu1 %v10937_v17  ;;  %10018 = vmatprep.mubr.msk.f32.mxu1 %vm318_vm4, %v12499_v41  ;;  %v14519_v17 = vld [vmem:[#allocation25_spill] sm:$0xff] }
 0x252   : > { %10942 = vmatprep.subr.bf16.mxu1 %v10941_v24 }
 0x254   : > { %10019 = vmatmul.mubr.msk.f32.gmra.mrb[18].mxu1 %vm318_vm4, %v14511_v32 }
 0x255   : > { %10021 = vmatprep.mubr.msk.f32.mxu1 %vm318_vm4, %v12513_v15  ;;  %10944 = vmatpush3.bf16.msra.mxu1 %v10941_v24  ;;  %v14529_v24 = vld [vmem:[#allocation35_spill] sm:$0xff] }
 0x256   : > { %10946 = vmatprep.subr.bf16.mxu1 %v10945_v28 }
 0x258   : > { %10022 = vmatmul.mubr.msk.f32.gmra.mrb[20].mxu1 %vm318_vm4, %v12517_v38 }
 0x259   : > { %10024 = vmatprep.mubr.msk.f32.mxu1 %vm318_vm4, %v14512_v51  ;;  %10948 = vmatpush3.bf16.msra.mxu1 %v10945_v28  ;;  %v14533_v28 = vld [vmem:[#allocation39_spill] sm:$0xff] }
 0x25a   : > { %10950 = vmatprep.subr.bf16.mxu1 %v10949_v34 }
 0x25c   : > { %10025 = vmatmul.mubr.msk.f32.gmra.mrb[22].mxu1 %vm318_vm4, %v14513_v5 }
 0x25d   : > { %10027 = vmatprep.mubr.msk.f32.mxu1 %vm318_vm4, %v14514_v56  ;;  %10952 = vmatpush3.bf16.msra.mxu1 %v10949_v34  ;;  %v12885_v34 = vld [vmem:[#allocation2 + $0x182] sm:$0xff] }
 0x25e   : > { %10954 = vmatprep.subr.bf16.mxu1 %v10953_v33  ;;  %14536 = vst [vmem:[#allocation9_spill] sm:$0xff] %v12885_v34 }
 0x260   : > { %10028 = vmatmul.mubr.msk.f32.gmra.mrb[24].mxu1 %vm318_vm4, %v14515_v36 }
 0x261   : > { %10030 = vmatprep.mubr.msk.f32.mxu1 %vm318_vm4, %v14516_v60 }
 0x264   : > { %10031 = vmatmul.mubr.msk.f32.gmra.mrb[26].mxu1 %vm318_vm4, %v14517_v13 }
 0x265   : > { %10033 = vmatprep.mubr.msk.f32.mxu1 %vm318_vm4, %v14518_v10 }
 0x268   : > { %10034 = vmatmul.mubr.msk.f32.gmra.mrb[28].mxu1 %vm318_vm4, %v14519_v17 }
 0x269   : > { %10036 = vmatprep.mubr.msk.f32.mxu1 %vm318_vm4, %v14520_v31 }
 0x26c   : > { %10037 = vmatmul.mubr.msk.f32.gmra.mrb[30].mxu1 %vm318_vm4, %v14521_v35 }
 0x26d   : > { %10039 = vmatprep.mubr.msk.f32.mxu1 %vm318_vm4, %v14522_v49 }
 0x270   : > { %10040 = vmatmul.mubr.msk.f32.gmra.mrb[32].mxu1 %vm318_vm4, %v14523_v53 }
 0x271   : > { %10042 = vmatprep.mubr.msk.f32.mxu1 %vm318_vm4, %v14524_v8 }
 0x274   : > { %10043 = vmatmul.mubr.msk.f32.gmra.mrb[34].mxu1 %vm318_vm4, %v14525_v11 }
 0x275   : > { %10045 = vmatprep.mubr.msk.f32.mxu1 %vm318_vm4, %v14526_v21 }
 0x278   : > { %10046 = vmatmul.mubr.msk.f32.gmra.mrb[36].mxu1 %vm318_vm4, %v14527_v22 }
 0x279   : > { %10048 = vmatprep.mubr.msk.f32.mxu1 %vm318_vm4, %v14528_v23 }
 0x27c   : > { %10049 = vmatmul.mubr.msk.f32.gmra.mrb[38].mxu1 %vm318_vm4, %v14529_v24 }
 0x27d   : > { %10051 = vmatprep.mubr.msk.f32.mxu1 %vm318_vm4, %v14530_v25 }
 0x280   : > { %10052 = vmatmul.mubr.msk.f32.gmra.mrb[40].mxu1 %vm318_vm4, %v14531_v26 }
 0x281   : > { %10054 = vmatprep.mubr.msk.f32.mxu1 %vm318_vm4, %v14532_v27 }
 0x284   : > { %10055 = vmatmul.mubr.msk.f32.gmra.mrb[42].mxu1 %vm318_vm4, %v14533_v28  ;;  %v3587_v28 = vld [vmem:[%s14339_s3 + $0x1d8] sm:$0xff] }
 0x285   : > { %10057 = vmatprep.mubr.msk.f32.mxu1 %vm318_vm4, %v14534_v29  ;;  %v3589_v29 = vld [vmem:[%s14339_s3 + $0x1e8] sm:$0xff] }
 0x288   : > { %10058 = vmatmul.mubr.msk.f32.gmra.mrb[44].mxu1 %vm318_vm4, %v14535_v30  ;;  %v10957_v30 = vpack.c.bf16 %v3587_v28, %v3586_v62  ;;  %v3591_v28 = vld [vmem:[%s14339_s3 + $0x1f8] sm:$0xff]  ;;  %v3562_v62 = vld [vmem:[#allocation2 + $0xa9] sm:$0xff] }
 0x289   : > { %10060 = vmatprep.mubr.msk.f32.mxu1 %vm318_vm4, %v12885_v34  ;;  %v3588_v34 = vld [vmem:[%s14339_s3 + $0x1e0] sm:$0xff] }
 0x28c   : > { %10061 = vmatmul.mubr.msk.f32.gmra.mrb[46].mxu1 %vm318_vm4, %v12889_v48  ;;  %v10961_v48 = vpack.c.bf16 %v3589_v29, %v3588_v34  ;;  %v3558_v29 = vld [vmem:[#allocation2 + $0x79] sm:$0xff]  ;;  %v3560_v34 = vld [vmem:[#allocation2 + $0x91] sm:$0xff] }
 0x28d   : > { %10079 = vmatprep.mubr.msk.f32.mxu1 %vm318_vm4, %v12343_v55  ;;  %v3590_v55 = vld [vmem:[%s14339_s3 + $0x1f0] sm:$0xff] }
 0x290   : > { %10080 = vmatmul.mubr.msk.f32.vlgmr.msra.gmra.mrb[16].mxu1 %vm318_vm4, %v12347_v57  ;;  %v10965_v57 = vpack.c.bf16 %v3591_v28, %v3590_v55  ;;  %v3563_v55 = vld [vmem:[#allocation2 + $0xb1] sm:$0xff]  ;;  %v3564_v28 = vld [vmem:[#allocation2 + $0xc1] sm:$0xff] }
 0x291   : > { %10956 = vmatpush3.bf16.msra.mxu1 %v10953_v33  ;;  %10082 = vmatprep.mubr.msk.f32.mxu1 %vm318_vm4, %v12357_v61  ;;  %v3977_v61 = vld [vmem:[%s14339_s3 + $0x200] sm:$0xff]  ;;  %v3978_v33 = vld [vmem:[%s14339_s3 + $0x208] sm:$0xff] }
 0x292   : > { %10958 = vmatprep.subr.bf16.mxu1 %v10957_v30 }
 0x294   : > { %10083 = vmatmul.mubr.msk.f32.gmra.mrb[18].mxu1 %vm318_vm4, %v12363_v63  ;;  %v10969_v63 = vpack.c.bf16 %v3978_v33, %v3977_v61  ;;  %v3566_v61 = vld [vmem:[#allocation2 + $0xd9] sm:$0xff]  ;;  %v3567_v33 = vld [vmem:[#allocation2 + $0xe1] sm:$0xff] }
 0x295   : > { %10085 = vmatprep.mubr.msk.f32.mxu1 %vm318_vm4, %v12367_v0  ;;  %10960 = vmatpush3.bf16.msra.mxu1 %v10957_v30  ;;  %v3189_v0 = vld [vmem:[#allocation2 + $0x198] sm:$0xff]  ;;  %v3559_v30 = vld [vmem:[#allocation2 + $0x81] sm:$0xff] }
 0x296   : > { %10962 = vmatprep.subr.bf16.mxu1 %v10961_v48 }
 0x298   : > { %10086 = vmatmul.mubr.msk.f32.gmra.mrb[20].mxu1 %vm318_vm4, %v12374_v9  ;;  %v3190_v9 = vld [vmem:[#allocation2 + $0x1a0] sm:$0xff] }
 0x299   : > { %10088 = vmatprep.mubr.msk.f32.mxu1 %vm318_vm4, %v12379_v12  ;;  %10964 = vmatpush3.bf16.msra.mxu1 %v10961_v48  ;;  %v3552_v12 = vld [vmem:[#allocation2 + $0x31] sm:$0xff]  ;;  %v3561_v48 = vld [vmem:[#allocation2 + $0x99] sm:$0xff] }
 0x29a   : > { %10966 = vmatprep.subr.bf16.mxu1 %v10965_v57 }
 0x29c   : > { %10089 = vmatmul.mubr.msk.f32.gmra.mrb[22].mxu1 %vm318_vm4, %v12385_v16  ;;  %v3979_v16 = vld [vmem:[%s14339_s3 + $0x210] sm:$0xff] }
 0x29d   : > { %10091 = vmatprep.mubr.msk.f32.mxu1 %vm318_vm4, %v12390_v18  ;;  %10968 = vmatpush3.bf16.msra.mxu1 %v10965_v57  ;;  %v3980_v18 = vld [vmem:[%s14339_s3 + $0x218] sm:$0xff]  ;;  %v3565_v57 = vld [vmem:[#allocation2 + $0xc9] sm:$0xff] }
 0x29e   : > { %10970 = vmatprep.subr.bf16.mxu1 %v10969_v63 }
 0x2a0   : > { %10092 = vmatmul.mubr.msk.f32.gmra.mrb[24].mxu1 %vm318_vm4, %v12394_v7  ;;  %v4579_v7 = vld [vmem:[%s14341_s5 + $0x40] sm:$0xff] }
 0x2a1   : > { %10094 = vmatprep.mubr.msk.f32.mxu1 %vm318_vm4, %v12398_v40  ;;  %v4580_v40 = vld [vmem:[%s14341_s5 + $0x48] sm:$0xff] }
 0x2a4   : > { %10095 = vmatmul.mubr.msk.f32.gmra.mrb[26].mxu1 %vm318_vm4, %v12402_v42  ;;  %v4581_v42 = vld [vmem:[%s14341_s5 + $0x50] sm:$0xff] }
 0x2a5   : > { %10097 = vmatprep.mubr.msk.f32.mxu1 %vm318_vm4, %v12406_v43  ;;  %v10985_v43 = vpack.c.bf16 %v4580_v40, %v4579_v7  ;;  %v3574_v7 = vld [vmem:[#allocation2 + $0x139] sm:$0xff]  ;;  %v3575_v40 = vld [vmem:[#allocation2 + $0x141] sm:$0xff] }
 0x2a7   : > { %10986 = vmatprep.subr.bf16.mxu0 %v10985_v43 }
 0x2a8   : > { %10098 = vmatmul.mubr.msk.f32.gmra.mrb[28].mxu1 %vm318_vm4, %v12410_v44  ;;  %v4582_v44 = vld [vmem:[%s14341_s5 + $0x58] sm:$0xff]  ;;  %10988 = vmatpush3.bf16.msra.mxu0 %v10985_v43 }
 0x2a9   : > { %10100 = vmatprep.mubr.msk.f32.mxu1 %vm318_vm4, %v12414_v45  ;;  %v3553_v45 = vld [vmem:[#allocation2 + $0x39] sm:$0xff] }
 0x2aa   : > { %v3577_v43 = vld [vmem:[#allocation2 + $0x159] sm:$0xff] }
 0x2ac   : > { %10101 = vmatmul.mubr.msk.f32.gmra.mrb[30].mxu1 %vm318_vm4, %v12418_v46  ;;  %v10973_v46 = vpack.c.bf16 %v3980_v18, %v3979_v16  ;;  %v3572_v16 = vld [vmem:[#allocation2 + $0x121] sm:$0xff]  ;;  %v3573_v18 = vld [vmem:[#allocation2 + $0x129] sm:$0xff] }
 0x2ad   : > { %10103 = vmatprep.mubr.msk.f32.mxu1 %vm318_vm4, %v12422_v47  ;;  %v3981_v47 = vld [vmem:[%s14339_s3 + $0x220] sm:$0xff] }
 0x2b0   : > { %10104 = vmatmul.mubr.msk.f32.gmra.mrb[32].mxu1 %vm318_vm4, %v12426_v50  ;;  %v10989_v50 = vpack.c.bf16 %v4582_v44, %v4581_v42  ;;  %v3576_v42 = vld [vmem:[#allocation2 + $0x151] sm:$0xff]  ;;  %v3578_v44 = vld [vmem:[#allocation2 + $0x169] sm:$0xff] }
 0x2b1   : > { %10106 = vmatprep.mubr.msk.f32.mxu1 %vm318_vm4, %v12430_v52  ;;  %v3982_v52 = vld [vmem:[%s14339_s3 + $0x228] sm:$0xff] }
 0x2b2   : > { %10990 = vmatprep.subr.bf16.mxu0 %v10989_v50 }
 0x2b3   : > { %10992 = vmatpush3.bf16.msra.mxu0 %v10989_v50  ;;  %v13155_v50 = vld [vmem:[%s14340_s4] ss:$0 sm:$0xff] }
 0x2b4   : > { %10107 = vmatmul.mubr.msk.f32.gmra.mrb[34].mxu1 %vm318_vm4, %v12434_v54  ;;  %v4583_v54 = vld [vmem:[%s14341_s5 + $0x60] sm:$0xff] }
 0x2b5   : > { %10109 = vmatprep.mubr.msk.f32.mxu1 %vm318_vm4, %v12438_v4  ;;  %v4584_v4 = vld [vmem:[%s14341_s5 + $0x68] sm:$0xff] }
 0x2b8   : > { %10110 = vmatmul.mubr.msk.f32.gmra.mrb[36].mxu1 %vm318_vm4, %v12442_v58  ;;  %v3554_v58 = vld [vmem:[#allocation2 + $0x49] sm:$0xff] }
 0x2b9   : > { %10112 = vmatprep.mubr.msk.f32.mxu1 %vm318_vm4, %v12446_v59  ;;  %v10977_v59 = vpack.c.bf16 %v3982_v52, %v3981_v47  ;;  %v3583_v47 = vld [vmem:[#allocation2 + $0x1a1] sm:$0xff] }
 0x2bc   : > { %10113 = vmatmul.mubr.msk.f32.gmra.mrb[38].mxu1 %vm318_vm4, %v12450_v1  ;;  %v10993_v1 = vpack.c.bf16 %v4584_v4, %v4583_v54  ;;  %v13157_v54 = vstv %s8569_s24  ;;  %s8866_s24 = sshll.u32 %s11854_s9, 12 }
 0x2bd   : > { %10115 = vmatprep.mubr.msk.f32.mxu1 %vm318_vm4, %v12454_v2  ;;  %v3555_v2 = vld [vmem:[#allocation2 + $0x51] sm:$0xff]  ;;  %s14285_s9 = scalar_lea.hbm %s14344_s8, %s8866_s24 }
 0x2be   : > { %10994 = vmatprep.subr.bf16.mxu0 %v10993_v1 }
 0x2bf   : > { %10996 = vmatpush3.bf16.msra.mxu0 %v10993_v1 }
 0x2c0   : > { %10116 = vmatmul.mubr.msk.f32.gmra.mrb[40].mxu1 %vm318_vm4, %v12458_v3  ;;  %v3983_v3 = vld [vmem:[%s14339_s3 + $0x230] sm:$0xff] }
 0x2c1   : > { %10118 = vmatprep.mubr.msk.f32.mxu1 %vm318_vm4, %v12462_v6  ;;  %v3984_v6 = vld [vmem:[%s14339_s3 + $0x238] sm:$0xff] }
 0x2c4   : > { %10119 = vmatmul.mubr.msk.f32.gmra.mrb[42].mxu1 %vm318_vm4, %v12466_v14  ;;  %v3556_v14 = vld [vmem:[#allocation2 + $0x61] sm:$0xff] }
 0x2c5   : > { %10121 = vmatprep.mubr.msk.f32.mxu1 %vm318_vm4, %v12701_v39  ;;  %v10981_v39 = vpack.c.bf16 %v3984_v6, %v3983_v3 }
 0x2c8   : > { %10122 = vmatmul.mubr.msk.f32.gmra.mrb[44].mxu1 %vm318_vm4, %v12705_v37  ;;  %v3557_v37 = vld [vmem:[#allocation2 + $0x69] sm:$0xff] }
 0x2c9   : > { %10124 = vmatprep.mubr.msk.f32.mxu1 %vm318_vm4, %v3189_v0  ;;  %v3569_v0 = vld [vmem:[#allocation2 + $0xf9] sm:$0xff] }
 0x2cc   : > { %10125 = vmatmul.mubr.msk.f32.gmra.mrb[46].mxu1 %vm318_vm4, %v3190_v9  ;;  %v3570_v9 = vld [vmem:[#allocation2 + $0x109] sm:$0xff] }
 0x2cd   : > { %10143 = vmatprep.mubr.msk.f32.mxu1 %vm318_vm4, %v3552_v12  ;;  %v3571_v12 = vld [vmem:[#allocation2 + $0x111] sm:$0xff] }
 0x2d0   : > { %10144 = vmatmul.mubr.msk.f32.vlgmr.msra.gmra.mrb[16].mxu1 %vm318_vm4, %v3553_v45  ;;  %v3579_v45 = vld [vmem:[#allocation2 + $0x171] sm:$0xff] }
 0x2d1   : > { %10972 = vmatpush3.bf16.msra.mxu1 %v10969_v63  ;;  %10146 = vmatprep.mubr.msk.f32.mxu1 %vm318_vm4, %v3554_v58  ;;  %v3568_v63 = vld [vmem:[#allocation2 + $0xf1] sm:$0xff] }
 0x2d2   : > { %10974 = vmatprep.subr.bf16.mxu1 %v10973_v46 }
 0x2d4   : > { %10147 = vmatmul.mubr.msk.f32.gmra.mrb[18].mxu1 %vm318_vm4, %v3555_v2 }
 0x2d5   : > { %10149 = vmatprep.mubr.msk.f32.mxu1 %vm318_vm4, %v3556_v14  ;;  %10976 = vmatpush3.bf16.msra.mxu1 %v10973_v46  ;;  %v3582_v46 = vld [vmem:[#allocation2 + $0x199] sm:$0xff] }
 0x2d6   : > { %10978 = vmatprep.subr.bf16.mxu1 %v10977_v59 }
 0x2d8   : > { %10150 = vmatmul.mubr.msk.f32.gmra.mrb[20].mxu1 %vm318_vm4, %v3557_v37 }
 0x2d9   : > { %10152 = vmatprep.mubr.msk.f32.mxu1 %vm318_vm4, %v3558_v29  ;;  %10980 = vmatpush3.bf16.msra.mxu1 %v10977_v59 }
 0x2da   : > { %10982 = vmatprep.subr.bf16.mxu1 %v10981_v39 }
 0x2dc   : > { %10153 = vmatmul.mubr.msk.f32.gmra.mrb[22].mxu1 %vm318_vm4, %v3559_v30 }
 0x2dd   : > { %10155 = vmatprep.mubr.msk.f32.mxu1 %vm318_vm4, %v3560_v34  ;;  %10984 = vmatpush3.bf16.msra.mxu1 %v10981_v39 }
 0x2e0   : > { %10156 = vmatmul.mubr.msk.f32.gmra.mrb[24].mxu1 %vm318_vm4, %v3561_v48 }
 0x2e1   : > { %10158 = vmatprep.mubr.msk.f32.mxu1 %vm318_vm4, %v3562_v62 }
 0x2e4   : > { %10159 = vmatmul.mubr.msk.f32.gmra.mrb[26].mxu1 %vm318_vm4, %v3563_v55 }
 0x2e5   : > { %10161 = vmatprep.mubr.msk.f32.mxu1 %vm318_vm4, %v3564_v28 }
 0x2e8   : > { %10162 = vmatmul.mubr.msk.f32.gmra.mrb[28].mxu1 %vm318_vm4, %v3565_v57 }
 0x2e9   : > { %10164 = vmatprep.mubr.msk.f32.mxu1 %vm318_vm4, %v3566_v61 }
 0x2ec   : > { %10165 = vmatmul.mubr.msk.f32.gmra.mrb[30].mxu1 %vm318_vm4, %v3567_v33 }
 0x2ed   : > { %10167 = vmatprep.mubr.msk.f32.mxu1 %vm318_vm4, %v3568_v63 }
 0x2f0   : > { %10168 = vmatmul.mubr.msk.f32.gmra.mrb[32].mxu1 %vm318_vm4, %v3569_v0 }
 0x2f1   : > { %10170 = vmatprep.mubr.msk.f32.mxu1 %vm318_vm4, %v3570_v9 }
 0x2f4   : > { %10171 = vmatmul.mubr.msk.f32.gmra.mrb[34].mxu1 %vm318_vm4, %v3571_v12 }
 0x2f5   : > { %10173 = vmatprep.mubr.msk.f32.mxu1 %vm318_vm4, %v3572_v16 }
 0x2f8   : > { %10174 = vmatmul.mubr.msk.f32.gmra.mrb[36].mxu1 %vm318_vm4, %v3573_v18 }
 0x2f9   : > { %10176 = vmatprep.mubr.msk.f32.mxu1 %vm318_vm4, %v3574_v7 }
 0x2fc   : > { %10177 = vmatmul.mubr.msk.f32.gmra.mrb[38].mxu1 %vm318_vm4, %v3575_v40 }
 0x2fd   : > { %10179 = vmatprep.mubr.msk.f32.mxu1 %vm318_vm4, %v3576_v42 }
 0x300   : > { %10180 = vmatmul.mubr.msk.f32.gmra.mrb[40].mxu1 %vm318_vm4, %v3577_v43 }
 0x301   : > { %10182 = vmatprep.mubr.msk.f32.mxu1 %vm318_vm4, %v3578_v44 }
 0x304   : > { %10183 = vmatmul.mubr.msk.f32.gmra.mrb[42].mxu1 %vm318_vm4, %v3579_v45 }
 0x305   : > { %10185 = vmatprep.mubr.msk.f32.mxu1 %vm318_vm4, %v12793_v19  ;;  %v14541_v19 = vld [vmem:[#allocation9_spill] sm:$0xff] }
 0x308   : > { %10186 = vmatmul.mubr.msk.f32.gmra.mrb[44].mxu1 %vm318_vm4, %v12797_v20  ;;  %v3975_v20 = vld [vmem:[#allocation2 + $0x19a] sm:$0xff] }
 0x309   : > { %10188 = vmatprep.mubr.msk.f32.mxu1 %vm318_vm4, %v3582_v46 }
 0x30c   : > { %10189 = vmatmul.mubr.msk.f32.gmra.mrb[46].mxu1 %vm318_vm4, %v3583_v47 }
 0x30d   : > { %10207 = vmatprep.mubr.msk.f32.mxu1 %vm318_vm4, %v12499_v41  ;;  %v14539_v41 = vld [vmem:[#allocation40_spill] sm:$0xff] }
 0x310   : > { %10208 = vmatmul.mubr.msk.f32.vlgmr.msra.gmra.mrb[16].mxu1 %vm318_vm4, %v14511_v32  ;;  %v14542_v32 = vld [vmem:[#allocation11_spill] sm:$0xff] }
 0x311   : > { %10210 = vmatprep.mubr.msk.f32.mxu1 %vm318_vm4, %v12513_v15  ;;  %v14538_v15 = vld [vmem:[#allocation39_spill] sm:$0xff] }
 0x314   : > { %10211 = vmatmul.mubr.msk.f32.gmra.mrb[18].mxu1 %vm318_vm4, %v12517_v38  ;;  %v14540_v38 = vld [vmem:[#allocation41_spill] sm:$0xff] }
 0x315   : > { %10213 = vmatprep.mubr.msk.f32.mxu1 %vm318_vm4, %v14512_v51  ;;  %v3976_v51 = vld [vmem:[#allocation2 + $0x1a2] sm:$0xff] }
 0x318   : > { %10214 = vmatmul.mubr.msk.f32.gmra.mrb[20].mxu1 %vm318_vm4, %v14513_v5  ;;  %v4585_v5 = vld [vmem:[%s14341_s5 + $0x70] sm:$0xff] }
 0x319   : > { %10216 = vmatprep.mubr.msk.f32.mxu1 %vm318_vm4, %v14514_v56  ;;  %v4586_v56 = vld [vmem:[%s14341_s5 + $0x78] sm:$0xff] }
 0x31c   : > { %10217 = vmatmul.mubr.msk.f32.gmra.mrb[22].mxu1 %vm318_vm4, %v14515_v36  ;;  %v10997_v36 = vpack.c.bf16 %v4586_v56, %v4585_v5 }
 0x31d   : > { %10219 = vmatprep.mubr.msk.f32.mxu1 %vm318_vm4, %v14516_v60  ;;  %v4547_v60 = vld [vmem:[#allocation2 + $0x1] sm:$0xff] }
 0x31e   : > { %10998 = vmatprep.subr.bf16.mxu0 %v10997_v36  ;;  %10271 = vmatprep.mubr.msk.f32.mxu0 %vm318_vm4, %v4547_v60 }
 0x31f   : > { %11000 = vmatpush3.bf16.msra.mxu0 %v10997_v36 }
 0x320   : > { %10220 = vmatmul.mubr.msk.f32.gmra.mrb[24].mxu1 %vm318_vm4, %v14517_v13  ;;  %v4539_v13 = vld [vmem:[%s14341_s5] sm:$0xff] }
 0x321   : > { %10222 = vmatprep.mubr.msk.f32.mxu1 %vm318_vm4, %v14518_v10  ;;  %v4540_v10 = vld [vmem:[%s14341_s5 + $0x8] sm:$0xff] }
 0x324   : > { %10223 = vmatmul.mubr.msk.f32.gmra.mrb[26].mxu1 %vm318_vm4, %v14519_v17  ;;  %v11001_v17 = vpack.c.bf16 %v4540_v10, %v4539_v13 }
 0x325   : > { %10225 = vmatprep.mubr.msk.f32.mxu1 %vm318_vm4, %v14520_v31  ;;  %v4548_v31 = vld [vmem:[#allocation2 + $0x9] sm:$0xff] }
 0x326   : > { %11002 = vmatprep.subr.bf16.mxu0 %v11001_v17  ;;  %10272 = vmatmul.mubr.msk.f32.vlgmr.msra.gmra.mrb[16].mxu0 %vm318_vm4, %v4548_v31 }
 0x327   : > { %11004 = vmatpush3.bf16.msra.mxu0 %v11001_v17 }
 0x328   : > { %10226 = vmatmul.mubr.msk.f32.gmra.mrb[28].mxu1 %vm318_vm4, %v14521_v35  ;;  %v4541_v35 = vld [vmem:[%s14341_s5 + $0x10] sm:$0xff] }
 0x329   : > { %10228 = vmatprep.mubr.msk.f32.mxu1 %vm318_vm4, %v14522_v49  ;;  %v4542_v49 = vld [vmem:[%s14341_s5 + $0x18] sm:$0xff] }
 0x32c   : > { %10229 = vmatmul.mubr.msk.f32.gmra.mrb[30].mxu1 %vm318_vm4, %v14523_v53  ;;  %v11005_v53 = vpack.c.bf16 %v4542_v49, %v4541_v35 }
 0x32d   : > { %10231 = vmatprep.mubr.msk.f32.mxu1 %vm318_vm4, %v14524_v8  ;;  %v4543_v8 = vld [vmem:[%s14341_s5 + $0x20] sm:$0xff] }
 0x32e   : > { %11006 = vmatprep.subr.bf16.mxu0 %v11005_v53 }
 0x32f   : > { %11008 = vmatpush3.bf16.msra.mxu0 %v11005_v53 }
 0x330   : > { %10232 = vmatmul.mubr.msk.f32.gmra.mrb[32].mxu1 %vm318_vm4, %v14525_v11  ;;  %v4544_v11 = vld [vmem:[%s14341_s5 + $0x28] sm:$0xff] }
 0x331   : > { %10234 = vmatprep.mubr.msk.f32.mxu1 %vm318_vm4, %v14526_v21  ;;  %v11009_v21 = vpack.c.bf16 %v4544_v11, %v4543_v8 }
 0x333   : > { %11010 = vmatprep.subr.bf16.mxu0 %v11009_v21 }
 0x334   : > { %10235 = vmatmul.mubr.msk.f32.gmra.mrb[34].mxu1 %vm318_vm4, %v14527_v22  ;;  %11012 = vmatpush3.bf16.msra.mxu0 %v11009_v21  ;;  %v4545_v22 = vld [vmem:[%s14341_s5 + $0x30] sm:$0xff] }
 0x335   : > { %10237 = vmatprep.mubr.msk.f32.mxu1 %vm318_vm4, %v14528_v23  ;;  %v4546_v23 = vld [vmem:[%s14341_s5 + $0x38] sm:$0xff] }
 0x338   : > { %10238 = vmatmul.mubr.msk.f32.gmra.mrb[36].mxu1 %vm318_vm4, %v14529_v24  ;;  %v11013_v24 = vpack.c.bf16 %v4546_v23, %v4545_v22 }
 0x339   : > { %10240 = vmatprep.mubr.msk.f32.mxu1 %vm318_vm4, %v14530_v25  ;;  %v5261_v25 = vld [vmem:[%s14341_s5 + $0x80] sm:$0xff] }
 0x33a   : > { %11014 = vmatprep.subr.bf16.mxu0 %v11013_v24 }
 0x33b   : > { %11016 = vmatpush3.bf16.msra.mxu0 %v11013_v24 }
 0x33c   : > { %10241 = vmatmul.mubr.msk.f32.gmra.mrb[38].mxu1 %vm318_vm4, %v14531_v26  ;;  %v5262_v26 = vld [vmem:[%s14341_s5 + $0x88] sm:$0xff] }
 0x33d   : > { %10243 = vmatprep.mubr.msk.f32.mxu1 %vm318_vm4, %v14532_v27  ;;  %v13149_v27 = vpack.c.bf16 %v5262_v26, %v5261_v25 }
 0x33f   : > { %11018 = vmatprep.subr.bf16.mxu0 %v13149_v27 }
 0x340   : > { %10244 = vmatmul.mubr.msk.f32.gmra.mrb[40].mxu1 %vm318_vm4, %v14538_v15 }
 0x341   : > { %10246 = vmatprep.mubr.msk.f32.mxu1 %vm318_vm4, %v14539_v41 }
 0x344   : > { %10247 = vmatmul.mubr.msk.f32.gmra.mrb[42].mxu1 %vm318_vm4, %v14540_v38 }
 0x345   : > { %10249 = vmatprep.mubr.msk.f32.mxu1 %vm318_vm4, %v14541_v19 }
 0x348   : > { %10250 = vmatmul.mubr.msk.f32.gmra.mrb[44].mxu1 %vm318_vm4, %v14542_v32 }
 0x349   : > { %10252 = vmatprep.mubr.msk.f32.mxu1 %vm318_vm4, %v3975_v20 }
 0x34c   : > { %10253 = vmatmul.mubr.msk.f32.gmra.mrb[46].mxu1 %vm318_vm4, %v3976_v51 }
 0x3e3   : > { %v10209_v52 = vpop.f32.mrb[16].mxu1 }
 0x3e4   : > { %v4346_v4 = vadd.f32 %v10209_v52, %v13155_v50  ;;  %v4147_v58 = vpop.f32.mrb[17].mxu1 }
 0x3e5   : > { %v4345_v59 = vadd.f32 %v13155_v50, %v4147_v58 }
 0x3e6   : > { %vm4379_vm9 = vcmp.gt.f32.partialorder %v4346_v4, 0.0  ;;  %v4412_v1 = vmul.f32 %v13157_v54, %v4346_v4 }
 0x3e7   : > { %vm4378_vm10 = vcmp.gt.f32.partialorder %v4345_v59, 0.0  ;;  %v4411_v2 = vmul.f32 %v13157_v54, %v4345_v59  ;;  %v10212_v3 = vpop.f32.mrb[18].mxu1 }
 0x3e8   : > { %v4444_v6 = vsel %vm4379_vm9, %v4346_v4, %v4412_v1  ;;  %v4348_v14 = vadd.f32 %v10212_v3, %v13155_v50  ;;  %v4157_v39 = vpop.f32.mrb[19].mxu1 }
 0x3e9   : > { %4476 = vst.msk [vmem:[#allocation2 + $0x21] sm:$0xff] %vm318_vm4, %v4444_v6  ;;  %v4443_v37 = vsel %vm4378_vm10, %v4345_v59, %v4411_v2  ;;  %v4347_v29 = vadd.f32 %v13155_v50, %v4157_v39 }
 0x3ea   : > { %4475 = vst.msk [vmem:[#allocation2 + $0x19] sm:$0xff] %vm318_vm4, %v4443_v37  ;;  %vm4381_vm11 = vcmp.gt.f32.partialorder %v4348_v14, 0.0  ;;  %v4414_v30 = vmul.f32 %v13157_v54, %v4348_v14 }
 0x3eb   : > { %vm4380_vm12 = vcmp.gt.f32.partialorder %v4347_v29, 0.0  ;;  %v4413_v34 = vmul.f32 %v13157_v54, %v4347_v29  ;;  %v10215_v48 = vpop.f32.mrb[20].mxu1 }
 0x3ec   : > { %v4446_v62 = vsel %vm4381_vm11, %v4348_v14, %v4414_v30  ;;  %v4350_v55 = vadd.f32 %v10215_v48, %v13155_v50  ;;  %v4167_v28 = vpop.f32.mrb[21].mxu1 }
 0x3ed   : > { %4478 = vst.msk [vmem:[#allocation2 + $0x39] sm:$0xff] %vm318_vm4, %v4446_v62  ;;  %v4445_v57 = vsel %vm4380_vm12, %v4347_v29, %v4413_v34  ;;  %v4349_v61 = vadd.f32 %v13155_v50, %v4167_v28 }
 0x3ee   : > { %4477 = vst.msk [vmem:[#allocation2 + $0x31] sm:$0xff] %vm318_vm4, %v4445_v57  ;;  %vm4383_vm13 = vcmp.gt.f32.partialorder %v4350_v55, 0.0  ;;  %v4416_v33 = vmul.f32 %v13157_v54, %v4350_v55 }
 0x3ef   : > { %vm4382_vm14 = vcmp.gt.f32.partialorder %v4349_v61, 0.0  ;;  %v4415_v63 = vmul.f32 %v13157_v54, %v4349_v61  ;;  %v10218_v0 = vpop.f32.mrb[22].mxu1 }
 0x3f0   : > { %v4448_v9 = vsel %vm4383_vm13, %v4350_v55, %v4416_v33  ;;  %v4352_v12 = vadd.f32 %v10218_v0, %v13155_v50  ;;  %v4177_v16 = vpop.f32.mrb[23].mxu1  ;;  %v13184_v43 = vld [vmem:[#allocation2 + $0x21] sm:$0xff] }
 0x3f1   : > { %4480 = vst.msk [vmem:[#allocation2 + $0x51] sm:$0xff] %vm318_vm4, %v4448_v9  ;;  %v4447_v18 = vsel %vm4382_vm14, %v4349_v61, %v4415_v63  ;;  %v4351_v7 = vadd.f32 %v13155_v50, %v4177_v16  ;;  %v13178_v40 = vld [vmem:[#allocation2 + $0x19] sm:$0xff] }
 0x3f2   : > { %4479 = vst.msk [vmem:[#allocation2 + $0x49] sm:$0xff] %vm318_vm4, %v4447_v18  ;;  %vm4385_vm15 = vcmp.gt.f32.partialorder %v4352_v12, 0.0  ;;  %v4418_v42 = vmul.f32 %v13157_v54, %v4352_v12  ;;  %10274 = vmatprep.mubr.msk.f32.mxu0 %vm318_vm4, %v13178_v40 }
 0x3f3   : > { %vm4384_vm0 = vcmp.gt.f32.partialorder %v4351_v7, 0.0  ;;  %v4417_v44 = vmul.f32 %v13157_v54, %v4351_v7  ;;  %v10221_v45 = vpop.f32.mrb[24].mxu1  ;;  %10275 = vmatmul.mubr.msk.f32.gmra.mrb[18].mxu0 %vm318_vm4, %v13184_v43 }
 0x3f4   : > { %v4450_v46 = vsel %vm4385_vm15, %v4352_v12, %v4418_v42  ;;  %v4354_v47 = vadd.f32 %v10221_v45, %v13155_v50  ;;  %v4187_v15 = vpop.f32.mrb[25].mxu1  ;;  %v13198_v32 = vld [vmem:[#allocation2 + $0x39] sm:$0xff] }
 0x3f5   : > { %4482 = vst.msk [vmem:[#allocation2 + $0x69] sm:$0xff] %vm318_vm4, %v4450_v46  ;;  %v4449_v41 = vsel %vm4384_vm0, %v4351_v7, %v4417_v44  ;;  %v4353_v38 = vadd.f32 %v13155_v50, %v4187_v15  ;;  %v13192_v19 = vld [vmem:[#allocation2 + $0x31] sm:$0xff] }
 0x3f6   : > { %4481 = vst.msk [vmem:[#allocation2 + $0x61] sm:$0xff] %vm318_vm4, %v4449_v41  ;;  %vm4387_vm1 = vcmp.gt.f32.partialorder %v4354_v47, 0.0  ;;  %v4420_v20 = vmul.f32 %v13157_v54, %v4354_v47  ;;  %10277 = vmatprep.mubr.msk.f32.mxu0 %vm318_vm4, %v13192_v19 }
 0x3f7   : > { %vm4386_vm2 = vcmp.gt.f32.partialorder %v4353_v38, 0.0  ;;  %v4419_v51 = vmul.f32 %v13157_v54, %v4353_v38  ;;  %v10224_v5 = vpop.f32.mrb[26].mxu1  ;;  %10278 = vmatmul.mubr.msk.f32.gmra.mrb[20].mxu0 %vm318_vm4, %v13198_v32 }
 0x3f8   : > { %v4452_v56 = vsel %vm4387_vm1, %v4354_v47, %v4420_v20  ;;  %v4356_v36 = vadd.f32 %v10224_v5, %v13155_v50  ;;  %v4197_v60 = vpop.f32.mrb[27].mxu1  ;;  %v13212_v35 = vld [vmem:[#allocation2 + $0x51] sm:$0xff] }
 0x3f9   : > { %4484 = vst.msk [vmem:[#allocation2 + $0x81] sm:$0xff] %vm318_vm4, %v4452_v56  ;;  %v4451_v13 = vsel %vm4386_vm2, %v4353_v38, %v4419_v51  ;;  %v4355_v10 = vadd.f32 %v13155_v50, %v4197_v60  ;;  %v13206_v17 = vld [vmem:[#allocation2 + $0x49] sm:$0xff] }
 0x3fa   : > { %4483 = vst.msk [vmem:[#allocation2 + $0x79] sm:$0xff] %vm318_vm4, %v4451_v13  ;;  %vm4389_vm3 = vcmp.gt.f32.partialorder %v4356_v36, 0.0  ;;  %v4422_v31 = vmul.f32 %v13157_v54, %v4356_v36  ;;  %10280 = vmatprep.mubr.msk.f32.mxu0 %vm318_vm4, %v13206_v17 }
 0x3fb   : > { %vm4388_vm5 = vcmp.gt.f32.partialorder %v4355_v10, 0.0  ;;  %v4421_v49 = vmul.f32 %v13157_v54, %v4355_v10  ;;  %v10227_v53 = vpop.f32.mrb[28].mxu1  ;;  %10281 = vmatmul.mubr.msk.f32.gmra.mrb[22].mxu0 %vm318_vm4, %v13212_v35 }
 0x3fc   : > { %v4454_v8 = vsel %vm4389_vm3, %v4356_v36, %v4422_v31  ;;  %v4358_v11 = vadd.f32 %v10227_v53, %v13155_v50  ;;  %v4207_v21 = vpop.f32.mrb[29].mxu1  ;;  %v13226_v26 = vld [vmem:[#allocation2 + $0x69] sm:$0xff] }
 0x3fd   : > { %4486 = vst.msk [vmem:[#allocation2 + $0x99] sm:$0xff] %vm318_vm4, %v4454_v8  ;;  %v4453_v22 = vsel %vm4388_vm5, %v4355_v10, %v4421_v49  ;;  %v4357_v23 = vadd.f32 %v13155_v50, %v4207_v21  ;;  %v13220_v24 = vld [vmem:[#allocation2 + $0x61] sm:$0xff] }
 0x3fe   : > { %4485 = vst.msk [vmem:[#allocation2 + $0x91] sm:$0xff] %vm318_vm4, %v4453_v22  ;;  %vm4391_vm6 = vcmp.gt.f32.partialorder %v4358_v11, 0.0  ;;  %v4424_v25 = vmul.f32 %v13157_v54, %v4358_v11  ;;  %10283 = vmatprep.mubr.msk.f32.mxu0 %vm318_vm4, %v13220_v24 }
 0x3ff   : > { %vm4390_vm7 = vcmp.gt.f32.partialorder %v4357_v23, 0.0  ;;  %v4423_v52 = vmul.f32 %v13157_v54, %v4357_v23  ;;  %v10230_v4 = vpop.f32.mrb[30].mxu1  ;;  %10284 = vmatmul.mubr.msk.f32.gmra.mrb[24].mxu0 %vm318_vm4, %v13226_v26 }
 0x400   : > { %v4456_v58 = vsel %vm4391_vm6, %v4358_v11, %v4424_v25  ;;  %v4360_v59 = vadd.f32 %v10230_v4, %v13155_v50  ;;  %v4217_v1 = vpop.f32.mrb[31].mxu1  ;;  %v13240_v39 = vld [vmem:[#allocation2 + $0x81] sm:$0xff] }
 0x401   : > { %4488 = vst.msk [vmem:[#allocation2 + $0xb1] sm:$0xff] %vm318_vm4, %v4456_v58  ;;  %v4455_v2 = vsel %vm4390_vm7, %v4357_v23, %v4423_v52  ;;  %v4359_v3 = vadd.f32 %v13155_v50, %v4217_v1  ;;  %v13234_v6 = vld [vmem:[#allocation2 + $0x79] sm:$0xff] }
 0x402   : > { %4487 = vst.msk [vmem:[#allocation2 + $0xa9] sm:$0xff] %vm318_vm4, %v4455_v2  ;;  %vm4393_vm8 = vcmp.gt.f32.partialorder %v4360_v59, 0.0  ;;  %v4426_v14 = vmul.f32 %v13157_v54, %v4360_v59  ;;  %10286 = vmatprep.mubr.msk.f32.mxu0 %vm318_vm4, %v13234_v6 }
 0x403   : > { %vm4392_vm9 = vcmp.gt.f32.partialorder %v4359_v3, 0.0  ;;  %v4425_v37 = vmul.f32 %v13157_v54, %v4359_v3  ;;  %v10233_v29 = vpop.f32.mrb[32].mxu1  ;;  %10287 = vmatmul.mubr.msk.f32.gmra.mrb[26].mxu0 %vm318_vm4, %v13240_v39 }
 0x404   : > { %v4458_v30 = vsel %vm4393_vm8, %v4360_v59, %v4426_v14  ;;  %v4362_v34 = vadd.f32 %v10233_v29, %v13155_v50  ;;  %v4227_v48 = vpop.f32.mrb[33].mxu1  ;;  %v13254_v61 = vld [vmem:[#allocation2 + $0x99] sm:$0xff] }
 0x405   : > { %4490 = vst.msk [vmem:[#allocation2 + $0xc9] sm:$0xff] %vm318_vm4, %v4458_v30  ;;  %v4457_v62 = vsel %vm4392_vm9, %v4359_v3, %v4425_v37  ;;  %v4361_v55 = vadd.f32 %v13155_v50, %v4227_v48  ;;  %v13248_v28 = vld [vmem:[#allocation2 + $0x91] sm:$0xff] }
 0x406   : > { %4489 = vst.msk [vmem:[#allocation2 + $0xc1] sm:$0xff] %vm318_vm4, %v4457_v62  ;;  %vm4395_vm10 = vcmp.gt.f32.partialorder %v4362_v34, 0.0  ;;  %v4428_v57 = vmul.f32 %v13157_v54, %v4362_v34  ;;  %10289 = vmatprep.mubr.msk.f32.mxu0 %vm318_vm4, %v13248_v28 }
 0x407   : > { %vm4394_vm11 = vcmp.gt.f32.partialorder %v4361_v55, 0.0  ;;  %v4427_v33 = vmul.f32 %v13157_v54, %v4361_v55  ;;  %v10236_v63 = vpop.f32.mrb[34].mxu1  ;;  %10290 = vmatmul.mubr.msk.f32.gmra.mrb[28].mxu0 %vm318_vm4, %v13254_v61 }
 0x408   : > { %v4460_v0 = vsel %vm4395_vm10, %v4362_v34, %v4428_v57  ;;  %v4364_v9 = vadd.f32 %v10236_v63, %v13155_v50  ;;  %v4237_v12 = vpop.f32.mrb[35].mxu1  ;;  %v13268_v44 = vld [vmem:[#allocation2 + $0xb1] sm:$0xff] }
 0x409   : > { %4492 = vst.msk [vmem:[#allocation2 + $0xe1] sm:$0xff] %vm318_vm4, %v4460_v0  ;;  %v4459_v16 = vsel %vm4394_vm11, %v4361_v55, %v4427_v33  ;;  %v4363_v18 = vadd.f32 %v13155_v50, %v4237_v12  ;;  %v13262_v7 = vld [vmem:[#allocation2 + $0xa9] sm:$0xff] }
 0x40a   : > { %4491 = vst.msk [vmem:[#allocation2 + $0xd9] sm:$0xff] %vm318_vm4, %v4459_v16  ;;  %vm4397_vm12 = vcmp.gt.f32.partialorder %v4364_v9, 0.0  ;;  %v4430_v42 = vmul.f32 %v13157_v54, %v4364_v9  ;;  %10292 = vmatprep.mubr.msk.f32.mxu0 %vm318_vm4, %v13262_v7 }
 0x40b   : > { %vm4396_vm13 = vcmp.gt.f32.partialorder %v4363_v18, 0.0  ;;  %v4429_v45 = vmul.f32 %v13157_v54, %v4363_v18  ;;  %v10239_v46 = vpop.f32.mrb[36].mxu1  ;;  %10293 = vmatmul.mubr.msk.f32.gmra.mrb[30].mxu0 %vm318_vm4, %v13268_v44 }
 0x40c   : > { %v4462_v47 = vsel %vm4397_vm12, %v4364_v9, %v4430_v42  ;;  %v4366_v15 = vadd.f32 %v10239_v46, %v13155_v50  ;;  %v4247_v41 = vpop.f32.mrb[37].mxu1  ;;  %v13282_v56 = vld [vmem:[#allocation2 + $0xc9] sm:$0xff] }
 0x40d   : > { %4494 = vst.msk [vmem:[#allocation2 + $0xf9] sm:$0xff] %vm318_vm4, %v4462_v47  ;;  %v4461_v38 = vsel %vm4396_vm13, %v4363_v18, %v4429_v45  ;;  %v4365_v20 = vadd.f32 %v13155_v50, %v4247_v41  ;;  %v13276_v51 = vld [vmem:[#allocation2 + $0xc1] sm:$0xff] }
 0x40e   : > { %4493 = vst.msk [vmem:[#allocation2 + $0xf1] sm:$0xff] %vm318_vm4, %v4461_v38  ;;  %vm4399_vm14 = vcmp.gt.f32.partialorder %v4366_v15, 0.0  ;;  %v4432_v5 = vmul.f32 %v13157_v54, %v4366_v15  ;;  %10295 = vmatprep.mubr.msk.f32.mxu0 %vm318_vm4, %v13276_v51 }
 0x40f   : > { %vm4398_vm15 = vcmp.gt.f32.partialorder %v4365_v20, 0.0  ;;  %v4431_v36 = vmul.f32 %v13157_v54, %v4365_v20  ;;  %v10242_v60 = vpop.f32.mrb[38].mxu1  ;;  %10296 = vmatmul.mubr.msk.f32.gmra.mrb[32].mxu0 %vm318_vm4, %v13282_v56 }
 0x410   : > { %v4464_v13 = vsel %vm4399_vm14, %v4366_v15, %v4432_v5  ;;  %v4368_v10 = vadd.f32 %v10242_v60, %v13155_v50  ;;  %v4257_v31 = vpop.f32.mrb[39].mxu1  ;;  %v13296_v21 = vld [vmem:[#allocation2 + $0xe1] sm:$0xff] }
 0x411   : > { %4496 = vst.msk [vmem:[#allocation2 + $0x111] sm:$0xff] %vm318_vm4, %v4464_v13  ;;  %v4463_v49 = vsel %vm4398_vm15, %v4365_v20, %v4431_v36  ;;  %v4367_v53 = vadd.f32 %v13155_v50, %v4257_v31  ;;  %v13290_v8 = vld [vmem:[#allocation2 + $0xd9] sm:$0xff] }
 0x412   : > { %4495 = vst.msk [vmem:[#allocation2 + $0x109] sm:$0xff] %vm318_vm4, %v4463_v49  ;;  %vm4401_vm0 = vcmp.gt.f32.partialorder %v4368_v10, 0.0  ;;  %v4434_v11 = vmul.f32 %v13157_v54, %v4368_v10  ;;  %10298 = vmatprep.mubr.msk.f32.mxu0 %vm318_vm4, %v13290_v8 }
 0x413   : > { %vm4400_vm1 = vcmp.gt.f32.partialorder %v4367_v53, 0.0  ;;  %v4433_v22 = vmul.f32 %v13157_v54, %v4367_v53  ;;  %v10245_v23 = vpop.f32.mrb[40].mxu1  ;;  %10299 = vmatmul.mubr.msk.f32.gmra.mrb[34].mxu0 %vm318_vm4, %v13296_v21 }
 0x414   : > { %v4466_v25 = vsel %vm4401_vm0, %v4368_v10, %v4434_v11  ;;  %v4370_v52 = vadd.f32 %v10245_v23, %v13155_v50  ;;  %v4267_v4 = vpop.f32.mrb[41].mxu1  ;;  %v13310_v3 = vld [vmem:[#allocation2 + $0xf9] sm:$0xff] }
 0x415   : > { %4498 = vst.msk [vmem:[#allocation2 + $0x129] sm:$0xff] %vm318_vm4, %v4466_v25  ;;  %v4465_v58 = vsel %vm4400_vm1, %v4367_v53, %v4433_v22  ;;  %v4369_v59 = vadd.f32 %v13155_v50, %v4267_v4  ;;  %v13304_v1 = vld [vmem:[#allocation2 + $0xf1] sm:$0xff]  ;;  %v4507_v23 = vld [vmem:[#allocation2] sm:$0xff] }
 0x416   : > { %4497 = vst.msk [vmem:[#allocation2 + $0x121] sm:$0xff] %vm318_vm4, %v4465_v58  ;;  %vm4403_vm2 = vcmp.gt.f32.partialorder %v4370_v52, 0.0  ;;  %v4436_v2 = vmul.f32 %v13157_v54, %v4370_v52  ;;  %10301 = vmatprep.mubr.msk.f32.mxu0 %vm318_vm4, %v13304_v1  ;;  %v5264_v4 = vld [vmem:[%s14341_s5 + $0x98] sm:$0xff]  ;;  %v4508_v58 = vld [vmem:[#allocation2 + $0x8] sm:$0xff] }
 0x417   : > { %vm4402_vm3 = vcmp.gt.f32.partialorder %v4369_v59, 0.0  ;;  %v4435_v14 = vmul.f32 %v13157_v54, %v4369_v59  ;;  %v10248_v37 = vpop.f32.mrb[42].mxu1  ;;  %10302 = vmatmul.mubr.msk.f32.gmra.mrb[36].mxu0 %vm318_vm4, %v13310_v3 }
 0x418   : > { %v4468_v29 = vsel %vm4403_vm2, %v4370_v52, %v4436_v2  ;;  %v4372_v30 = vadd.f32 %v10248_v37, %v13155_v50  ;;  %v4277_v34 = vpop.f32.mrb[43].mxu1  ;;  %v13324_v33 = vld [vmem:[#allocation2 + $0x111] sm:$0xff]  ;;  %v5265_v2 = vld [vmem:[%s14341_s5 + $0xa0] sm:$0xff] }
 0x419   : > { %4500 = vst.msk [vmem:[#allocation2 + $0x141] sm:$0xff] %vm318_vm4, %v4468_v29  ;;  %v4467_v48 = vsel %vm4402_vm3, %v4369_v59, %v4435_v14  ;;  %v4371_v62 = vadd.f32 %v13155_v50, %v4277_v34  ;;  %v13318_v55 = vld [vmem:[#allocation2 + $0x109] sm:$0xff]  ;;  %v13389_v37 = vld [vmem:[#allocation2 + $0x18] sm:$0xff] }
 0x41a   : > { %4499 = vst.msk [vmem:[#allocation2 + $0x139] sm:$0xff] %vm318_vm4, %v4467_v48  ;;  %vm4405_vm5 = vcmp.gt.f32.partialorder %v4372_v30, 0.0  ;;  %v4438_v57 = vmul.f32 %v13157_v54, %v4372_v30  ;;  %10304 = vmatprep.mubr.msk.f32.mxu0 %vm318_vm4, %v13318_v55  ;;  %v5263_v52 = vld [vmem:[%s14341_s5 + $0x90] sm:$0xff]  ;;  %v5266_v14 = vld [vmem:[%s14341_s5 + $0xa8] sm:$0xff]  ;;  %v5268_v48 = vld [vmem:[%s14341_s5 + $0xb8] sm:$0xff] }
 0x41b   : > { %vm4404_vm6 = vcmp.gt.f32.partialorder %v4371_v62, 0.0  ;;  %v4437_v63 = vmul.f32 %v13157_v54, %v4371_v62  ;;  %v10251_v0 = vpop.f32.mrb[44].mxu1  ;;  %10305 = vmatmul.mubr.msk.f32.gmra.mrb[38].mxu0 %vm318_vm4, %v13324_v33  ;;  %v11021_v59 = vpack.c.bf16 %v5264_v4, %v5263_v52  ;;  %v11025_v29 = vpack.c.bf16 %v5266_v14, %v5265_v2  ;;  %v5267_v34 = vld [vmem:[%s14341_s5 + $0xb0] sm:$0xff] }
 0x41c   : > { %v4470_v9 = vsel %vm4405_vm5, %v4372_v30, %v4438_v57  ;;  %v4374_v12 = vadd.f32 %v10251_v0, %v13155_v50  ;;  %v4287_v16 = vpop.f32.mrb[45].mxu1  ;;  %v13338_v47 = vld [vmem:[#allocation2 + $0x129] sm:$0xff]  ;;  %v13394_v30 = vld [vmem:[#allocation2 + $0x20] sm:$0xff]  ;;  %v13408_v57 = vld [vmem:[#allocation2 + $0x38] sm:$0xff] }
 0x41d   : > { %4502 = vst.msk [vmem:[#allocation2 + $0x159] sm:$0xff] %vm318_vm4, %v4470_v9  ;;  %v4469_v18 = vsel %vm4404_vm6, %v4371_v62, %v4437_v63  ;;  %v4373_v42 = vadd.f32 %v13155_v50, %v4287_v16  ;;  %v13332_v45 = vld [vmem:[#allocation2 + $0x121] sm:$0xff]  ;;  %v13404_v62 = vld [vmem:[#allocation2 + $0x30] sm:$0xff] }
 0x41e   : > { %4501 = vst.msk [vmem:[#allocation2 + $0x151] sm:$0xff] %vm318_vm4, %v4469_v18  ;;  %vm4407_vm7 = vcmp.gt.f32.partialorder %v4374_v12, 0.0  ;;  %v4440_v46 = vmul.f32 %v13157_v54, %v4374_v12  ;;  %10307 = vmatprep.mubr.msk.f32.mxu0 %vm318_vm4, %v13332_v45  ;;  %v5654_v63 = vld [vmem:[%s14341_s5 + $0xc0] sm:$0xff]  ;;  %v5655_v0 = vld [vmem:[%s14341_s5 + $0xc8] sm:$0xff]  ;;  %v13422_v16 = vld [vmem:[#allocation2 + $0x50] sm:$0xff] }
 0x41f   : > { %vm4406_vm8 = vcmp.gt.f32.partialorder %v4373_v42, 0.0  ;;  %v4439_v15 = vmul.f32 %v13157_v54, %v4373_v42  ;;  %v10254_v41 = vpop.f32.mrb[46].mxu1  ;;  %10308 = vmatmul.mubr.msk.f32.gmra.mrb[40].mxu0 %vm318_vm4, %v13338_v47  ;;  %v13418_v9 = vld [vmem:[#allocation2 + $0x48] sm:$0xff]  ;;  %v13426_v18 = vld [vmem:[#allocation2 + $0x60] sm:$0xff]  ;;  %v13486_v52 = vld [vmem:[#allocation2 + $0x110] sm:$0xff] }
 0x420   : > { %v4472_v38 = vsel %vm4407_vm7, %v4374_v12, %v4440_v46  ;;  %v4376_v20 = vadd.f32 %v10254_v41, %v13155_v50  ;;  %v4297_v5 = vpop.f32.mrb[47].mxu1  ;;  %v13352_v31 = vld [vmem:[#allocation2 + $0x141] sm:$0xff]  ;;  %v11033_v12 = vpack.c.bf16 %v5655_v0, %v5654_v63  ;;  %v13434_v46 = vld [vmem:[#allocation2 + $0x78] sm:$0xff]  ;;  %v13442_v41 = vld [vmem:[#allocation2 + $0x90] sm:$0xff] }
 0x421   : > { %4504 = vst.msk [vmem:[#allocation2 + $0x171] sm:$0xff] %vm318_vm4, %v4472_v38  ;;  %v4471_v36 = vsel %vm4406_vm8, %v4373_v42, %v4439_v15  ;;  %v4375_v60 = vadd.f32 %v13155_v50, %v4297_v5  ;;  %v13346_v13 = vld [vmem:[#allocation2 + $0x139] sm:$0xff]  ;;  %14544 = vst [vmem:[#allocation13_spill] sm:$0xff] %v13352_v31  ;;  %v13430_v42 = vld [vmem:[#allocation2 + $0x68] sm:$0xff] }
 0x422   : > { %14543 = vst [vmem:[#allocation10_spill] sm:$0xff] %v13346_v13  ;;  %4503 = vst.msk [vmem:[#allocation2 + $0x169] sm:$0xff] %vm318_vm4, %v4471_v36  ;;  %vm4409_vm9 = vcmp.gt.f32.partialorder %v4376_v20, 0.0  ;;  %v4442_v10 = vmul.f32 %v13157_v54, %v4376_v20  ;;  %10310 = vmatprep.mubr.msk.f32.mxu0 %vm318_vm4, %v13346_v13  ;;  %v13438_v15 = vld [vmem:[#allocation2 + $0x80] sm:$0xff]  ;;  %v13446_v38 = vld [vmem:[#allocation2 + $0x98] sm:$0xff] }
 0x423   : > { %vm4408_vm10 = vcmp.gt.f32.partialorder %v4375_v60, 0.0  ;;  %v4441_v49 = vmul.f32 %v13157_v54, %v4375_v60  ;;  %10311 = vmatmul.mubr.msk.f32.gmra.mrb[42].mxu0 %vm318_vm4, %v13352_v31  ;;  %v13454_v5 = vld [vmem:[#allocation2 + $0xb0] sm:$0xff]  ;;  %v13458_v36 = vld [vmem:[#allocation2 + $0xc0] sm:$0xff]  ;;  %v5657_v0 = vld [vmem:[%s14341_s5 + $0xd8] sm:$0xff] }
 0x424   : > { %v4474_v53 = vsel %vm4409_vm9, %v4376_v20, %v4442_v10  ;;  %v13363_v22 = vld [vmem:[#allocation2 + $0x159] sm:$0xff]  ;;  %v13450_v20 = vld [vmem:[#allocation2 + $0xa8] sm:$0xff]  ;;  %v5656_v63 = vld [vmem:[%s14341_s5 + $0xd0] sm:$0xff] }
 0x425   : > { %4506 = vst.msk [vmem:[#allocation2 + $0x189] sm:$0xff] %vm318_vm4, %v4474_v53  ;;  %v4473_v50 = vsel %vm4408_vm10, %v4375_v60, %v4441_v49  ;;  %v13358_v11 = vld [vmem:[#allocation2 + $0x151] sm:$0xff]  ;;  %14546 = vst [vmem:[#allocation14_spill] sm:$0xff] %v13363_v22  ;;  %v13462_v60 = vld [vmem:[#allocation2 + $0xc8] sm:$0xff] }
 0x426   : > { %14545 = vst [vmem:[#allocation12_spill] sm:$0xff] %v13358_v11  ;;  %4505 = vst.msk [vmem:[#allocation2 + $0x181] sm:$0xff] %vm318_vm4, %v4473_v50  ;;  %10313 = vmatprep.mubr.msk.f32.mxu0 %vm318_vm4, %v13358_v11  ;;  %v13466_v10 = vld [vmem:[#allocation2 + $0xd8] sm:$0xff]  ;;  %v13470_v49 = vld [vmem:[#allocation2 + $0xe0] sm:$0xff] }
 0x427   : > { %10314 = vmatmul.mubr.msk.f32.gmra.mrb[44].mxu0 %vm318_vm4, %v13363_v22  ;;  %v13474_v53 = vld [vmem:[#allocation2 + $0xf0] sm:$0xff]  ;;  %v13478_v50 = vld [vmem:[#allocation2 + $0xf8] sm:$0xff]  ;;  %v13490_v4 = vld [vmem:[#allocation2 + $0x120] sm:$0xff] }
 0x428   : > { %v13371_v25 = vld [vmem:[#allocation2 + $0x171] sm:$0xff]  ;;  %v13502_v2 = vld [vmem:[#allocation2 + $0x140] sm:$0xff]  ;;  %v5659_v11 = vld [vmem:[%s14341_s5 + $0xe8] sm:$0xff] }
 0x429   : > { %v13367_v54 = vld [vmem:[#allocation2 + $0x169] sm:$0xff]  ;;  %14548 = vst [vmem:[#allocation16_spill] sm:$0xff] %v13371_v25  ;;  %v5658_v22 = vld [vmem:[%s14341_s5 + $0xe0] sm:$0xff] }
 0x42a   : > { %14547 = vst [vmem:[#allocation15_spill] sm:$0xff] %v13367_v54  ;;  %10316 = vmatprep.mubr.msk.f32.mxu0 %vm318_vm4, %v13367_v54  ;;  %v13506_v14 = vld [vmem:[#allocation2 + $0x150] sm:$0xff]  ;;  %v11037_v54 = vpack.c.bf16 %v5657_v0, %v5656_v63  ;;  %v13536_v31 = vld [vmem:[#allocation2 + $0x1a] sm:$0xff]  ;;  %v13540_v13 = vld [vmem:[#allocation2 + $0x22] sm:$0xff] }
 0x42b   : > { %10317 = vmatmul.mubr.msk.f32.gmra.mrb[46].mxu0 %vm318_vm4, %v13371_v25  ;;  %v5230_v25 = vld [vmem:[#allocation2 + $0xa] sm:$0xff]  ;;  %14549 = vst [vmem:[#allocation17_spill] sm:$0xff] %v13536_v31  ;;  %14550 = vst [vmem:[#allocation18_spill] sm:$0xff] %v13540_v13  ;;  %v5661_v0 = vld [vmem:[%s14341_s5 + $0xf8] sm:$0xff] }
 0x42c   : > { %10335 = vmatprep.mubr.msk.f32.mxu0 %vm318_vm4, %v4507_v23  ;;  %v13482_v23 = vld [vmem:[#allocation2 + $0x108] sm:$0xff]  ;;  %v5660_v63 = vld [vmem:[%s14341_s5 + $0xf0] sm:$0xff] }
 0x42f   : > { %10336 = vmatmul.mubr.msk.f32.vlgmr.msra.gmra.mrb[16].mxu0 %vm318_vm4, %v4508_v58  ;;  %v13494_v58 = vld [vmem:[#allocation2 + $0x128] sm:$0xff] }
 0x430   : > { %11020 = vmatpush3.bf16.msra.mxu0 %v13149_v27  ;;  %10338 = vmatprep.mubr.msk.f32.mxu0 %vm318_vm4, %v13389_v37  ;;  %v11029_v27 = vpack.c.bf16 %v5268_v48, %v5267_v34  ;;  %v13514_v34 = vld [vmem:[#allocation2 + $0x168] sm:$0xff] }
 0x431   : > { %11022 = vmatprep.subr.bf16.mxu0 %v11021_v59  ;;  %v5229_v48 = vld [vmem:[#allocation2 + $0x2] sm:$0xff] }
 0x433   : > { %10339 = vmatmul.mubr.msk.f32.gmra.mrb[18].mxu0 %vm318_vm4, %v13394_v30 }
 0x434   : > { %10341 = vmatprep.mubr.msk.f32.mxu0 %vm318_vm4, %v13404_v62  ;;  %11024 = vmatpush3.bf16.msra.mxu0 %v11021_v59  ;;  %v13498_v59 = vld [vmem:[#allocation2 + $0x138] sm:$0xff] }
 0x435   : > { %11026 = vmatprep.subr.bf16.mxu0 %v11025_v29 }
 0x437   : > { %10342 = vmatmul.mubr.msk.f32.gmra.mrb[20].mxu0 %vm318_vm4, %v13408_v57 }
 0x438   : > { %10344 = vmatprep.mubr.msk.f32.mxu0 %vm318_vm4, %v13418_v9  ;;  %11028 = vmatpush3.bf16.msra.mxu0 %v11025_v29  ;;  %v13510_v29 = vld [vmem:[#allocation2 + $0x158] sm:$0xff] }
 0x439   : > { %11030 = vmatprep.subr.bf16.mxu0 %v11029_v27 }
 0x43b   : > { %10345 = vmatmul.mubr.msk.f32.gmra.mrb[22].mxu0 %vm318_vm4, %v13422_v16 }
 0x43c   : > { %10347 = vmatprep.mubr.msk.f32.mxu0 %vm318_vm4, %v13426_v18  ;;  %11032 = vmatpush3.bf16.msra.mxu0 %v11029_v27  ;;  %v13518_v27 = vld [vmem:[#allocation2 + $0x170] sm:$0xff] }
 0x43d   : > { %11034 = vmatprep.subr.bf16.mxu0 %v11033_v12 }
 0x43f   : > { %10348 = vmatmul.mubr.msk.f32.gmra.mrb[24].mxu0 %vm318_vm4, %v13430_v42 }
 0x440   : > { %10350 = vmatprep.mubr.msk.f32.mxu0 %vm318_vm4, %v13434_v46 }
 0x443   : > { %10351 = vmatmul.mubr.msk.f32.gmra.mrb[26].mxu0 %vm318_vm4, %v13438_v15 }
 0x444   : > { %10353 = vmatprep.mubr.msk.f32.mxu0 %vm318_vm4, %v13442_v41 }
 0x447   : > { %10354 = vmatmul.mubr.msk.f32.gmra.mrb[28].mxu0 %vm318_vm4, %v13446_v38 }
 0x448   : > { %10356 = vmatprep.mubr.msk.f32.mxu0 %vm318_vm4, %v13450_v20 }
 0x44b   : > { %10357 = vmatmul.mubr.msk.f32.gmra.mrb[30].mxu0 %vm318_vm4, %v13454_v5 }
 0x44c   : > { %10359 = vmatprep.mubr.msk.f32.mxu0 %vm318_vm4, %v13458_v36 }
 0x44f   : > { %10360 = vmatmul.mubr.msk.f32.gmra.mrb[32].mxu0 %vm318_vm4, %v13462_v60 }
 0x450   : > { %10362 = vmatprep.mubr.msk.f32.mxu0 %vm318_vm4, %v13466_v10 }
 0x453   : > { %10363 = vmatmul.mubr.msk.f32.gmra.mrb[34].mxu0 %vm318_vm4, %v13470_v49 }
 0x454   : > { %10365 = vmatprep.mubr.msk.f32.mxu0 %vm318_vm4, %v13474_v53 }
 0x457   : > { %10366 = vmatmul.mubr.msk.f32.gmra.mrb[36].mxu0 %vm318_vm4, %v13478_v50 }
 0x458   : > { %10368 = vmatprep.mubr.msk.f32.mxu0 %vm318_vm4, %v13482_v23 }
 0x45b   : > { %10369 = vmatmul.mubr.msk.f32.gmra.mrb[38].mxu0 %vm318_vm4, %v13486_v52 }
 0x45c   : > { %10371 = vmatprep.mubr.msk.f32.mxu0 %vm318_vm4, %v13490_v4 }
 0x45f   : > { %10372 = vmatmul.mubr.msk.f32.gmra.mrb[40].mxu0 %vm318_vm4, %v13494_v58 }
 0x460   : > { %10374 = vmatprep.mubr.msk.f32.mxu0 %vm318_vm4, %v13498_v59 }
 0x463   : > { %10375 = vmatmul.mubr.msk.f32.gmra.mrb[42].mxu0 %vm318_vm4, %v13502_v2 }
 0x464   : > { %10377 = vmatprep.mubr.msk.f32.mxu0 %vm318_vm4, %v13506_v14 }
 0x467   : > { %10378 = vmatmul.mubr.msk.f32.gmra.mrb[44].mxu0 %vm318_vm4, %v13510_v29 }
 0x468   : > { %10380 = vmatprep.mubr.msk.f32.mxu0 %vm318_vm4, %v13514_v34 }
 0x46b   : > { %10381 = vmatmul.mubr.msk.f32.gmra.mrb[46].mxu0 %vm318_vm4, %v13518_v27 }
 0x46c   : > { %10399 = vmatprep.mubr.msk.f32.mxu0 %vm318_vm4, %v5229_v48  ;;  %v11041_v48 = vpack.c.bf16 %v5659_v11, %v5658_v22  ;;  %v11045_v11 = vpack.c.bf16 %v5661_v0, %v5660_v63  ;;  %v13554_v22 = vld [vmem:[#allocation2 + $0x3a] sm:$0xff]  ;;  %v13568_v63 = vld [vmem:[#allocation2 + $0x52] sm:$0xff]  ;;  %v13572_v0 = vld [vmem:[#allocation2 + $0x62] sm:$0xff] }
 0x46d   : > { %14551 = vst [vmem:[#allocation19_spill] sm:$0xff] %v13554_v22  ;;  %14552 = vst [vmem:[#allocation20_spill] sm:$0xff] %v13572_v0 }
 0x46f   : > { %10400 = vmatmul.mubr.msk.f32.vlgmr.msra.gmra.mrb[16].mxu0 %vm318_vm4, %v5230_v25  ;;  %v13550_v25 = vld [vmem:[#allocation2 + $0x32] sm:$0xff] }
 0x470   : > { %11036 = vmatpush3.bf16.msra.mxu0 %v11033_v12  ;;  %10402 = vmatprep.mubr.msk.f32.mxu0 %vm318_vm4, %v13536_v31  ;;  %v6047_v12 = vld [vmem:[%s14341_s5 + $0x100] sm:$0xff]  ;;  %v6048_v31 = vld [vmem:[%s14341_s5 + $0x108] sm:$0xff] }
 0x471   : > { %11038 = vmatprep.subr.bf16.mxu0 %v11037_v54 }
 0x473   : > { %10403 = vmatmul.mubr.msk.f32.gmra.mrb[18].mxu0 %vm318_vm4, %v13540_v13  ;;  %v13564_v13 = vld [vmem:[#allocation2 + $0x4a] sm:$0xff] }
 0x474   : > { %10405 = vmatprep.mubr.msk.f32.mxu0 %vm318_vm4, %v13550_v25  ;;  %11040 = vmatpush3.bf16.msra.mxu0 %v11037_v54  ;;  %v11049_v54 = vpack.c.bf16 %v6048_v31, %v6047_v12  ;;  %v13584_v31 = vld [vmem:[#allocation2 + $0x82] sm:$0xff]  ;;  %v13588_v12 = vld [vmem:[#allocation2 + $0x92] sm:$0xff] }
 0x475   : > { %11042 = vmatprep.subr.bf16.mxu0 %v11041_v48  ;;  %14555 = vst [vmem:[#allocation23_spill] sm:$0xff] %v13584_v31  ;;  %14556 = vst [vmem:[#allocation24_spill] sm:$0xff] %v13588_v12 }
 0x477   : > { %10406 = vmatmul.mubr.msk.f32.gmra.mrb[20].mxu0 %vm318_vm4, %v13554_v22  ;;  %v13576_v22 = vld [vmem:[#allocation2 + $0x6a] sm:$0xff] }
 0x478   : > { %10408 = vmatprep.mubr.msk.f32.mxu0 %vm318_vm4, %v13564_v13  ;;  %11044 = vmatpush3.bf16.msra.mxu0 %v11041_v48  ;;  %14553 = vst [vmem:[#allocation21_spill] sm:$0xff] %v13576_v22  ;;  %v13580_v48 = vld [vmem:[#allocation2 + $0x7a] sm:$0xff] }
 0x479   : > { %11046 = vmatprep.subr.bf16.mxu0 %v11045_v11  ;;  %14554 = vst [vmem:[#allocation22_spill] sm:$0xff] %v13580_v48 }
 0x47b   : > { %10409 = vmatmul.mubr.msk.f32.gmra.mrb[22].mxu0 %vm318_vm4, %v13568_v63 }
 0x47c   : > { %10411 = vmatprep.mubr.msk.f32.mxu0 %vm318_vm4, %v13572_v0  ;;  %11048 = vmatpush3.bf16.msra.mxu0 %v11045_v11  ;;  %v13592_v11 = vld [vmem:[#allocation2 + $0x9a] sm:$0xff]  ;;  %v6052_v0 = vld [vmem:[%s14341_s5 + $0x128] sm:$0xff] }
 0x47d   : > { %11050 = vmatprep.subr.bf16.mxu0 %v11049_v54  ;;  %14557 = vst [vmem:[#allocation25_spill] sm:$0xff] %v13592_v11 }
 0x47f   : > { %10412 = vmatmul.mubr.msk.f32.gmra.mrb[24].mxu0 %vm318_vm4, %v13576_v22  ;;  %v13596_v22 = vld [vmem:[#allocation2 + $0xaa] sm:$0xff] }
 0x480   : > { %10414 = vmatprep.mubr.msk.f32.mxu0 %vm318_vm4, %v13580_v48  ;;  %14558 = vst [vmem:[#allocation26_spill] sm:$0xff] %v13596_v22  ;;  %v13600_v48 = vld [vmem:[#allocation2 + $0xb2] sm:$0xff] }
 0x481   : > { %14559 = vst [vmem:[#allocation27_spill] sm:$0xff] %v13600_v48 }
 0x483   : > { %10415 = vmatmul.mubr.msk.f32.gmra.mrb[26].mxu0 %vm318_vm4, %v13584_v31  ;;  %v13604_v31 = vld [vmem:[#allocation2 + $0xc2] sm:$0xff] }
 0x484   : > { %10417 = vmatprep.mubr.msk.f32.mxu0 %vm318_vm4, %v13588_v12  ;;  %14560 = vst [vmem:[#allocation28_spill] sm:$0xff] %v13604_v31  ;;  %v13608_v12 = vld [vmem:[#allocation2 + $0xca] sm:$0xff] }
 0x485   : > { %14561 = vst [vmem:[#allocation29_spill] sm:$0xff] %v13608_v12 }
 0x487   : > { %10418 = vmatmul.mubr.msk.f32.gmra.mrb[28].mxu0 %vm318_vm4, %v13592_v11  ;;  %v13612_v11 = vld [vmem:[#allocation2 + $0xda] sm:$0xff] }
 0x488   : > { %10420 = vmatprep.mubr.msk.f32.mxu0 %vm318_vm4, %v13596_v22  ;;  %14562 = vst [vmem:[#allocation30_spill] sm:$0xff] %v13612_v11  ;;  %v13616_v22 = vld [vmem:[#allocation2 + $0xe2] sm:$0xff] }
 0x489   : > { %14563 = vst [vmem:[#allocation31_spill] sm:$0xff] %v13616_v22 }
 0x48b   : > { %10421 = vmatmul.mubr.msk.f32.gmra.mrb[30].mxu0 %vm318_vm4, %v13600_v48  ;;  %v13620_v48 = vld [vmem:[#allocation2 + $0xf2] sm:$0xff] }
 0x48c   : > { %10423 = vmatprep.mubr.msk.f32.mxu0 %vm318_vm4, %v13604_v31  ;;  %14564 = vst [vmem:[#allocation32_spill] sm:$0xff] %v13620_v48  ;;  %v13624_v31 = vld [vmem:[#allocation2 + $0xfa] sm:$0xff] }
 0x48d   : > { %14565 = vst [vmem:[#allocation33_spill] sm:$0xff] %v13624_v31 }
 0x48f   : > { %10424 = vmatmul.mubr.msk.f32.gmra.mrb[32].mxu0 %vm318_vm4, %v13608_v12  ;;  %v13628_v12 = vld [vmem:[#allocation2 + $0x10a] sm:$0xff] }
 0x490   : > { %10426 = vmatprep.mubr.msk.f32.mxu0 %vm318_vm4, %v13612_v11  ;;  %14566 = vst [vmem:[#allocation34_spill] sm:$0xff] %v13628_v12  ;;  %v13632_v11 = vld [vmem:[#allocation2 + $0x112] sm:$0xff] }
 0x491   : > { %14567 = vst [vmem:[#allocation35_spill] sm:$0xff] %v13632_v11 }
 0x493   : > { %10427 = vmatmul.mubr.msk.f32.gmra.mrb[34].mxu0 %vm318_vm4, %v13616_v22  ;;  %v13636_v22 = vld [vmem:[#allocation2 + $0x122] sm:$0xff] }
 0x494   : > { %10429 = vmatprep.mubr.msk.f32.mxu0 %vm318_vm4, %v13620_v48  ;;  %14568 = vst [vmem:[#allocation36_spill] sm:$0xff] %v13636_v22  ;;  %v13640_v48 = vld [vmem:[#allocation2 + $0x12a] sm:$0xff] }
 0x495   : > { %14569 = vst [vmem:[#allocation37_spill] sm:$0xff] %v13640_v48 }
 0x497   : > { %10430 = vmatmul.mubr.msk.f32.gmra.mrb[36].mxu0 %vm318_vm4, %v13624_v31  ;;  %v13644_v31 = vld [vmem:[#allocation2 + $0x13a] sm:$0xff] }
 0x498   : > { %10432 = vmatprep.mubr.msk.f32.mxu0 %vm318_vm4, %v13628_v12  ;;  %14570 = vst [vmem:[#allocation38_spill] sm:$0xff] %v13644_v31  ;;  %v13648_v12 = vld [vmem:[#allocation2 + $0x142] sm:$0xff] }
 0x499   : > { %14571 = vst [vmem:[#allocation39_spill] sm:$0xff] %v13648_v12 }
 0x49b   : > { %10433 = vmatmul.mubr.msk.f32.gmra.mrb[38].mxu0 %vm318_vm4, %v13632_v11  ;;  %v13652_v11 = vld [vmem:[#allocation2 + $0x152] sm:$0xff] }
 0x49c   : > { %10435 = vmatprep.mubr.msk.f32.mxu0 %vm318_vm4, %v13636_v22  ;;  %14572 = vst [vmem:[#allocation40_spill] sm:$0xff] %v13652_v11  ;;  %v13656_v22 = vld [vmem:[#allocation2 + $0x15a] sm:$0xff] }
 0x49d   : > { %14573 = vst [vmem:[#allocation41_spill] sm:$0xff] %v13656_v22 }
 0x49f   : > { %10436 = vmatmul.mubr.msk.f32.gmra.mrb[40].mxu0 %vm318_vm4, %v13640_v48  ;;  %v13660_v48 = vld [vmem:[#allocation2 + $0x16a] sm:$0xff] }
 0x4a0   : > { %10438 = vmatprep.mubr.msk.f32.mxu0 %vm318_vm4, %v13644_v31  ;;  %14574 = vst [vmem:[#allocation9_spill] sm:$0xff] %v13660_v48  ;;  %v13664_v31 = vld [vmem:[#allocation2 + $0x172] sm:$0xff] }
 0x4a1   : > { %14575 = vst [vmem:[#allocation11_spill] sm:$0xff] %v13664_v31 }
 0x4a3   : > { %10439 = vmatmul.mubr.msk.f32.gmra.mrb[42].mxu0 %vm318_vm4, %v13648_v12  ;;  %v6049_v12 = vld [vmem:[%s14341_s5 + $0x110] sm:$0xff] }
 0x4a4   : > { %10441 = vmatprep.mubr.msk.f32.mxu0 %vm318_vm4, %v13652_v11  ;;  %v6050_v11 = vld [vmem:[%s14341_s5 + $0x118] sm:$0xff] }
 0x4a7   : > { %10442 = vmatmul.mubr.msk.f32.gmra.mrb[44].mxu0 %vm318_vm4, %v13656_v22  ;;  %v11053_v22 = vpack.c.bf16 %v6050_v11, %v6049_v12  ;;  %v6054_v12 = vld [vmem:[%s14341_s5 + $0x138] sm:$0xff]  ;;  %v6442_v11 = vld [vmem:[%s14341_s5 + $0x150] sm:$0xff] }
 0x4a8   : > { %10444 = vmatprep.mubr.msk.f32.mxu0 %vm318_vm4, %v13660_v48  ;;  %v6051_v48 = vld [vmem:[%s14341_s5 + $0x120] sm:$0xff] }
 0x4ab   : > { %10445 = vmatmul.mubr.msk.f32.gmra.mrb[46].mxu0 %vm318_vm4, %v13664_v31  ;;  %v11057_v31 = vpack.c.bf16 %v6052_v0, %v6051_v48  ;;  %v6441_v0 = vld [vmem:[%s14341_s5 + $0x148] sm:$0xff] }
 0x4ac   : > { %10463 = vmatprep.mubr.msk.f32.mxu0 %vm318_vm4, %v13389_v37  ;;  %v6053_v37 = vld [vmem:[%s14341_s5 + $0x130] sm:$0xff] }
 0x4af   : > { %10464 = vmatmul.mubr.msk.f32.vlgmr.msra.gmra.mrb[16].mxu0 %vm318_vm4, %v13394_v30  ;;  %v11061_v30 = vpack.c.bf16 %v6054_v12, %v6053_v37  ;;  %v6443_v37 = vld [vmem:[%s14341_s5 + $0x158] sm:$0xff] }
 0x4b0   : > { %11052 = vmatpush3.bf16.msra.mxu0 %v11049_v54  ;;  %10466 = vmatprep.mubr.msk.f32.mxu0 %vm318_vm4, %v13404_v62  ;;  %v6440_v54 = vld [vmem:[%s14341_s5 + $0x140] sm:$0xff]  ;;  %v11069_v12 = vpack.c.bf16 %v6443_v37, %v6442_v11  ;;  %v6447_v11 = vld [vmem:[%s14341_s5 + $0x178] sm:$0xff] }
 0x4b1   : > { %11054 = vmatprep.subr.bf16.mxu0 %v11053_v22  ;;  %v11065_v48 = vpack.c.bf16 %v6441_v0, %v6440_v54  ;;  %v6445_v54 = vld [vmem:[%s14341_s5 + $0x168] sm:$0xff]  ;;  %v7226_v37 = vld [vmem:[%s14341_s5 + $0x1c0] sm:$0xff] }
 0x4b3   : > { %10467 = vmatmul.mubr.msk.f32.gmra.mrb[18].mxu0 %vm318_vm4, %v13408_v57 }
 0x4b4   : > { %10469 = vmatprep.mubr.msk.f32.mxu0 %vm318_vm4, %v13418_v9  ;;  %11056 = vmatpush3.bf16.msra.mxu0 %v11053_v22  ;;  %v13752_v22 = vld [vmem:[#allocation2 + $0x180] sm:$0xff] }
 0x4b5   : > { %11058 = vmatprep.subr.bf16.mxu0 %v11057_v31 }
 0x4b7   : > { %10470 = vmatmul.mubr.msk.f32.gmra.mrb[20].mxu0 %vm318_vm4, %v13422_v16 }
 0x4b8   : > { %10472 = vmatprep.mubr.msk.f32.mxu0 %vm318_vm4, %v13426_v18  ;;  %11060 = vmatpush3.bf16.msra.mxu0 %v11057_v31  ;;  %v13756_v31 = vld [vmem:[#allocation2 + $0x188] sm:$0xff] }
 0x4b9   : > { %11062 = vmatprep.subr.bf16.mxu0 %v11061_v30 }
 0x4bb   : > { %10473 = vmatmul.mubr.msk.f32.gmra.mrb[22].mxu0 %vm318_vm4, %v13430_v42 }
 0x4bc   : > { %10475 = vmatprep.mubr.msk.f32.mxu0 %vm318_vm4, %v13434_v46  ;;  %11064 = vmatpush3.bf16.msra.mxu0 %v11061_v30  ;;  %v6444_v30 = vld [vmem:[%s14341_s5 + $0x160] sm:$0xff] }
 0x4bd   : > { %11066 = vmatprep.subr.bf16.mxu0 %v11065_v48  ;;  %v11073_v0 = vpack.c.bf16 %v6445_v54, %v6444_v30  ;;  %v14585_v30 = vld [vmem:[#allocation20_spill] sm:$0xff] }
 0x4bf   : > { %10476 = vmatmul.mubr.msk.f32.gmra.mrb[24].mxu0 %vm318_vm4, %v13438_v15 }
 0x4c0   : > { %10478 = vmatprep.mubr.msk.f32.mxu0 %vm318_vm4, %v13442_v41 }
 0x4c3   : > { %10479 = vmatmul.mubr.msk.f32.gmra.mrb[26].mxu0 %vm318_vm4, %v13446_v38 }
 0x4c4   : > { %10481 = vmatprep.mubr.msk.f32.mxu0 %vm318_vm4, %v13450_v20 }
 0x4c7   : > { %10482 = vmatmul.mubr.msk.f32.gmra.mrb[28].mxu0 %vm318_vm4, %v13454_v5 }
 0x4c8   : > { %10484 = vmatprep.mubr.msk.f32.mxu0 %vm318_vm4, %v13458_v36 }
 0x4cb   : > { %10485 = vmatmul.mubr.msk.f32.gmra.mrb[30].mxu0 %vm318_vm4, %v13462_v60 }
 0x4cc   : > { %10487 = vmatprep.mubr.msk.f32.mxu0 %vm318_vm4, %v13466_v10 }
 0x4cf   : > { %10488 = vmatmul.mubr.msk.f32.gmra.mrb[32].mxu0 %vm318_vm4, %v13470_v49 }
 0x4d0   : > { %10490 = vmatprep.mubr.msk.f32.mxu0 %vm318_vm4, %v13474_v53 }
 0x4d3   : > { %10491 = vmatmul.mubr.msk.f32.gmra.mrb[34].mxu0 %vm318_vm4, %v13478_v50 }
 0x4d4   : > { %10493 = vmatprep.mubr.msk.f32.mxu0 %vm318_vm4, %v13482_v23 }
 0x4d7   : > { %10494 = vmatmul.mubr.msk.f32.gmra.mrb[36].mxu0 %vm318_vm4, %v13486_v52 }
 0x4d8   : > { %10496 = vmatprep.mubr.msk.f32.mxu0 %vm318_vm4, %v13490_v4 }
 0x4db   : > { %10497 = vmatmul.mubr.msk.f32.gmra.mrb[38].mxu0 %vm318_vm4, %v13494_v58 }
 0x4dc   : > { %10499 = vmatprep.mubr.msk.f32.mxu0 %vm318_vm4, %v13498_v59 }
 0x4df   : > { %10500 = vmatmul.mubr.msk.f32.gmra.mrb[40].mxu0 %vm318_vm4, %v13502_v2 }
 0x4e0   : > { %10502 = vmatprep.mubr.msk.f32.mxu0 %vm318_vm4, %v13506_v14 }
 0x4e3   : > { %10503 = vmatmul.mubr.msk.f32.gmra.mrb[42].mxu0 %vm318_vm4, %v13510_v29 }
 0x4e4   : > { %10505 = vmatprep.mubr.msk.f32.mxu0 %vm318_vm4, %v13514_v34 }
 0x4e7   : > { %10506 = vmatmul.mubr.msk.f32.gmra.mrb[44].mxu0 %vm318_vm4, %v13518_v27 }
 0x4e8   : > { %10508 = vmatprep.mubr.msk.f32.mxu0 %vm318_vm4, %v13752_v22 }
 0x4eb   : > { %10509 = vmatmul.mubr.msk.f32.gmra.mrb[46].mxu0 %vm318_vm4, %v13756_v31 }
 0x4ec   : > { %10527 = vmatprep.mubr.msk.f32.mxu0 %vm318_vm4, %v13178_v40  ;;  %v6446_v40 = vld [vmem:[%s14341_s5 + $0x170] sm:$0xff] }
 0x4ef   : > { %10528 = vmatmul.mubr.msk.f32.vlgmr.msra.gmra.mrb[16].mxu0 %vm318_vm4, %v13184_v43  ;;  %v11077_v43 = vpack.c.bf16 %v6447_v11, %v6446_v40  ;;  %v14587_v40 = vld [vmem:[#allocation22_spill] sm:$0xff]  ;;  %v14588_v11 = vld [vmem:[#allocation23_spill] sm:$0xff] }
 0x4f0   : > { %11068 = vmatpush3.bf16.msra.mxu0 %v11065_v48  ;;  %10530 = vmatprep.mubr.msk.f32.mxu0 %vm318_vm4, %v13192_v19  ;;  %v6833_v19 = vld [vmem:[%s14341_s5 + $0x180] sm:$0xff]  ;;  %v6834_v48 = vld [vmem:[%s14341_s5 + $0x188] sm:$0xff] }
 0x4f1   : > { %11070 = vmatprep.subr.bf16.mxu0 %v11069_v12 }
 0x4f3   : > { %10531 = vmatmul.mubr.msk.f32.gmra.mrb[18].mxu0 %vm318_vm4, %v13198_v32  ;;  %v11081_v32 = vpack.c.bf16 %v6834_v48, %v6833_v19  ;;  %v14590_v19 = vld [vmem:[#allocation25_spill] sm:$0xff]  ;;  %v14591_v48 = vld [vmem:[#allocation26_spill] sm:$0xff] }
 0x4f4   : > { %10533 = vmatprep.mubr.msk.f32.mxu0 %vm318_vm4, %v13206_v17  ;;  %11072 = vmatpush3.bf16.msra.mxu0 %v11069_v12  ;;  %v14576_v17 = vld [vmem:[#allocation10_spill] sm:$0xff]  ;;  %v7227_v12 = vld [vmem:[%s14341_s5 + $0x1c8] sm:$0xff] }
 0x4f5   : > { %11074 = vmatprep.subr.bf16.mxu0 %v11073_v0  ;;  %v11097_v54 = vpack.c.bf16 %v7227_v12, %v7226_v37  ;;  %v13940_v37 = vld [vmem:[#allocation2 + $0x18a] sm:$0xff] }
 0x4f6   : > { %v7228_v12 = vld [vmem:[%s14341_s5 + $0x1d0] sm:$0xff] }
 0x4f7   : > { %10534 = vmatmul.mubr.msk.f32.gmra.mrb[20].mxu0 %vm318_vm4, %v13212_v35  ;;  %v14577_v35 = vld [vmem:[#allocation13_spill] sm:$0xff] }
 0x4f8   : > { %10536 = vmatprep.mubr.msk.f32.mxu0 %vm318_vm4, %v13220_v24  ;;  %11076 = vmatpush3.bf16.msra.mxu0 %v11073_v0  ;;  %v14578_v24 = vld [vmem:[#allocation12_spill] sm:$0xff]  ;;  %v14586_v0 = vld [vmem:[#allocation21_spill] sm:$0xff]  ;;  %14610 = vst [vmem:[#allocation13_spill] sm:$0xff] %v13940_v37 }
 0x4f9   : > { %11078 = vmatprep.subr.bf16.mxu0 %v11077_v43 }
 0x4fb   : > { %10537 = vmatmul.mubr.msk.f32.gmra.mrb[22].mxu0 %vm318_vm4, %v13226_v26  ;;  %v14579_v26 = vld [vmem:[#allocation14_spill] sm:$0xff] }
 0x4fc   : > { %10539 = vmatprep.mubr.msk.f32.mxu0 %vm318_vm4, %v13234_v6  ;;  %11080 = vmatpush3.bf16.msra.mxu0 %v11077_v43  ;;  %v14580_v6 = vld [vmem:[#allocation15_spill] sm:$0xff]  ;;  %v14589_v43 = vld [vmem:[#allocation24_spill] sm:$0xff] }
 0x4fd   : > { %11082 = vmatprep.subr.bf16.mxu0 %v11081_v32 }
 0x4ff   : > { %10540 = vmatmul.mubr.msk.f32.gmra.mrb[24].mxu0 %vm318_vm4, %v13240_v39  ;;  %v14581_v39 = vld [vmem:[#allocation16_spill] sm:$0xff] }
 0x500   : > { %10542 = vmatprep.mubr.msk.f32.mxu0 %vm318_vm4, %v13248_v28  ;;  %v13844_v28 = vld [vmem:[#allocation2 + $0x181] sm:$0xff] }
 0x503   : > { %10543 = vmatmul.mubr.msk.f32.gmra.mrb[26].mxu0 %vm318_vm4, %v13254_v61  ;;  %v13848_v61 = vld [vmem:[#allocation2 + $0x189] sm:$0xff] }
 0x504   : > { %10545 = vmatprep.mubr.msk.f32.mxu0 %vm318_vm4, %v13262_v7  ;;  %v6835_v7 = vld [vmem:[%s14341_s5 + $0x190] sm:$0xff] }
 0x507   : > { %10546 = vmatmul.mubr.msk.f32.gmra.mrb[28].mxu0 %vm318_vm4, %v13268_v44  ;;  %v6836_v44 = vld [vmem:[%s14341_s5 + $0x198] sm:$0xff] }
 0x508   : > { %10548 = vmatprep.mubr.msk.f32.mxu0 %vm318_vm4, %v13276_v51  ;;  %v14582_v51 = vld [vmem:[#allocation17_spill] sm:$0xff] }
 0x50b   : > { %10549 = vmatmul.mubr.msk.f32.gmra.mrb[30].mxu0 %vm318_vm4, %v13282_v56  ;;  %v11085_v56 = vpack.c.bf16 %v6836_v44, %v6835_v7  ;;  %v14599_v7 = vld [vmem:[#allocation34_spill] sm:$0xff]  ;;  %v14600_v44 = vld [vmem:[#allocation35_spill] sm:$0xff] }
 0x50c   : > { %10551 = vmatprep.mubr.msk.f32.mxu0 %vm318_vm4, %v13290_v8  ;;  %v6837_v8 = vld [vmem:[%s14341_s5 + $0x1a0] sm:$0xff] }
 0x50f   : > { %10552 = vmatmul.mubr.msk.f32.gmra.mrb[32].mxu0 %vm318_vm4, %v13296_v21  ;;  %v6838_v21 = vld [vmem:[%s14341_s5 + $0x1a8] sm:$0xff] }
 0x510   : > { %10554 = vmatprep.mubr.msk.f32.mxu0 %vm318_vm4, %v13304_v1  ;;  %v14583_v1 = vld [vmem:[#allocation18_spill] sm:$0xff] }
 0x513   : > { %10555 = vmatmul.mubr.msk.f32.gmra.mrb[34].mxu0 %vm318_vm4, %v13310_v3  ;;  %v11089_v3 = vpack.c.bf16 %v6838_v21, %v6837_v8  ;;  %v14603_v8 = vld [vmem:[#allocation38_spill] sm:$0xff]  ;;  %v14604_v21 = vld [vmem:[#allocation39_spill] sm:$0xff] }
 0x514   : > { %10557 = vmatprep.mubr.msk.f32.mxu0 %vm318_vm4, %v13318_v55  ;;  %v6839_v55 = vld [vmem:[%s14341_s5 + $0x1b0] sm:$0xff] }
 0x517   : > { %10558 = vmatmul.mubr.msk.f32.gmra.mrb[36].mxu0 %vm318_vm4, %v13324_v33  ;;  %v6840_v33 = vld [vmem:[%s14341_s5 + $0x1b8] sm:$0xff] }
 0x518   : > { %10560 = vmatprep.mubr.msk.f32.mxu0 %vm318_vm4, %v13332_v45  ;;  %v14584_v45 = vld [vmem:[#allocation19_spill] sm:$0xff] }
 0x51b   : > { %10561 = vmatmul.mubr.msk.f32.gmra.mrb[38].mxu0 %vm318_vm4, %v13338_v47  ;;  %v11093_v47 = vpack.c.bf16 %v6840_v33, %v6839_v55  ;;  %v14607_v55 = vld [vmem:[#allocation9_spill] sm:$0xff]  ;;  %v14608_v33 = vld [vmem:[#allocation11_spill] sm:$0xff] }
 0x51c   : > { %10563 = vmatprep.mubr.msk.f32.mxu0 %vm318_vm4, %v14576_v17  ;;  %v14593_v17 = vld [vmem:[#allocation28_spill] sm:$0xff] }
 0x51f   : > { %10564 = vmatmul.mubr.msk.f32.gmra.mrb[40].mxu0 %vm318_vm4, %v14577_v35  ;;  %v14594_v35 = vld [vmem:[#allocation29_spill] sm:$0xff] }
 0x520   : > { %10566 = vmatprep.mubr.msk.f32.mxu0 %vm318_vm4, %v14578_v24  ;;  %v14595_v24 = vld [vmem:[#allocation30_spill] sm:$0xff] }
 0x523   : > { %10567 = vmatmul.mubr.msk.f32.gmra.mrb[42].mxu0 %vm318_vm4, %v14579_v26  ;;  %v14596_v26 = vld [vmem:[#allocation31_spill] sm:$0xff] }
 0x524   : > { %10569 = vmatprep.mubr.msk.f32.mxu0 %vm318_vm4, %v14580_v6  ;;  %v14597_v6 = vld [vmem:[#allocation32_spill] sm:$0xff] }
 0x527   : > { %10570 = vmatmul.mubr.msk.f32.gmra.mrb[44].mxu0 %vm318_vm4, %v14581_v39  ;;  %v14598_v39 = vld [vmem:[#allocation33_spill] sm:$0xff] }
 0x528   : > { %10572 = vmatprep.mubr.msk.f32.mxu0 %vm318_vm4, %v13844_v28 }
 0x52b   : > { %10573 = vmatmul.mubr.msk.f32.gmra.mrb[46].mxu0 %vm318_vm4, %v13848_v61 }
 0x52c   : > { %10591 = vmatprep.mubr.msk.f32.mxu0 %vm318_vm4, %v14582_v51  ;;  %v14601_v51 = vld [vmem:[#allocation36_spill] sm:$0xff] }
 0x52f   : > { %10592 = vmatmul.mubr.msk.f32.vlgmr.msra.gmra.mrb[16].mxu0 %vm318_vm4, %v14583_v1  ;;  %v14605_v1 = vld [vmem:[#allocation40_spill] sm:$0xff] }
 0x530   : > { %11084 = vmatpush3.bf16.msra.mxu0 %v11081_v32  ;;  %10594 = vmatprep.mubr.msk.f32.mxu0 %vm318_vm4, %v13550_v25  ;;  %v14592_v32 = vld [vmem:[#allocation27_spill] sm:$0xff] }
 0x531   : > { %11086 = vmatprep.subr.bf16.mxu0 %v11085_v56 }
 0x533   : > { %10595 = vmatmul.mubr.msk.f32.gmra.mrb[18].mxu0 %vm318_vm4, %v14584_v45 }
 0x534   : > { %10597 = vmatprep.mubr.msk.f32.mxu0 %vm318_vm4, %v13564_v13  ;;  %11088 = vmatpush3.bf16.msra.mxu0 %v11085_v56  ;;  %v14602_v56 = vld [vmem:[#allocation37_spill] sm:$0xff] }
 0x535   : > { %11090 = vmatprep.subr.bf16.mxu0 %v11089_v3 }
 0x537   : > { %10598 = vmatmul.mubr.msk.f32.gmra.mrb[20].mxu0 %vm318_vm4, %v13568_v63 }
 0x538   : > { %10600 = vmatprep.mubr.msk.f32.mxu0 %vm318_vm4, %v14585_v30  ;;  %11092 = vmatpush3.bf16.msra.mxu0 %v11089_v3  ;;  %v14606_v3 = vld [vmem:[#allocation41_spill] sm:$0xff] }
 0x539   : > { %11094 = vmatprep.subr.bf16.mxu0 %v11093_v47 }
 0x53b   : > { %10601 = vmatmul.mubr.msk.f32.gmra.mrb[22].mxu0 %vm318_vm4, %v14586_v0 }
 0x53c   : > { %10603 = vmatprep.mubr.msk.f32.mxu0 %vm318_vm4, %v14587_v40  ;;  %11096 = vmatpush3.bf16.msra.mxu0 %v11093_v47  ;;  %v13936_v47 = vld [vmem:[#allocation2 + $0x182] sm:$0xff] }
 0x53d   : > { %11098 = vmatprep.subr.bf16.mxu0 %v11097_v54  ;;  %14609 = vst [vmem:[#allocation10_spill] sm:$0xff] %v13936_v47 }
 0x53f   : > { %10604 = vmatmul.mubr.msk.f32.gmra.mrb[24].mxu0 %vm318_vm4, %v14588_v11 }
 0x540   : > { %10606 = vmatprep.mubr.msk.f32.mxu0 %vm318_vm4, %v14589_v43 }
 0x543   : > { %10607 = vmatmul.mubr.msk.f32.gmra.mrb[26].mxu0 %vm318_vm4, %v14590_v19 }
 0x544   : > { %10609 = vmatprep.mubr.msk.f32.mxu0 %vm318_vm4, %v14591_v48 }
 0x547   : > { %10610 = vmatmul.mubr.msk.f32.gmra.mrb[28].mxu0 %vm318_vm4, %v14592_v32 }
 0x548   : > { %10612 = vmatprep.mubr.msk.f32.mxu0 %vm318_vm4, %v14593_v17 }
 0x54b   : > { %10613 = vmatmul.mubr.msk.f32.gmra.mrb[30].mxu0 %vm318_vm4, %v14594_v35 }
 0x54c   : > { %10615 = vmatprep.mubr.msk.f32.mxu0 %vm318_vm4, %v14595_v24 }
 0x54f   : > { %10616 = vmatmul.mubr.msk.f32.gmra.mrb[32].mxu0 %vm318_vm4, %v14596_v26 }
 0x550   : > { %10618 = vmatprep.mubr.msk.f32.mxu0 %vm318_vm4, %v14597_v6 }
 0x553   : > { %10619 = vmatmul.mubr.msk.f32.gmra.mrb[34].mxu0 %vm318_vm4, %v14598_v39 }
 0x554   : > { %10621 = vmatprep.mubr.msk.f32.mxu0 %vm318_vm4, %v14599_v7 }
 0x557   : > { %10622 = vmatmul.mubr.msk.f32.gmra.mrb[36].mxu0 %vm318_vm4, %v14600_v44 }
 0x558   : > { %10624 = vmatprep.mubr.msk.f32.mxu0 %vm318_vm4, %v14601_v51 }
 0x55b   : > { %10625 = vmatmul.mubr.msk.f32.gmra.mrb[38].mxu0 %vm318_vm4, %v14602_v56 }
 0x55c   : > { %10627 = vmatprep.mubr.msk.f32.mxu0 %vm318_vm4, %v14603_v8 }
 0x55f   : > { %10628 = vmatmul.mubr.msk.f32.gmra.mrb[40].mxu0 %vm318_vm4, %v14604_v21 }
 0x560   : > { %10630 = vmatprep.mubr.msk.f32.mxu0 %vm318_vm4, %v14605_v1 }
 0x563   : > { %10631 = vmatmul.mubr.msk.f32.gmra.mrb[42].mxu0 %vm318_vm4, %v14606_v3  ;;  %v7229_v3 = vld [vmem:[%s14341_s5 + $0x1d8] sm:$0xff] }
 0x564   : > { %10633 = vmatprep.mubr.msk.f32.mxu0 %vm318_vm4, %v14607_v55  ;;  %v7231_v55 = vld [vmem:[%s14341_s5 + $0x1e8] sm:$0xff] }
 0x567   : > { %10634 = vmatmul.mubr.msk.f32.gmra.mrb[44].mxu0 %vm318_vm4, %v14608_v33  ;;  %v11101_v33 = vpack.c.bf16 %v7229_v3, %v7228_v12  ;;  %v7233_v3 = vld [vmem:[%s14341_s5 + $0x1f8] sm:$0xff] }
 0x568   : > { %10636 = vmatprep.mubr.msk.f32.mxu0 %vm318_vm4, %v13936_v47  ;;  %v7230_v47 = vld [vmem:[%s14341_s5 + $0x1e0] sm:$0xff]  ;;  %v7213_v12 = vld [vmem:[#allocation2 + $0x111] sm:$0xff] }
 0x56b   : > { %10637 = vmatmul.mubr.msk.f32.gmra.mrb[46].mxu0 %vm318_vm4, %v13940_v37  ;;  %v11105_v37 = vpack.c.bf16 %v7231_v55, %v7230_v47  ;;  %v7209_v55 = vld [vmem:[#allocation2 + $0xe1] sm:$0xff]  ;;  %v7211_v47 = vld [vmem:[#allocation2 + $0xf9] sm:$0xff] }
 0x56c   : > { %10655 = vmatprep.mubr.msk.f32.mxu0 %vm318_vm4, %v13404_v62  ;;  %v7232_v62 = vld [vmem:[%s14341_s5 + $0x1f0] sm:$0xff] }
 0x56f   : > { %10656 = vmatmul.mubr.msk.f32.vlgmr.msra.gmra.mrb[16].mxu0 %vm318_vm4, %v13408_v57  ;;  %v11109_v57 = vpack.c.bf16 %v7233_v3, %v7232_v62  ;;  %v7214_v62 = vld [vmem:[#allocation2 + $0x121] sm:$0xff]  ;;  %v7215_v3 = vld [vmem:[#allocation2 + $0x129] sm:$0xff] }
 0x570   : > { %11100 = vmatpush3.bf16.msra.mxu0 %v11097_v54  ;;  %10658 = vmatprep.mubr.msk.f32.mxu0 %vm318_vm4, %v13418_v9  ;;  %v7619_v9 = vld [vmem:[%s14341_s5 + $0x200] sm:$0xff]  ;;  %v7620_v54 = vld [vmem:[%s14341_s5 + $0x208] sm:$0xff] }
 0x571   : > { %11102 = vmatprep.subr.bf16.mxu0 %v11101_v33 }
 0x573   : > { %10659 = vmatmul.mubr.msk.f32.gmra.mrb[18].mxu0 %vm318_vm4, %v13422_v16  ;;  %v11113_v16 = vpack.c.bf16 %v7620_v54, %v7619_v9  ;;  %v7217_v9 = vld [vmem:[#allocation2 + $0x141] sm:$0xff]  ;;  %v7218_v54 = vld [vmem:[#allocation2 + $0x151] sm:$0xff] }
 0x574   : > { %10661 = vmatprep.mubr.msk.f32.mxu0 %vm318_vm4, %v13426_v18  ;;  %11104 = vmatpush3.bf16.msra.mxu0 %v11101_v33  ;;  %v6831_v18 = vld [vmem:[#allocation2 + $0x198] sm:$0xff] }
 0x575   : > { %11106 = vmatprep.subr.bf16.mxu0 %v11105_v37  ;;  %v7210_v33 = vld [vmem:[#allocation2 + $0xf1] sm:$0xff] }
 0x577   : > { %10662 = vmatmul.mubr.msk.f32.gmra.mrb[20].mxu0 %vm318_vm4, %v13430_v42  ;;  %v6832_v42 = vld [vmem:[#allocation2 + $0x1a0] sm:$0xff] }
 0x578   : > { %10664 = vmatprep.mubr.msk.f32.mxu0 %vm318_vm4, %v13434_v46  ;;  %11108 = vmatpush3.bf16.msra.mxu0 %v11105_v37  ;;  %v7621_v46 = vld [vmem:[%s14341_s5 + $0x210] sm:$0xff] }
 0x579   : > { %11110 = vmatprep.subr.bf16.mxu0 %v11109_v57  ;;  %v7212_v37 = vld [vmem:[#allocation2 + $0x109] sm:$0xff] }
 0x57b   : > { %10665 = vmatmul.mubr.msk.f32.gmra.mrb[22].mxu0 %vm318_vm4, %v13438_v15  ;;  %v7622_v15 = vld [vmem:[%s14341_s5 + $0x218] sm:$0xff] }
 0x57c   : > { %10667 = vmatprep.mubr.msk.f32.mxu0 %vm318_vm4, %v13442_v41  ;;  %11112 = vmatpush3.bf16.msra.mxu0 %v11109_v57  ;;  %v7194_v41 = vld [vmem:[#allocation2 + $0x31] sm:$0xff]  ;;  %v7216_v57 = vld [vmem:[#allocation2 + $0x139] sm:$0xff] }
 0x57d   : > { %11114 = vmatprep.subr.bf16.mxu0 %v11113_v16 }
 0x57f   : > { %10668 = vmatmul.mubr.msk.f32.gmra.mrb[24].mxu0 %vm318_vm4, %v13446_v38  ;;  %v11117_v38 = vpack.c.bf16 %v7622_v15, %v7621_v46  ;;  %v7224_v46 = vld [vmem:[#allocation2 + $0x199] sm:$0xff]  ;;  %v7225_v15 = vld [vmem:[#allocation2 + $0x1a1] sm:$0xff] }
 0x580   : > { %10670 = vmatprep.mubr.msk.f32.mxu0 %vm318_vm4, %v13450_v20  ;;  %v7195_v20 = vld [vmem:[#allocation2 + $0x39] sm:$0xff] }
 0x583   : > { %10671 = vmatmul.mubr.msk.f32.gmra.mrb[26].mxu0 %vm318_vm4, %v13454_v5  ;;  %v7623_v5 = vld [vmem:[%s14341_s5 + $0x220] sm:$0xff] }
 0x584   : > { %10673 = vmatprep.mubr.msk.f32.mxu0 %vm318_vm4, %v13458_v36  ;;  %v7624_v36 = vld [vmem:[%s14341_s5 + $0x228] sm:$0xff] }
 0x587   : > { %10674 = vmatmul.mubr.msk.f32.gmra.mrb[28].mxu0 %vm318_vm4, %v13462_v60  ;;  %v7196_v60 = vld [vmem:[#allocation2 + $0x49] sm:$0xff] }
 0x588   : > { %10676 = vmatprep.mubr.msk.f32.mxu0 %vm318_vm4, %v13466_v10  ;;  %v11121_v10 = vpack.c.bf16 %v7624_v36, %v7623_v5 }
 0x58b   : > { %10677 = vmatmul.mubr.msk.f32.gmra.mrb[30].mxu0 %vm318_vm4, %v13470_v49  ;;  %v7197_v49 = vld [vmem:[#allocation2 + $0x51] sm:$0xff] }
 0x58c   : > { %10679 = vmatprep.mubr.msk.f32.mxu0 %vm318_vm4, %v13474_v53  ;;  %v7625_v53 = vld [vmem:[%s14341_s5 + $0x230] sm:$0xff] }
 0x58f   : > { %10680 = vmatmul.mubr.msk.f32.gmra.mrb[32].mxu0 %vm318_vm4, %v13478_v50  ;;  %v7626_v50 = vld [vmem:[%s14341_s5 + $0x238] sm:$0xff] }
 0x590   : > { %10682 = vmatprep.mubr.msk.f32.mxu0 %vm318_vm4, %v13482_v23  ;;  %v7198_v23 = vld [vmem:[#allocation2 + $0x61] sm:$0xff] }
 0x593   : > { %10683 = vmatmul.mubr.msk.f32.gmra.mrb[34].mxu0 %vm318_vm4, %v13486_v52  ;;  %v11125_v52 = vpack.c.bf16 %v7626_v50, %v7625_v53 }
 0x594   : > { %10685 = vmatprep.mubr.msk.f32.mxu0 %vm318_vm4, %v13490_v4  ;;  %v7199_v4 = vld [vmem:[#allocation2 + $0x69] sm:$0xff] }
 0x597   : > { %10686 = vmatmul.mubr.msk.f32.gmra.mrb[36].mxu0 %vm318_vm4, %v13494_v58  ;;  %v7200_v58 = vld [vmem:[#allocation2 + $0x79] sm:$0xff] }
 0x598   : > { %10688 = vmatprep.mubr.msk.f32.mxu0 %vm318_vm4, %v13498_v59  ;;  %v7201_v59 = vld [vmem:[#allocation2 + $0x81] sm:$0xff] }
 0x59b   : > { %10689 = vmatmul.mubr.msk.f32.gmra.mrb[38].mxu0 %vm318_vm4, %v13502_v2  ;;  %v7202_v2 = vld [vmem:[#allocation2 + $0x91] sm:$0xff] }
 0x59c   : > { %10691 = vmatprep.mubr.msk.f32.mxu0 %vm318_vm4, %v13506_v14  ;;  %v7203_v14 = vld [vmem:[#allocation2 + $0x99] sm:$0xff] }
 0x59f   : > { %10692 = vmatmul.mubr.msk.f32.gmra.mrb[40].mxu0 %vm318_vm4, %v13510_v29  ;;  %v7204_v29 = vld [vmem:[#allocation2 + $0xa9] sm:$0xff] }
 0x5a0   : > { %10694 = vmatprep.mubr.msk.f32.mxu0 %vm318_vm4, %v13514_v34  ;;  %v7205_v34 = vld [vmem:[#allocation2 + $0xb1] sm:$0xff] }
 0x5a3   : > { %10695 = vmatmul.mubr.msk.f32.gmra.mrb[42].mxu0 %vm318_vm4, %v13518_v27  ;;  %v7206_v27 = vld [vmem:[#allocation2 + $0xc1] sm:$0xff] }
 0x5a4   : > { %10697 = vmatprep.mubr.msk.f32.mxu0 %vm318_vm4, %v13752_v22  ;;  %v7207_v22 = vld [vmem:[#allocation2 + $0xc9] sm:$0xff] }
 0x5a7   : > { %10698 = vmatmul.mubr.msk.f32.gmra.mrb[44].mxu0 %vm318_vm4, %v13756_v31  ;;  %v7208_v31 = vld [vmem:[#allocation2 + $0xd9] sm:$0xff] }
 0x5a8   : > { %10700 = vmatprep.mubr.msk.f32.mxu0 %vm318_vm4, %v6831_v18  ;;  %v7220_v18 = vld [vmem:[#allocation2 + $0x169] sm:$0xff] }
 0x5ab   : > { %10701 = vmatmul.mubr.msk.f32.gmra.mrb[46].mxu0 %vm318_vm4, %v6832_v42  ;;  %v7221_v42 = vld [vmem:[#allocation2 + $0x171] sm:$0xff] }
 0x5ac   : > { %10719 = vmatprep.mubr.msk.f32.mxu0 %vm318_vm4, %v7194_v41 }
 0x5af   : > { %10720 = vmatmul.mubr.msk.f32.vlgmr.msra.gmra.mrb[16].mxu0 %vm318_vm4, %v7195_v20 }
 0x5b0   : > { %11116 = vmatpush3.bf16.msra.mxu0 %v11113_v16  ;;  %10722 = vmatprep.mubr.msk.f32.mxu0 %vm318_vm4, %v7196_v60  ;;  %v7219_v16 = vld [vmem:[#allocation2 + $0x159] sm:$0xff] }
 0x5b1   : > { %11118 = vmatprep.subr.bf16.mxu0 %v11117_v38 }
 0x5b3   : > { %10723 = vmatmul.mubr.msk.f32.gmra.mrb[18].mxu0 %vm318_vm4, %v7197_v49 }
 0x5b4   : > { %10725 = vmatprep.mubr.msk.f32.mxu0 %vm318_vm4, %v7198_v23  ;;  %11120 = vmatpush3.bf16.msra.mxu0 %v11117_v38 }
 0x5b5   : > { %11122 = vmatprep.subr.bf16.mxu0 %v11121_v10 }
 0x5b7   : > { %10726 = vmatmul.mubr.msk.f32.gmra.mrb[20].mxu0 %vm318_vm4, %v7199_v4 }
 0x5b8   : > { %10728 = vmatprep.mubr.msk.f32.mxu0 %vm318_vm4, %v7200_v58  ;;  %11124 = vmatpush3.bf16.msra.mxu0 %v11121_v10 }
 0x5b9   : > { %11126 = vmatprep.subr.bf16.mxu0 %v11125_v52 }
 0x5bb   : > { %10729 = vmatmul.mubr.msk.f32.gmra.mrb[22].mxu0 %vm318_vm4, %v7201_v59 }
 0x5bc   : > { %10731 = vmatprep.mubr.msk.f32.mxu0 %vm318_vm4, %v7202_v2  ;;  %11128 = vmatpush3.bf16.msra.mxu0 %v11125_v52 }
 0x5bf   : > { %10732 = vmatmul.mubr.msk.f32.gmra.mrb[24].mxu0 %vm318_vm4, %v7203_v14 }
 0x5c0   : > { %10734 = vmatprep.mubr.msk.f32.mxu0 %vm318_vm4, %v7204_v29 }
 0x5c3   : > { %10735 = vmatmul.mubr.msk.f32.gmra.mrb[26].mxu0 %vm318_vm4, %v7205_v34 }
 0x5c4   : > { %10737 = vmatprep.mubr.msk.f32.mxu0 %vm318_vm4, %v7206_v27 }
 0x5c7   : > { %10738 = vmatmul.mubr.msk.f32.gmra.mrb[28].mxu0 %vm318_vm4, %v7207_v22 }
 0x5c8   : > { %10740 = vmatprep.mubr.msk.f32.mxu0 %vm318_vm4, %v7208_v31 }
 0x5cb   : > { %10741 = vmatmul.mubr.msk.f32.gmra.mrb[30].mxu0 %vm318_vm4, %v7209_v55 }
 0x5cc   : > { %10743 = vmatprep.mubr.msk.f32.mxu0 %vm318_vm4, %v7210_v33 }
 0x5cf   : > { %10744 = vmatmul.mubr.msk.f32.gmra.mrb[32].mxu0 %vm318_vm4, %v7211_v47 }
 0x5d0   : > { %10746 = vmatprep.mubr.msk.f32.mxu0 %vm318_vm4, %v7212_v37 }
 0x5d3   : > { %10747 = vmatmul.mubr.msk.f32.gmra.mrb[34].mxu0 %vm318_vm4, %v7213_v12 }
 0x5d4   : > { %10749 = vmatprep.mubr.msk.f32.mxu0 %vm318_vm4, %v7214_v62 }
 0x5d7   : > { %10750 = vmatmul.mubr.msk.f32.gmra.mrb[36].mxu0 %vm318_vm4, %v7215_v3 }
 0x5d8   : > { %10752 = vmatprep.mubr.msk.f32.mxu0 %vm318_vm4, %v7216_v57 }
 0x5db   : > { %10753 = vmatmul.mubr.msk.f32.gmra.mrb[38].mxu0 %vm318_vm4, %v7217_v9 }
 0x5dc   : > { %10755 = vmatprep.mubr.msk.f32.mxu0 %vm318_vm4, %v7218_v54 }
 0x5df   : > { %10756 = vmatmul.mubr.msk.f32.gmra.mrb[40].mxu0 %vm318_vm4, %v7219_v16 }
 0x5e0   : > { %10758 = vmatprep.mubr.msk.f32.mxu0 %vm318_vm4, %v7220_v18 }
 0x5e3   : > { %10759 = vmatmul.mubr.msk.f32.gmra.mrb[42].mxu0 %vm318_vm4, %v7221_v42 }
 0x5e4   : > { %10761 = vmatprep.mubr.msk.f32.mxu0 %vm318_vm4, %v13844_v28  ;;  %v14614_v28 = vld [vmem:[#allocation10_spill] sm:$0xff] }
 0x5e7   : > { %10762 = vmatmul.mubr.msk.f32.gmra.mrb[44].mxu0 %vm318_vm4, %v13848_v61  ;;  %v7617_v61 = vld [vmem:[#allocation2 + $0x19a] sm:$0xff] }
 0x5e8   : > { %10764 = vmatprep.mubr.msk.f32.mxu0 %vm318_vm4, %v7224_v46 }
 0x5eb   : > { %10765 = vmatmul.mubr.msk.f32.gmra.mrb[46].mxu0 %vm318_vm4, %v7225_v15 }
 0x5ec   : > { %10783 = vmatprep.mubr.msk.f32.mxu0 %vm318_vm4, %v13550_v25  ;;  %v14612_v25 = vld [vmem:[#allocation9_spill] sm:$0xff] }
 0x5ef   : > { %10784 = vmatmul.mubr.msk.f32.vlgmr.msra.gmra.mrb[16].mxu0 %vm318_vm4, %v14584_v45  ;;  %v14615_v45 = vld [vmem:[#allocation13_spill] sm:$0xff] }
 0x5f0   : > { %10786 = vmatprep.mubr.msk.f32.mxu0 %vm318_vm4, %v13564_v13  ;;  %v14611_v13 = vld [vmem:[#allocation41_spill] sm:$0xff] }
 0x5f3   : > { %10787 = vmatmul.mubr.msk.f32.gmra.mrb[18].mxu0 %vm318_vm4, %v13568_v63  ;;  %v14613_v63 = vld [vmem:[#allocation11_spill] sm:$0xff] }
 0x5f4   : > { %10789 = vmatprep.mubr.msk.f32.mxu0 %vm318_vm4, %v14585_v30  ;;  %v7618_v30 = vld [vmem:[#allocation2 + $0x1a2] sm:$0xff] }
 0x5f7   : > { %10790 = vmatmul.mubr.msk.f32.gmra.mrb[20].mxu0 %vm318_vm4, %v14586_v0  ;;  %v14148_v0 = vld [vmem:[%s14342_s6] ss:$0 sm:$0xff] }
 0x5f8   : > { %10792 = vmatprep.mubr.msk.f32.mxu0 %vm318_vm4, %v14587_v40 }
 0x5fb   : > { %10793 = vmatmul.mubr.msk.f32.gmra.mrb[22].mxu0 %vm318_vm4, %v14588_v11  ;;  %v14152_v11 = vstv %s8859_s18  ;;  %s11718_s18 = sshll.u32 %s11785_s17, 4  ;;  %s11719_s18 = int_to_ptr.vmem [resolvable:$false] %s11718_s18 }
 0x5fc   : > { %10795 = vmatprep.mubr.msk.f32.mxu0 %vm318_vm4, %v14589_v43  ;;  %s11720_s20 = scalar_lea.vmem %s11719_s18, 8192  ;;  %p11721_p13 = scmp.lt.s32.totalorder %s14287_s25, %s11719_s18 }
 0x5fd   : > { %p11722_p0 = scmp.lt.s32.totalorder %s11720_s20, %s11714_s13 }
 0x5ff   : > { %10796 = vmatmul.mubr.msk.f32.gmra.mrb[24].mxu0 %vm318_vm4, %v14590_v19  ;;  %p11723_p1 = por %p11722_p0, %p11721_p13 }
 0x600   : > { %10798 = vmatprep.mubr.msk.f32.mxu0 %vm318_vm4, %v14591_v48 }
 0x601   : > { %p11724_p2 = pnand %p11723_p1, %p11717_p12 }
 0x603   : > { %10799 = vmatmul.mubr.msk.f32.gmra.mrb[26].mxu0 %vm318_vm4, %v14592_v32 }
 0x604   : > { %10801 = vmatprep.mubr.msk.f32.mxu0 %vm318_vm4, %v14593_v17 }
 0x607   : > { %10802 = vmatmul.mubr.msk.f32.gmra.mrb[28].mxu0 %vm318_vm4, %v14594_v35 }
 0x608   : > { %10804 = vmatprep.mubr.msk.f32.mxu0 %vm318_vm4, %v14595_v24 }
 0x60b   : > { %10805 = vmatmul.mubr.msk.f32.gmra.mrb[30].mxu0 %vm318_vm4, %v14596_v26 }
 0x60c   : > { %10807 = vmatprep.mubr.msk.f32.mxu0 %vm318_vm4, %v14597_v6 }
 0x60f   : > { %10808 = vmatmul.mubr.msk.f32.gmra.mrb[32].mxu0 %vm318_vm4, %v14598_v39 }
 0x610   : > { %10810 = vmatprep.mubr.msk.f32.mxu0 %vm318_vm4, %v14599_v7 }
 0x613   : > { %10811 = vmatmul.mubr.msk.f32.gmra.mrb[34].mxu0 %vm318_vm4, %v14600_v44 }
 0x614   : > { %10813 = vmatprep.mubr.msk.f32.mxu0 %vm318_vm4, %v14601_v51 }
 0x617   : > { %10814 = vmatmul.mubr.msk.f32.gmra.mrb[36].mxu0 %vm318_vm4, %v14602_v56 }
 0x618   : > { %10816 = vmatprep.mubr.msk.f32.mxu0 %vm318_vm4, %v14603_v8 }
 0x61b   : > { %10817 = vmatmul.mubr.msk.f32.gmra.mrb[38].mxu0 %vm318_vm4, %v14604_v21 }
 0x61c   : > { %10819 = vmatprep.mubr.msk.f32.mxu0 %vm318_vm4, %v14605_v1 }
 0x61f   : > { %10820 = vmatmul.mubr.msk.f32.gmra.mrb[40].mxu0 %vm318_vm4, %v14611_v13 }
 0x620   : > { %10822 = vmatprep.mubr.msk.f32.mxu0 %vm318_vm4, %v14612_v25 }
 0x623   : > { %10823 = vmatmul.mubr.msk.f32.gmra.mrb[42].mxu0 %vm318_vm4, %v14613_v63 }
 0x624   : > { %10825 = vmatprep.mubr.msk.f32.mxu0 %vm318_vm4, %v14614_v28 }
 0x627   : > { %10826 = vmatmul.mubr.msk.f32.gmra.mrb[44].mxu0 %vm318_vm4, %v14615_v45 }
 0x628   : > { %10828 = vmatprep.mubr.msk.f32.mxu0 %vm318_vm4, %v7617_v61 }
 0x62b   : > { %10829 = vmatmul.mubr.msk.f32.gmra.mrb[46].mxu0 %vm318_vm4, %v7618_v30 }
 0x6c2   : > { %v10785_v40 = vpop.f32.mrb[16].mxu0 }
 0x6c3   : > { %v7988_v43 = vadd.f32 %v10785_v40, %v14148_v0  ;;  %v7789_v19 = vpop.f32.mrb[17].mxu0 }
 0x6c4   : > { %v7987_v48 = vadd.f32 %v14148_v0, %v7789_v19 }
 0x6c5   : > { %vm8021_vm11 = vcmp.gt.f32.partialorder %v7988_v43, 0.0  ;;  %v8054_v32 = vmul.f32 %v14152_v11, %v7988_v43 }
 0x6c6   : > { %vm8020_vm12 = vcmp.gt.f32.partialorder %v7987_v48, 0.0  ;;  %v8053_v17 = vmul.f32 %v14152_v11, %v7987_v48  ;;  %v10788_v35 = vpop.f32.mrb[18].mxu0 }
 0x6c7   : > { %v8086_v24 = vsel %vm8021_vm11, %v7988_v43, %v8054_v32  ;;  %v7990_v26 = vadd.f32 %v10788_v35, %v14148_v0  ;;  %v7799_v6 = vpop.f32.mrb[19].mxu0 }
 0x6c8   : > { %8118 = vst.msk [vmem:[%s14159_s23 + $0x8] sm:$0xff] %vm318_vm4, %v8086_v24  ;;  %v8085_v39 = vsel %vm8020_vm12, %v7987_v48, %v8053_v17  ;;  %v7989_v7 = vadd.f32 %v14148_v0, %v7799_v6 }
 0x6c9   : > { %8117 = vst.msk [vmem:[%s14159_s23] sm:$0xff] %vm318_vm4, %v8085_v39  ;;  %vm8023_vm13 = vcmp.gt.f32.partialorder %v7990_v26, 0.0  ;;  %v8056_v44 = vmul.f32 %v14152_v11, %v7990_v26 }
 0x6ca   : > { %vm8022_vm14 = vcmp.gt.f32.partialorder %v7989_v7, 0.0  ;;  %v8055_v51 = vmul.f32 %v14152_v11, %v7989_v7  ;;  %v10791_v56 = vpop.f32.mrb[20].mxu0 }
 0x6cb   : > { %v8088_v8 = vsel %vm8023_vm13, %v7990_v26, %v8056_v44  ;;  %v7992_v21 = vadd.f32 %v10791_v56, %v14148_v0  ;;  %v7809_v1 = vpop.f32.mrb[21].mxu0 }
 0x6cc   : > { %8120 = vst.msk [vmem:[%s14159_s23 + $0x18] sm:$0xff] %vm318_vm4, %v8088_v8  ;;  %v8087_v41 = vsel %vm8022_vm14, %v7989_v7, %v8055_v51  ;;  %v7991_v38 = vadd.f32 %v14148_v0, %v7809_v1 }
 0x6cd   : > { %8119 = vst.msk [vmem:[%s14159_s23 + $0x10] sm:$0xff] %vm318_vm4, %v8087_v41  ;;  %vm8025_vm15 = vcmp.gt.f32.partialorder %v7992_v21, 0.0  ;;  %v8058_v20 = vmul.f32 %v14152_v11, %v7992_v21 }
 0x6ce   : > { %vm8024_vm0 = vcmp.gt.f32.partialorder %v7991_v38, 0.0  ;;  %v8057_v5 = vmul.f32 %v14152_v11, %v7991_v38  ;;  %v10794_v36 = vpop.f32.mrb[22].mxu0 }
 0x6cf   : > { %v8090_v60 = vsel %vm8025_vm15, %v7992_v21, %v8058_v20  ;;  %v7994_v10 = vadd.f32 %v10794_v36, %v14148_v0  ;;  %v7819_v49 = vpop.f32.mrb[23].mxu0 }
 0x6d0   : > { %8122 = vst.msk [vmem:[%s14159_s23 + $0x28] sm:$0xff] %vm318_vm4, %v8090_v60  ;;  %v8089_v53 = vsel %vm8024_vm0, %v7991_v38, %v8057_v5  ;;  %v7993_v50 = vadd.f32 %v14148_v0, %v7819_v49 }
 0x6d1   : > { %8121 = vst.msk [vmem:[%s14159_s23 + $0x20] sm:$0xff] %vm318_vm4, %v8089_v53  ;;  %vm8027_vm1 = vcmp.gt.f32.partialorder %v7994_v10, 0.0  ;;  %v8060_v23 = vmul.f32 %v14152_v11, %v7994_v10 }
 0x6d2   : > { %vm8026_vm2 = vcmp.gt.f32.partialorder %v7993_v50, 0.0  ;;  %v8059_v52 = vmul.f32 %v14152_v11, %v7993_v50  ;;  %v10797_v4 = vpop.f32.mrb[24].mxu0 }
 0x6d3   : > { %v8092_v58 = vsel %vm8027_vm1, %v7994_v10, %v8060_v23  ;;  %v7996_v59 = vadd.f32 %v10797_v4, %v14148_v0  ;;  %v7829_v2 = vpop.f32.mrb[25].mxu0 }
 0x6d4   : > { %8124 = vst.msk [vmem:[%s14159_s23 + $0x38] sm:$0xff] %vm318_vm4, %v8092_v58  ;;  %v8091_v14 = vsel %vm8026_vm2, %v7993_v50, %v8059_v52  ;;  %v7995_v29 = vadd.f32 %v14148_v0, %v7829_v2 }
 0x6d5   : > { %8123 = vst.msk [vmem:[%s14159_s23 + $0x30] sm:$0xff] %vm318_vm4, %v8091_v14  ;;  %vm8029_vm3 = vcmp.gt.f32.partialorder %v7996_v59, 0.0  ;;  %v8062_v34 = vmul.f32 %v14152_v11, %v7996_v59 }
 0x6d6   : > { %vm8028_vm5 = vcmp.gt.f32.partialorder %v7995_v29, 0.0  ;;  %v8061_v27 = vmul.f32 %v14152_v11, %v7995_v29  ;;  %v10800_v22 = vpop.f32.mrb[26].mxu0 }
 0x6d7   : > { %v8094_v31 = vsel %vm8029_vm3, %v7996_v59, %v8062_v34  ;;  %v7998_v55 = vadd.f32 %v10800_v22, %v14148_v0  ;;  %v7839_v33 = vpop.f32.mrb[27].mxu0 }
 0x6d8   : > { %8126 = vst.msk [vmem:[%s14159_s23 + $0x48] sm:$0xff] %vm318_vm4, %v8094_v31  ;;  %v8093_v47 = vsel %vm8028_vm5, %v7995_v29, %v8061_v27  ;;  %v7997_v37 = vadd.f32 %v14148_v0, %v7839_v33 }
 0x6d9   : > { %8125 = vst.msk [vmem:[%s14159_s23 + $0x40] sm:$0xff] %vm318_vm4, %v8093_v47  ;;  %vm8031_vm6 = vcmp.gt.f32.partialorder %v7998_v55, 0.0  ;;  %v8064_v12 = vmul.f32 %v14152_v11, %v7998_v55 }
 0x6da   : > { %vm8030_vm7 = vcmp.gt.f32.partialorder %v7997_v37, 0.0  ;;  %v8063_v62 = vmul.f32 %v14152_v11, %v7997_v37  ;;  %v10803_v3 = vpop.f32.mrb[28].mxu0 }
 0x6db   : > { %v8096_v57 = vsel %vm8031_vm6, %v7998_v55, %v8064_v12  ;;  %v8000_v9 = vadd.f32 %v10803_v3, %v14148_v0  ;;  %v7849_v54 = vpop.f32.mrb[29].mxu0 }
 0x6dc   : > { %8128 = vst.msk [vmem:[%s14159_s23 + $0x58] sm:$0xff] %vm318_vm4, %v8096_v57  ;;  %v8095_v16 = vsel %vm8030_vm7, %v7997_v37, %v8063_v62  ;;  %v7999_v18 = vadd.f32 %v14148_v0, %v7849_v54 }
 0x6dd   : > { %8127 = vst.msk [vmem:[%s14159_s23 + $0x50] sm:$0xff] %vm318_vm4, %v8095_v16  ;;  %vm8033_vm8 = vcmp.gt.f32.partialorder %v8000_v9, 0.0  ;;  %v8066_v42 = vmul.f32 %v14152_v11, %v8000_v9 }
 0x6de   : > { %vm8032_vm9 = vcmp.gt.f32.partialorder %v7999_v18, 0.0  ;;  %v8065_v46 = vmul.f32 %v14152_v11, %v7999_v18  ;;  %v10806_v15 = vpop.f32.mrb[30].mxu0 }
 0x6df   : > { %v8098_v13 = vsel %vm8033_vm8, %v8000_v9, %v8066_v42  ;;  %v8002_v25 = vadd.f32 %v10806_v15, %v14148_v0  ;;  %v7859_v63 = vpop.f32.mrb[31].mxu0 }
 0x6e0   : > { %8130 = vst.msk [vmem:[%s14159_s23 + $0x68] sm:$0xff] %vm318_vm4, %v8098_v13  ;;  %v8097_v28 = vsel %vm8032_vm9, %v7999_v18, %v8065_v46  ;;  %v8001_v61 = vadd.f32 %v14148_v0, %v7859_v63 }
 0x6e1   : > { %8129 = vst.msk [vmem:[%s14159_s23 + $0x60] sm:$0xff] %vm318_vm4, %v8097_v28  ;;  %vm8035_vm10 = vcmp.gt.f32.partialorder %v8002_v25, 0.0  ;;  %v8068_v45 = vmul.f32 %v14152_v11, %v8002_v25 }
 0x6e2   : > { %vm8034_vm11 = vcmp.gt.f32.partialorder %v8001_v61, 0.0  ;;  %v8067_v30 = vmul.f32 %v14152_v11, %v8001_v61  ;;  %v10809_v40 = vpop.f32.mrb[32].mxu0 }
 0x6e3   : > { %v8100_v43 = vsel %vm8035_vm10, %v8002_v25, %v8068_v45  ;;  %v8004_v19 = vadd.f32 %v10809_v40, %v14148_v0  ;;  %v7869_v48 = vpop.f32.mrb[33].mxu0 }
 0x6e4   : > { %8132 = vst.msk [vmem:[%s14159_s23 + $0x78] sm:$0xff] %vm318_vm4, %v8100_v43  ;;  %v8099_v32 = vsel %vm8034_vm11, %v8001_v61, %v8067_v30  ;;  %v8003_v17 = vadd.f32 %v14148_v0, %v7869_v48 }
 0x6e5   : > { %8131 = vst.msk [vmem:[%s14159_s23 + $0x70] sm:$0xff] %vm318_vm4, %v8099_v32  ;;  %vm8037_vm12 = vcmp.gt.f32.partialorder %v8004_v19, 0.0  ;;  %v8070_v35 = vmul.f32 %v14152_v11, %v8004_v19 }
 0x6e6   : > { %vm8036_vm13 = vcmp.gt.f32.partialorder %v8003_v17, 0.0  ;;  %v8069_v24 = vmul.f32 %v14152_v11, %v8003_v17  ;;  %v10812_v26 = vpop.f32.mrb[34].mxu0 }
 0x6e7   : > { %v8102_v6 = vsel %vm8037_vm12, %v8004_v19, %v8070_v35  ;;  %v8006_v39 = vadd.f32 %v10812_v26, %v14148_v0  ;;  %v7879_v7 = vpop.f32.mrb[35].mxu0 }
 0x6e8   : > { %8134 = vst.msk [vmem:[%s14159_s23 + $0x88] sm:$0xff] %vm318_vm4, %v8102_v6  ;;  %v8101_v44 = vsel %vm8036_vm13, %v8003_v17, %v8069_v24  ;;  %v8005_v51 = vadd.f32 %v14148_v0, %v7879_v7 }
 0x6e9   : > { %8133 = vst.msk [vmem:[%s14159_s23 + $0x80] sm:$0xff] %vm318_vm4, %v8101_v44  ;;  %vm8039_vm14 = vcmp.gt.f32.partialorder %v8006_v39, 0.0  ;;  %v8072_v56 = vmul.f32 %v14152_v11, %v8006_v39 }
 0x6ea   : > { %vm8038_vm15 = vcmp.gt.f32.partialorder %v8005_v51, 0.0  ;;  %v8071_v8 = vmul.f32 %v14152_v11, %v8005_v51  ;;  %v10815_v21 = vpop.f32.mrb[36].mxu0 }
 0x6eb   : > { %v8104_v1 = vsel %vm8039_vm14, %v8006_v39, %v8072_v56  ;;  %v8008_v41 = vadd.f32 %v10815_v21, %v14148_v0  ;;  %v7889_v38 = vpop.f32.mrb[37].mxu0 }
 0x6ec   : > { %8136 = vst.msk [vmem:[%s14159_s23 + $0x98] sm:$0xff] %vm318_vm4, %v8104_v1  ;;  %v8103_v20 = vsel %vm8038_vm15, %v8005_v51, %v8071_v8  ;;  %v8007_v5 = vadd.f32 %v14148_v0, %v7889_v38 }
 0x6ed   : > { %8135 = vst.msk [vmem:[%s14159_s23 + $0x90] sm:$0xff] %vm318_vm4, %v8103_v20  ;;  %vm8041_vm0 = vcmp.gt.f32.partialorder %v8008_v41, 0.0  ;;  %v8074_v36 = vmul.f32 %v14152_v11, %v8008_v41 }
 0x6ee   : > { %vm8040_vm1 = vcmp.gt.f32.partialorder %v8007_v5, 0.0  ;;  %v8073_v60 = vmul.f32 %v14152_v11, %v8007_v5  ;;  %v10818_v10 = vpop.f32.mrb[38].mxu0 }
 0x6ef   : > { %v8106_v49 = vsel %vm8041_vm0, %v8008_v41, %v8074_v36  ;;  %v8010_v53 = vadd.f32 %v10818_v10, %v14148_v0  ;;  %v7899_v50 = vpop.f32.mrb[39].mxu0 }
 0x6f0   : > { %8138 = vst.msk [vmem:[%s14159_s23 + $0xa8] sm:$0xff] %vm318_vm4, %v8106_v49  ;;  %v8105_v23 = vsel %vm8040_vm1, %v8007_v5, %v8073_v60  ;;  %v8009_v52 = vadd.f32 %v14148_v0, %v7899_v50 }
 0x6f1   : > { %8137 = vst.msk [vmem:[%s14159_s23 + $0xa0] sm:$0xff] %vm318_vm4, %v8105_v23  ;;  %vm8043_vm2 = vcmp.gt.f32.partialorder %v8010_v53, 0.0  ;;  %v8076_v4 = vmul.f32 %v14152_v11, %v8010_v53 }
 0x6f2   : > { %vm8042_vm3 = vcmp.gt.f32.partialorder %v8009_v52, 0.0  ;;  %v8075_v58 = vmul.f32 %v14152_v11, %v8009_v52  ;;  %v10821_v59 = vpop.f32.mrb[40].mxu0 }
 0x6f3   : > { %v8108_v2 = vsel %vm8043_vm2, %v8010_v53, %v8076_v4  ;;  %v8012_v14 = vadd.f32 %v10821_v59, %v14148_v0  ;;  %v7909_v29 = vpop.f32.mrb[41].mxu0 }
 0x6f4   : > { %8140 = vst.msk [vmem:[%s14159_s23 + $0xb8] sm:$0xff] %vm318_vm4, %v8108_v2  ;;  %v8107_v34 = vsel %vm8042_vm3, %v8009_v52, %v8075_v58  ;;  %v8011_v27 = vadd.f32 %v14148_v0, %v7909_v29 }
 0x6f5   : > { %8139 = vst.msk [vmem:[%s14159_s23 + $0xb0] sm:$0xff] %vm318_vm4, %v8107_v34  ;;  %vm8045_vm5 = vcmp.gt.f32.partialorder %v8012_v14, 0.0  ;;  %v8078_v22 = vmul.f32 %v14152_v11, %v8012_v14 }
 0x6f6   : > { %vm8044_vm6 = vcmp.gt.f32.partialorder %v8011_v27, 0.0  ;;  %v8077_v31 = vmul.f32 %v14152_v11, %v8011_v27  ;;  %v10824_v55 = vpop.f32.mrb[42].mxu0 }
 0x6f7   : > { %v8110_v33 = vsel %vm8045_vm5, %v8012_v14, %v8078_v22  ;;  %v8014_v47 = vadd.f32 %v10824_v55, %v14148_v0  ;;  %v7919_v37 = vpop.f32.mrb[43].mxu0 }
 0x6f8   : > { %8142 = vst.msk [vmem:[%s14159_s23 + $0xc8] sm:$0xff] %vm318_vm4, %v8110_v33  ;;  %v8109_v12 = vsel %vm8044_vm6, %v8011_v27, %v8077_v31  ;;  %v8013_v62 = vadd.f32 %v14148_v0, %v7919_v37 }
 0x6f9   : > { %8141 = vst.msk [vmem:[%s14159_s23 + $0xc0] sm:$0xff] %vm318_vm4, %v8109_v12  ;;  %vm8047_vm7 = vcmp.gt.f32.partialorder %v8014_v47, 0.0  ;;  %v8080_v3 = vmul.f32 %v14152_v11, %v8014_v47 }
 0x6fa   : > { %vm8046_vm8 = vcmp.gt.f32.partialorder %v8013_v62, 0.0  ;;  %v8079_v57 = vmul.f32 %v14152_v11, %v8013_v62  ;;  %v10827_v9 = vpop.f32.mrb[44].mxu0 }
 0x6fb   : > { %v8112_v54 = vsel %vm8047_vm7, %v8014_v47, %v8080_v3  ;;  %v8016_v16 = vadd.f32 %v10827_v9, %v14148_v0  ;;  %v7929_v18 = vpop.f32.mrb[45].mxu0 }
 0x6fc   : > { %8144 = vst.msk [vmem:[%s14159_s23 + $0xd8] sm:$0xff] %vm318_vm4, %v8112_v54  ;;  %v8111_v42 = vsel %vm8046_vm8, %v8013_v62, %v8079_v57  ;;  %v8015_v46 = vadd.f32 %v14148_v0, %v7929_v18 }
 0x6fd   : > { %8143 = vst.msk [vmem:[%s14159_s23 + $0xd0] sm:$0xff] %vm318_vm4, %v8111_v42  ;;  %vm8049_vm9 = vcmp.gt.f32.partialorder %v8016_v16, 0.0  ;;  %v8082_v15 = vmul.f32 %v14152_v11, %v8016_v16 }
 0x6fe   : > { %vm8048_vm10 = vcmp.gt.f32.partialorder %v8015_v46, 0.0  ;;  %v8081_v13 = vmul.f32 %v14152_v11, %v8015_v46  ;;  %v10830_v25 = vpop.f32.mrb[46].mxu0 }
 0x6ff   : > { %v8114_v63 = vsel %vm8049_vm9, %v8016_v16, %v8082_v15  ;;  %v8018_v28 = vadd.f32 %v10830_v25, %v14148_v0  ;;  %v7939_v61 = vpop.f32.mrb[47].mxu0 }
 0x700   : > { %8146 = vst.msk [vmem:[%s14159_s23 + $0xe8] sm:$0xff] %vm318_vm4, %v8114_v63  ;;  %v8113_v45 = vsel %vm8048_vm10, %v8015_v46, %v8081_v13  ;;  %v8017_v30 = vadd.f32 %v14148_v0, %v7939_v61 }
 0x701   : > { %8145 = vst.msk [vmem:[%s14159_s23 + $0xe0] sm:$0xff] %vm318_vm4, %v8113_v45  ;;  %vm8051_vm11 = vcmp.gt.f32.partialorder %v8018_v28, 0.0  ;;  %v8084_v40 = vmul.f32 %v14152_v11, %v8018_v28 }
 0x702   : > { %vm8050_vm12 = vcmp.gt.f32.partialorder %v8017_v30, 0.0  ;;  %v8083_v43 = vmul.f32 %v14152_v11, %v8017_v30 }
 0x703   : > { %v8116_v19 = vsel %vm8051_vm11, %v8018_v28, %v8084_v40 }
 0x704   : > { %8148 = vst.msk [vmem:[%s14159_s23 + $0xf8] sm:$0xff] %vm318_vm4, %v8116_v19  ;;  %v8115_v0 = vsel %vm8050_vm12, %v8017_v30, %v8083_v43 }
 0x705   : > { %8147 = vst.msk [vmem:[%s14159_s23 + $0xf0] sm:$0xff] %vm318_vm4, %v8115_v0 }
 0x706   : > { %11727 = shalt.err (!%p11724_p2)
}
 0x707   : > { %s11728_s19 = scalar_lea.hbm %s14285_s9, 4096  ;;  %s11732_s23 = scalar_lea.hbm %s14344_s8, 8192 }
 0x708   : > { %p11729_p3 = scmp.ne.s32.totalorder %s14285_s9, %s11728_s19  ;;  %p11733_p8 = scmp.lt.u32.totalorder %s14285_s9, %s14344_s8 }
 0x709   : > { %p11734_p10 = scmp.lt.u32.totalorder %s11732_s23, %s11728_s19  ;;  %p11736_p11 = scmp.lt.u32.totalorder %s11728_s19, %s14285_s9 }
 0x70a   : > { %p11730_p4 = pnand %p11729_p3, %p11871_p5 }
 0x70b   : > { %p11735_p9 = por %p11734_p10, %p11733_p8 }
 0x70c   : > { %p11731_p7 = pneg %p11730_p4 }
 0x70d   : > { %p11737_p12 = por %p11736_p11, %p11735_p9 }
 0x70f   : > { %p11738_p13 = pnand %p11737_p12, %p11731_p7 }
 0x711   : > { %11741 = shalt.err (!%p11738_p13)
}
 0x712   : > { %s11786_s10 = smov 128   ;;  %s11787_s13 = smov 8  }
 0x713   : > { %11649 = dma.vmem_to_hbm [thread:$0]  (%p11871_p5), %s14287_s25, 4096, %s14285_s9, %s14295_s12, %s11786_s10, %s11786_s10, %s11787_s13  }
 0x714 PF: > { %p11661_p0 = scmp.ge.s32.totalorder %s11780_s30, 2  ;;  %s8178_s17 = sand.u32 1, %s11768_s27  }
 0x715   : > { %s8179_s18 = scalar_lea.sflag [#allocation4], %s8178_s17 }
 0x716   : > { %p11656_p1 = pnand %p11661_p0, %p11875_p6 }
 0x718   : > { %11763 = dma.done.wait (!%p11656_p1), %s8179_s18, 4096  }
 0x719   : > { %11765 = vsyncadd (!%p11656_p1), %s8179_s18, 4294963200  ;;  %p19_p2 = scmp.ge.s32.totalorder %s11858_s11, 4   ;;  %s14616_s27 = smov %s11772_s28 }
 0x71a   : > { %s14617_s28 = smov %s11776_s29  ;;  %s14618_s29 = smov %s11869_s14 }
 0x71b   : > { %s14619_s30 = smov %s11858_s11  ;;  %21 = sbr.rel (!%p19_p2) target bundleno = 4 (0x4), region = 95 }
 0x722   :  { %8184 = vsyncpa [#allocation4], 1 }
 0x723   :  { %8186 = vsyncpa [#allocation4 + $0x1], 1 }
 0x724   :  { %8187 = vsyncpa [#allocation5], 1 }
 0x725   :  { %8189 = vsyncpa [#allocation5 + $0x1], 1 }

</bundles_post_ra>
